<compile_context>
chip_gen: v7x
topology: tpu7x:2x2x1
jax: 0.10.0
libtpu: 0.0.40
codegen_flags: <defaults>
</compile_context>

<pallas_src>
import functools

import numpy as np
import jax
import jax.numpy as jnp
from jax import lax
from jax.experimental import pallas as pl
from jax.experimental.pallas import tpu as pltpu

HIDDEN = 50                    # self._hidden_size
HP = 128                       # hidden padded to a full lane tile
OP = 128                       # output padded to a full lane tile
_KIDX = (0, 1, 1, 2, 2, 2)     # conv-kernel index of each of the 6 taps (k=1; k=2,2; k=3,3,3)
_TAPS = ((1, 0), (2, 0), (2, 1), (3, 0), (3, 1), (3, 2))   # (kernel_size, offset j) per tap


def _round_up(x, m):
    return (x + m - 1) // m * m


# ------------------------------------------------------------------ fused kernel ----
def _docsen_kernel(lens_ref,       # SMEM (S_pad,) int32 (scalar prefetch)
                   coeff_ref,      # (1, 6*SB, Wm)  per-tap word coefficients of this block
                   emb_ref,        # (1, Wm*SB, Ep) word-major embedded words of this block
                   kscale_ref,     # (1, SB, 8)     [valid_k / n_valid_k for k=1..3, 0 pad]
                   wc_ref,         # (6*Ep, 3*Hp)   packed (wl @ wc) conv slab
                   bc_ref,         # (1, 3*Hp)      packed fused conv biases
                   wgx_ref,        # (Hp, 3*Hp)     packed x-projections of the 3 gates
                   wgh_ref,        # (Hp, 3*Hp)     packed h-projections of the 3 gates
                   bg_ref,         # (1, 3*Hp)
                   wo_ref,         # (Hp, OP)       output linear
                   bo_ref,         # (1, OP)        padded lanes hold -1e30 (softmax mask)
                   out_ref,        # (1, OP) out
                   rep_ref,        # VMEM scratch (S_pad, Hp)    sentence reps (persistent)
                   xg_ref):        # VMEM scratch (S_pad, 3*Hp)  hoisted gate x-projections
    b = pl.program_id(0)
    SB = kscale_ref.shape[1]
    Wm = coeff_ref.shape[2]
    Ep = emb_ref.shape[2]
    Hp = wgx_ref.shape[0]

    # ---- sentence encoder for this block -----------------------------------------
    emb = emb_ref[0]                     # (Wm*SB, Ep)
    coeff = coeff_ref[0]                 # (6*SB, Wm)

    # per-tap weighted word means in EMBEDDING space (coefficients precomputed host-
    # side, so this loop is pure broadcast+FMA on the VPU).
    taps = [jnp.zeros((SB, Ep), jnp.float32) for _ in range(6)]
    for w in range(Wm):
        e_w = emb[w * SB:(w + 1) * SB, :]                          # (SB, Ep) static slice
        for t in range(6):
            c = coeff[t * SB:(t + 1) * SB, w:w + 1]                # (SB, 1)  static slice
            taps[t] = taps[t] + c * e_w

    # all 6 taps x 3 conv kernel sizes contracted in a SINGLE MXU matmul against the
    # host-fused (word-linear folded in) zero-padded block-structured slab.
    tap_cat = jnp.concatenate(taps, axis=1)                        # (SB, 6*Ep)
    c_all = jnp.dot(tap_cat, wc_ref[...],
                    preferred_element_type=jnp.float32) + bc_ref[...]   # (SB, 3*Hp)

    ks = kscale_ref[0]                                             # (SB, 8)
    rep = (ks[:, 0:1] * jnp.tanh(c_all[:, 0:Hp])
           + ks[:, 1:2] * jnp.tanh(c_all[:, Hp:2 * Hp])
           + ks[:, 2:3] * jnp.tanh(c_all[:, 2 * Hp:3 * Hp]))       # empty sentences -> 0
    off = pl.multiple_of(b * SB, SB)
    rep_ref[pl.ds(off, SB), :] = rep

    # ---- GNN recurrence + AVG + output softmax, fused into the LAST grid step ----
    @pl.when(b == pl.num_programs(0) - 1)
    def _():
        S_pad = rep_ref.shape[0]
        # hoist the x-dependent gate projections of ALL sentences into one matmul
        xg_ref[...] = jnp.dot(rep_ref[...], wgx_ref[...],
                              preferred_element_type=jnp.float32) + bg_ref[...]
        wgh = wgh_ref[...]

        # TODO(synk): GNN class source was not provided; using the Tang et al. (2015)
        # gated document-composition cell:
        #   i = sig(Wi x + Ui h), f = sig(Wf x + Uf h), g = tanh(Wg x + Ug h)
        #   h' = tanh(f*h + i*g)
        def body(s, carry):
            h, hsum, cnt = carry
            pre = xg_ref[pl.ds(s, 1), :] + jnp.dot(h, wgh,
                                                   preferred_element_type=jnp.float32)
            i_g = jax.nn.sigmoid(pre[:, 0:Hp])
            f_g = jax.nn.sigmoid(pre[:, Hp:2 * Hp])
            g_g = jnp.tanh(pre[:, 2 * Hp:3 * Hp])
            h_new = jnp.tanh(f_g * h + i_g * g_g)
            ne = lens_ref[s] > 0                     # "if num_words == 0: continue"
            nef = ne.astype(jnp.float32)
            h = jnp.where(ne, h_new, h)
            return h, hsum + nef * h_new, cnt + nef

        zeros = jnp.zeros((1, Hp), jnp.float32)
        h, hsum, cnt = lax.fori_loop(0, S_pad, body,
                                     (zeros, zeros, jnp.float32(0.0)),
                                     unroll=min(S_pad, 8))

        # GnnOutput.AVG over non-empty sentences.  All-empty documents are guarded
        # with max(cnt, 1) (the PyTorch reference would produce NaN in that case).
        gnn_out = hsum / jnp.maximum(cnt, 1.0)
        logits = jnp.dot(gnn_out, wo_ref[...],
                         preferred_element_type=jnp.float32) + bo_ref[...]
        m = jnp.max(logits, axis=-1, keepdims=True)
        e = jnp.exp(logits - m)
        out_ref[...] = e / jnp.sum(e, axis=-1, keepdims=True)


# --------------------------------------------------------------------- packing ----
def _pack_params(params, ep):
    """Zero-pad / pack weights into lane-aligned fused slabs, host-side.

    The word-linear is folded into the conv taps (pooled tap mean commutes with the
    affine word-linear):  wc_fused[t] = wl @ wc[t],  bc_fused[k] = bc[k] + sum_j bl@wc.
    """
    H, Hp, Op = HIDDEN, HP, OP
    E = params["wl"].shape[0]
    O = params["wo"].shape[1]
    f32 = jnp.float32

    wl = params["wl"].astype(f32)                    # (E, H)
    bl = params["bl"].astype(f32).reshape(1, H)
    wc = params["wc"].astype(f32)                    # (6, H, H)
    bc = params["bc"].astype(f32)                    # (3, H)

    wc_slab = jnp.zeros((6 * ep, 3 * Hp), f32)
    bc_slab = jnp.zeros((1, 3 * Hp), f32)
    for t in range(6):
        k = _KIDX[t]
        wc_slab = wc_slab.at[t * ep:t * ep + E, k * Hp:k * Hp + H].set(wl @ wc[t])
    for k in range(3):
        bsum = bc[k].reshape(1, H)
        for t in range(6):
            if _KIDX[t] == k:
                bsum = bsum + bl @ wc[t]
        bc_slab = bc_slab.at[0, k * Hp:k * Hp + H].set(bsum[0])

    wgx_p = jnp.zeros((Hp, 3 * Hp), f32)
    wgh_p = jnp.zeros((Hp, 3 * Hp), f32)
    bg_p = jnp.zeros((1, 3 * Hp), f32)
    for g in range(3):
        wgx_p = wgx_p.at[:H, g * Hp:g * Hp + H].set(params["wxg"][g].astype(f32))
        wgh_p = wgh_p.at[:H, g * Hp:g * Hp + H].set(params["uhg"][g].astype(f32))
        bg_p = bg_p.at[0, g * Hp:g * Hp + H].set(params["bg"][g].astype(f32))

    wo_p = jnp.zeros((Hp, OP), f32).at[:H, :O].set(params["wo"].astype(f32))
    # padded output lanes get a huge negative bias so they vanish in the softmax
    bo_p = jnp.full((1, OP), -1e30, f32).at[:, :O].set(params["bo"].astype(f32))
    return wc_slab, bc_slab, wgx_p, wgh_p, bg_p, wo_p, bo_p


# -------------------------------------------------------------------- wrapper ----
@functools.partial(jax.jit, static_argnames=("max_block",))
def docsen_forward(tokens, lens, params, max_block=128):
    """tokens: (S, Wm) int32 padded word ids, lens: (S,) int32 sentence lengths."""
    f32 = jnp.float32
    S, Wm = tokens.shape
    V, E = params["embedding"].shape
    O = params["wo"].shape[1]
    Hp, Op = HP, OP
    Ep = _round_up(E, 128)                      # lane-dense embedding dim

    # sentence block size: as large as possible (amortize per-step overhead, fill MXU
    # rows) but capped to the document and an ~8 MiB VMEM budget for the emb tile
    # (keeps the double-buffered input well inside v7x's 64 MiB / 32 MiB scoped VMEM).
    bytes_per_sentence = Wm * Ep * 4
    sb_vmem = max(8, ((8 * 1024 * 1024) // max(bytes_per_sentence, 1)) // 8 * 8)
    sb = max(8, min(max_block, _round_up(S, 8), sb_vmem))
    nb = (S + sb - 1) // sb
    S_pad = nb * sb

    tokens_p = jnp.zeros((S_pad, Wm), jnp.int32).at[:S, :].set(tokens.astype(jnp.int32))
    lens_p = jnp.zeros((S_pad,), jnp.int32).at[:S].set(lens.astype(jnp.int32))

    # Embedding lookup (plain JAX glue) into the word-major per-block layout the kernel
    # consumes: row (w*sb + s) of block b is word w of in-block sentence s.
    # TODO(synk): this still materializes the embedded doc in HBM; an in-kernel
    #             pl.Element / manual-DMA row gather would halve phase-1 HBM traffic.
    emb_pad = jnp.zeros((V, Ep), f32).at[:, :E].set(params["embedding"].astype(f32))
    tok_blk = tokens_p.reshape(nb, sb, Wm).transpose(0, 2, 1).reshape(nb, Wm * sb)
    emb_blk = emb_pad[tok_blk]                                   # (nb, Wm*sb, Ep)

    # Precompute the per-tap word coefficients (conv_k + full AvgPool1d masks) and the
    # per-k post-tanh scales, so the kernel's word loop is pure FMA (no compare/select).
    L = lens_p.astype(f32)[:, None]                              # (S_pad, 1)
    w_idx = jnp.arange(Wm, dtype=f32)[None, :]                   # (1, Wm)
    coeff_list, valid_list = [], []
    for k, j in _TAPS:
        vk = (L >= k).astype(f32)
        inv = vk / jnp.maximum(L - (k - 1), 1.0)                 # 1/(L-k+1) if L>=k else 0
        inside = ((w_idx >= j) & (w_idx <= L - k + j)).astype(f32)
        coeff_list.append(inside * inv)                          # (S_pad, Wm)
        if j == 0:
            valid_list.append(vk)
    coeff = jnp.stack(coeff_list, axis=0)                        # (6, S_pad, Wm)
    coeff_blk = coeff.reshape(6, nb, sb, Wm).transpose(1, 0, 2, 3).reshape(nb, 6 * sb, Wm)

    nvalid = valid_list[0] + valid_list[1] + valid_list[2]
    inv_nv = 1.0 / jnp.maximum(nvalid, 1.0)
    kscale = jnp.concatenate([v * inv_nv for v in valid_list]
                             + [jnp.zeros((S_pad, 5), f32)], axis=1)   # (S_pad, 8)
    kscale_blk = kscale.reshape(nb, sb, 8)

    wc_slab, bc_slab, wgx_p, wgh_p, bg_p, wo_p, bo_p = _pack_params(params, Ep)

    out = pl.pallas_call(
        _docsen_kernel,
        out_shape=jax.ShapeDtypeStruct((1, Op), jnp.float32),
        grid_spec=pltpu.PrefetchScalarGridSpec(
            num_scalar_prefetch=1,
            grid=(nb,),
            in_specs=[
                pl.BlockSpec((1, 6 * sb, Wm), lambda b, lens: (b, 0, 0)),
                pl.BlockSpec((1, Wm * sb, Ep), lambda b, lens: (b, 0, 0)),
                pl.BlockSpec((1, sb, 8), lambda b, lens: (b, 0, 0)),
                pl.BlockSpec((6 * Ep, 3 * Hp), lambda b, lens: (0, 0)),
                pl.BlockSpec((1, 3 * Hp), lambda b, lens: (0, 0)),
                pl.BlockSpec((Hp, 3 * Hp), lambda b, lens: (0, 0)),
                pl.BlockSpec((Hp, 3 * Hp), lambda b, lens: (0, 0)),
                pl.BlockSpec((1, 3 * Hp), lambda b, lens: (0, 0)),
                pl.BlockSpec((Hp, Op), lambda b, lens: (0, 0)),
                pl.BlockSpec((1, Op), lambda b, lens: (0, 0)),
            ],
            out_specs=pl.BlockSpec((1, Op), lambda b, lens: (0, 0)),
            scratch_shapes=[
                pltpu.VMEM((S_pad, Hp), jnp.float32),        # sentence reps (persistent)
                pltpu.VMEM((S_pad, 3 * Hp), jnp.float32),    # hoisted gate x-projections
            ],
        ),
        # sequential grid: reps accumulate across blocks and the GNN runs on the last
        # step (single-TC v5e/v6e gain nothing from "parallel" here anyway).
        compiler_params=pltpu.CompilerParams(dimension_semantics=("arbitrary",)),
    )(lens_p, coeff_blk, emb_blk, kscale_blk,
      wc_slab, bc_slab, wgx_p, wgh_p, bg_p, wo_p, bo_p)
    return out[0, :O]                            # (O,) like the PyTorch module


# ------------------------------------------------------------------- reference ----
def ref_forward(doc, params):
    """Pure-JAX reference mirroring the PyTorch forward (CONV / FORWARD / AVG)."""
    hidden_states = []
    h = jnp.zeros((1, HIDDEN), jnp.float32)
    for sent in doc:
        if len(sent) == 0:
            continue
        x = params["embedding"][jnp.array(sent, jnp.int32)]           # (L, E)
        hw = x @ params["wl"] + params["bl"]                          # (L, H)
        L = hw.shape[0]
        reps = []
        tap = 0
        for k in (1, 2, 3):
            if L >= k:
                outs = []
                for t in range(L - k + 1):
                    o = params["bc"][k - 1]
                    tp = tap
                    for j in range(k):
                        o = o + hw[t + j] @ params["wc"][tp]
                        tp += 1
                    outs.append(o)
                reps.append(jnp.tanh(jnp.mean(jnp.stack(outs), axis=0)))
            tap += k
        rep = jnp.mean(jnp.stack(reps), axis=0)[None, :]              # (1, H)

        def gate(idx):
            return rep @ params["wxg"][idx] + h @ params["uhg"][idx] + params["bg"][idx]

        ig = jax.nn.sigmoid(gate(0))
        fg = jax.nn.sigmoid(gate(1))
        gg = jnp.tanh(gate(2))
        h = jnp.tanh(fg * h + ig * gg)
        hidden_states.append(h)
    gnn_out = jnp.mean(jnp.concatenate(hidden_states, axis=0), axis=0)
    logits = gnn_out @ params["wo"] + params["bo"][0]
    return jax.nn.softmax(logits)


if __name__ == "__main__":
    VOCAB, E, O = 30, 32, 5         # vocab, embedding dim, output_size (hidden fixed at 50)
    Wm = 8                          # max words per sentence

    key = jax.random.PRNGKey(0)
    ks = jax.random.split(key, 10)
    params = {
        "embedding": jax.random.normal(ks[0], (VOCAB, E), jnp.float32) * 0.5,
        "wl":  jax.random.normal(ks[1], (E, HIDDEN), jnp.float32) * 0.2,
        "bl":  jax.random.normal(ks[2], (1, HIDDEN), jnp.float32) * 0.1,
        "wc":  jax.random.normal(ks[3], (6, HIDDEN, HIDDEN), jnp.float32) * 0.1,
        "bc":  jax.random.normal(ks[4], (3, HIDDEN), jnp.float32) * 0.1,
        "wxg": jax.random.normal(ks[5], (3, HIDDEN, HIDDEN), jnp.float32) * 0.1,
        "uhg": jax.random.normal(ks[6], (3, HIDDEN, HIDDEN), jnp.float32) * 0.1,
        "bg":  jax.random.normal(ks[7], (3, HIDDEN), jnp.float32) * 0.1,
        "wo":  jax.random.normal(ks[8], (HIDDEN, O), jnp.float32) * 0.2,
        "bo":  jax.random.normal(ks[9], (1, O), jnp.float32) * 0.1,
    }

    # a "document": ragged list of sentences of word indices (one empty sentence to
    # exercise the skip path), padded for the kernel
    doc = [[1, 2, 3, 4, 5], [], [7, 8], [9, 10, 11, 12, 13, 14, 15, 16]]
    S = len(doc)
    lens = jnp.array([len(s) for s in doc], dtype=jnp.int32)
    tokens_np = np.zeros((S, Wm), dtype=np.int32)
    for i, s in enumerate(doc):
        tokens_np[i, :len(s)] = np.array(s, dtype=np.int32)
    tokens = jnp.asarray(tokens_np)

    out = docsen_forward(tokens, lens, params)
    out = jax.block_until_ready(out)

    ref = ref_forward(doc, params)
    np.testing.assert_allclose(np.asarray(out), np.asarray(ref), rtol=1e-3, atol=1e-4)
    assert out.shape == (O,)
    print("KERNEL_OK")
</pallas_src>

<mosaic_0001>
module attributes {stable_mosaic.version = 11 : i64} {
  func.func @_docsen_kernel(%arg0: i32, %arg1: memref<8xi32, #tpu.memory_space<smem>>, %arg2: memref<1x48x8xf32, #tpu.memory_space<vmem>>, %arg3: memref<1x64x128xf32, #tpu.memory_space<vmem>>, %arg4: memref<1x8x8xf32, #tpu.memory_space<vmem>>, %arg5: memref<768x384xf32, #tpu.memory_space<vmem>>, %arg6: memref<1x384xf32, #tpu.memory_space<vmem>>, %arg7: memref<128x384xf32, #tpu.memory_space<vmem>>, %arg8: memref<128x384xf32, #tpu.memory_space<vmem>>, %arg9: memref<1x384xf32, #tpu.memory_space<vmem>>, %arg10: memref<128x128xf32, #tpu.memory_space<vmem>>, %arg11: memref<1x128xf32, #tpu.memory_space<vmem>>, %arg12: memref<1x128xf32, #tpu.memory_space<vmem>>, %arg13: memref<8x128xf32, #tpu.memory_space<vmem>>, %arg14: memref<8x384xf32, #tpu.memory_space<vmem>>) attributes {dimension_semantics = [#tpu.dimension_semantics<arbitrary>], iteration_bounds = array<i64: 1>, scalar_prefetch = 1 : i64, scratch_operands = 2 : i64, tpu.core_type = #tpu.core_type<tc>, window_params = [{transform_indices = @transform_0, window_bounds = array<i64: 1, 48, 8>}, {transform_indices = @transform_1, window_bounds = array<i64: 1, 64, 128>}, {transform_indices = @transform_2, window_bounds = array<i64: 1, 8, 8>}, {pipeline_mode = #tpu.pipeline_mode<synchronous>, transform_indices = @transform_3, window_bounds = array<i64: 768, 384>}, {pipeline_mode = #tpu.pipeline_mode<synchronous>, transform_indices = @transform_4, window_bounds = array<i64: 1, 384>}, {pipeline_mode = #tpu.pipeline_mode<synchronous>, transform_indices = @transform_5, window_bounds = array<i64: 128, 384>}, {pipeline_mode = #tpu.pipeline_mode<synchronous>, transform_indices = @transform_6, window_bounds = array<i64: 128, 384>}, {pipeline_mode = #tpu.pipeline_mode<synchronous>, transform_indices = @transform_7, window_bounds = array<i64: 1, 384>}, {pipeline_mode = #tpu.pipeline_mode<synchronous>, transform_indices = @transform_8, window_bounds = array<i64: 128, 128>}, {pipeline_mode = #tpu.pipeline_mode<synchronous>, transform_indices = @transform_9, window_bounds = array<i64: 1, 128>}, {pipeline_mode = #tpu.pipeline_mode<synchronous>, transform_indices = @transform_10, window_bounds = array<i64: 1, 128>}]} {
    %c0 = arith.constant 0 : index
    %c0_0 = arith.constant 0 : index
    %c0_1 = arith.constant 0 : index
    %0 = vector.load %arg3[%c0, %c0_0, %c0_1] : memref<1x64x128xf32, #tpu.memory_space<vmem>>, vector<1x64x128xf32>
    %1 = vector.shape_cast %0 : vector<1x64x128xf32> to vector<64x128xf32>
    %c0_2 = arith.constant 0 : index
    %c0_3 = arith.constant 0 : index
    %c0_4 = arith.constant 0 : index
    %2 = vector.load %arg2[%c0_2, %c0_3, %c0_4] : memref<1x48x8xf32, #tpu.memory_space<vmem>>, vector<1x48x8xf32>
    %3 = vector.shape_cast %2 : vector<1x48x8xf32> to vector<48x8xf32>
    %cst = arith.constant 0.000000e+00 : f32
    %4 = vector.broadcast %cst : f32 to vector<8x128xf32>
    %cst_5 = arith.constant 0.000000e+00 : f32
    %5 = vector.broadcast %cst_5 : f32 to vector<8x128xf32>
    %cst_6 = arith.constant 0.000000e+00 : f32
    %6 = vector.broadcast %cst_6 : f32 to vector<8x128xf32>
    %cst_7 = arith.constant 0.000000e+00 : f32
    %7 = vector.broadcast %cst_7 : f32 to vector<8x128xf32>
    %cst_8 = arith.constant 0.000000e+00 : f32
    %8 = vector.broadcast %cst_8 : f32 to vector<8x128xf32>
    %cst_9 = arith.constant 0.000000e+00 : f32
    %9 = vector.broadcast %cst_9 : f32 to vector<8x128xf32>
    %10 = vector.extract_strided_slice %1 {offsets = [0, 0], sizes = [8, 128], strides = [1, 1]} : vector<64x128xf32> to vector<8x128xf32>
    %11 = vector.extract_strided_slice %3 {offsets = [0, 0], sizes = [8, 1], strides = [1, 1]} : vector<48x8xf32> to vector<8x1xf32>
    %12 = vector.broadcast %11 : vector<8x1xf32> to vector<8x128xf32>
    %13 = arith.mulf %12, %10 : vector<8x128xf32>
    %14 = arith.addf %4, %13 : vector<8x128xf32>
    %15 = vector.extract_strided_slice %3 {offsets = [8, 0], sizes = [8, 1], strides = [1, 1]} : vector<48x8xf32> to vector<8x1xf32>
    %16 = vector.broadcast %15 : vector<8x1xf32> to vector<8x128xf32>
    %17 = arith.mulf %16, %10 : vector<8x128xf32>
    %18 = arith.addf %5, %17 : vector<8x128xf32>
    %19 = vector.extract_strided_slice %3 {offsets = [16, 0], sizes = [8, 1], strides = [1, 1]} : vector<48x8xf32> to vector<8x1xf32>
    %20 = vector.broadcast %19 : vector<8x1xf32> to vector<8x128xf32>
    %21 = arith.mulf %20, %10 : vector<8x128xf32>
    %22 = arith.addf %6, %21 : vector<8x128xf32>
    %23 = vector.extract_strided_slice %3 {offsets = [24, 0], sizes = [8, 1], strides = [1, 1]} : vector<48x8xf32> to vector<8x1xf32>
    %24 = vector.broadcast %23 : vector<8x1xf32> to vector<8x128xf32>
    %25 = arith.mulf %24, %10 : vector<8x128xf32>
    %26 = arith.addf %7, %25 : vector<8x128xf32>
    %27 = vector.extract_strided_slice %3 {offsets = [32, 0], sizes = [8, 1], strides = [1, 1]} : vector<48x8xf32> to vector<8x1xf32>
    %28 = vector.broadcast %27 : vector<8x1xf32> to vector<8x128xf32>
    %29 = arith.mulf %28, %10 : vector<8x128xf32>
    %30 = arith.addf %8, %29 : vector<8x128xf32>
    %31 = vector.extract_strided_slice %3 {offsets = [40, 0], sizes = [8, 1], strides = [1, 1]} : vector<48x8xf32> to vector<8x1xf32>
    %32 = vector.broadcast %31 : vector<8x1xf32> to vector<8x128xf32>
    %33 = arith.mulf %32, %10 : vector<8x128xf32>
    %34 = arith.addf %9, %33 : vector<8x128xf32>
    %35 = vector.extract_strided_slice %1 {offsets = [8, 0], sizes = [8, 128], strides = [1, 1]} : vector<64x128xf32> to vector<8x128xf32>
    %36 = vector.extract_strided_slice %3 {offsets = [0, 1], sizes = [8, 1], strides = [1, 1]} : vector<48x8xf32> to vector<8x1xf32>
    %37 = vector.broadcast %36 : vector<8x1xf32> to vector<8x128xf32>
    %38 = arith.mulf %37, %35 : vector<8x128xf32>
    %39 = arith.addf %14, %38 : vector<8x128xf32>
    %40 = vector.extract_strided_slice %3 {offsets = [8, 1], sizes = [8, 1], strides = [1, 1]} : vector<48x8xf32> to vector<8x1xf32>
    %41 = vector.broadcast %40 : vector<8x1xf32> to vector<8x128xf32>
    %42 = arith.mulf %41, %35 : vector<8x128xf32>
    %43 = arith.addf %18, %42 : vector<8x128xf32>
    %44 = vector.extract_strided_slice %3 {offsets = [16, 1], sizes = [8, 1], strides = [1, 1]} : vector<48x8xf32> to vector<8x1xf32>
    %45 = vector.broadcast %44 : vector<8x1xf32> to vector<8x128xf32>
    %46 = arith.mulf %45, %35 : vector<8x128xf32>
    %47 = arith.addf %22, %46 : vector<8x128xf32>
    %48 = vector.extract_strided_slice %3 {offsets = [24, 1], sizes = [8, 1], strides = [1, 1]} : vector<48x8xf32> to vector<8x1xf32>
    %49 = vector.broadcast %48 : vector<8x1xf32> to vector<8x128xf32>
    %50 = arith.mulf %49, %35 : vector<8x128xf32>
    %51 = arith.addf %26, %50 : vector<8x128xf32>
    %52 = vector.extract_strided_slice %3 {offsets = [32, 1], sizes = [8, 1], strides = [1, 1]} : vector<48x8xf32> to vector<8x1xf32>
    %53 = vector.broadcast %52 : vector<8x1xf32> to vector<8x128xf32>
    %54 = arith.mulf %53, %35 : vector<8x128xf32>
    %55 = arith.addf %30, %54 : vector<8x128xf32>
    %56 = vector.extract_strided_slice %3 {offsets = [40, 1], sizes = [8, 1], strides = [1, 1]} : vector<48x8xf32> to vector<8x1xf32>
    %57 = vector.broadcast %56 : vector<8x1xf32> to vector<8x128xf32>
    %58 = arith.mulf %57, %35 : vector<8x128xf32>
    %59 = arith.addf %34, %58 : vector<8x128xf32>
    %60 = vector.extract_strided_slice %1 {offsets = [16, 0], sizes = [8, 128], strides = [1, 1]} : vector<64x128xf32> to vector<8x128xf32>
    %61 = vector.extract_strided_slice %3 {offsets = [0, 2], sizes = [8, 1], strides = [1, 1]} : vector<48x8xf32> to vector<8x1xf32>
    %62 = vector.broadcast %61 : vector<8x1xf32> to vector<8x128xf32>
    %63 = arith.mulf %62, %60 : vector<8x128xf32>
    %64 = arith.addf %39, %63 : vector<8x128xf32>
    %65 = vector.extract_strided_slice %3 {offsets = [8, 2], sizes = [8, 1], strides = [1, 1]} : vector<48x8xf32> to vector<8x1xf32>
    %66 = vector.broadcast %65 : vector<8x1xf32> to vector<8x128xf32>
    %67 = arith.mulf %66, %60 : vector<8x128xf32>
    %68 = arith.addf %43, %67 : vector<8x128xf32>
    %69 = vector.extract_strided_slice %3 {offsets = [16, 2], sizes = [8, 1], strides = [1, 1]} : vector<48x8xf32> to vector<8x1xf32>
    %70 = vector.broadcast %69 : vector<8x1xf32> to vector<8x128xf32>
    %71 = arith.mulf %70, %60 : vector<8x128xf32>
    %72 = arith.addf %47, %71 : vector<8x128xf32>
    %73 = vector.extract_strided_slice %3 {offsets = [24, 2], sizes = [8, 1], strides = [1, 1]} : vector<48x8xf32> to vector<8x1xf32>
    %74 = vector.broadcast %73 : vector<8x1xf32> to vector<8x128xf32>
    %75 = arith.mulf %74, %60 : vector<8x128xf32>
    %76 = arith.addf %51, %75 : vector<8x128xf32>
    %77 = vector.extract_strided_slice %3 {offsets = [32, 2], sizes = [8, 1], strides = [1, 1]} : vector<48x8xf32> to vector<8x1xf32>
    %78 = vector.broadcast %77 : vector<8x1xf32> to vector<8x128xf32>
    %79 = arith.mulf %78, %60 : vector<8x128xf32>
    %80 = arith.addf %55, %79 : vector<8x128xf32>
    %81 = vector.extract_strided_slice %3 {offsets = [40, 2], sizes = [8, 1], strides = [1, 1]} : vector<48x8xf32> to vector<8x1xf32>
    %82 = vector.broadcast %81 : vector<8x1xf32> to vector<8x128xf32>
    %83 = arith.mulf %82, %60 : vector<8x128xf32>
    %84 = arith.addf %59, %83 : vector<8x128xf32>
    %85 = vector.extract_strided_slice %1 {offsets = [24, 0], sizes = [8, 128], strides = [1, 1]} : vector<64x128xf32> to vector<8x128xf32>
    %86 = vector.extract_strided_slice %3 {offsets = [0, 3], sizes = [8, 1], strides = [1, 1]} : vector<48x8xf32> to vector<8x1xf32>
    %87 = vector.broadcast %86 : vector<8x1xf32> to vector<8x128xf32>
    %88 = arith.mulf %87, %85 : vector<8x128xf32>
    %89 = arith.addf %64, %88 : vector<8x128xf32>
    %90 = vector.extract_strided_slice %3 {offsets = [8, 3], sizes = [8, 1], strides = [1, 1]} : vector<48x8xf32> to vector<8x1xf32>
    %91 = vector.broadcast %90 : vector<8x1xf32> to vector<8x128xf32>
    %92 = arith.mulf %91, %85 : vector<8x128xf32>
    %93 = arith.addf %68, %92 : vector<8x128xf32>
    %94 = vector.extract_strided_slice %3 {offsets = [16, 3], sizes = [8, 1], strides = [1, 1]} : vector<48x8xf32> to vector<8x1xf32>
    %95 = vector.broadcast %94 : vector<8x1xf32> to vector<8x128xf32>
    %96 = arith.mulf %95, %85 : vector<8x128xf32>
    %97 = arith.addf %72, %96 : vector<8x128xf32>
    %98 = vector.extract_strided_slice %3 {offsets = [24, 3], sizes = [8, 1], strides = [1, 1]} : vector<48x8xf32> to vector<8x1xf32>
    %99 = vector.broadcast %98 : vector<8x1xf32> to vector<8x128xf32>
    %100 = arith.mulf %99, %85 : vector<8x128xf32>
    %101 = arith.addf %76, %100 : vector<8x128xf32>
    %102 = vector.extract_strided_slice %3 {offsets = [32, 3], sizes = [8, 1], strides = [1, 1]} : vector<48x8xf32> to vector<8x1xf32>
    %103 = vector.broadcast %102 : vector<8x1xf32> to vector<8x128xf32>
    %104 = arith.mulf %103, %85 : vector<8x128xf32>
    %105 = arith.addf %80, %104 : vector<8x128xf32>
    %106 = vector.extract_strided_slice %3 {offsets = [40, 3], sizes = [8, 1], strides = [1, 1]} : vector<48x8xf32> to vector<8x1xf32>
    %107 = vector.broadcast %106 : vector<8x1xf32> to vector<8x128xf32>
    %108 = arith.mulf %107, %85 : vector<8x128xf32>
    %109 = arith.addf %84, %108 : vector<8x128xf32>
    %110 = vector.extract_strided_slice %1 {offsets = [32, 0], sizes = [8, 128], strides = [1, 1]} : vector<64x128xf32> to vector<8x128xf32>
    %111 = vector.extract_strided_slice %3 {offsets = [0, 4], sizes = [8, 1], strides = [1, 1]} : vector<48x8xf32> to vector<8x1xf32>
    %112 = vector.broadcast %111 : vector<8x1xf32> to vector<8x128xf32>
    %113 = arith.mulf %112, %110 : vector<8x128xf32>
    %114 = arith.addf %89, %113 : vector<8x128xf32>
    %115 = vector.extract_strided_slice %3 {offsets = [8, 4], sizes = [8, 1], strides = [1, 1]} : vector<48x8xf32> to vector<8x1xf32>
    %116 = vector.broadcast %115 : vector<8x1xf32> to vector<8x128xf32>
    %117 = arith.mulf %116, %110 : vector<8x128xf32>
    %118 = arith.addf %93, %117 : vector<8x128xf32>
    %119 = vector.extract_strided_slice %3 {offsets = [16, 4], sizes = [8, 1], strides = [1, 1]} : vector<48x8xf32> to vector<8x1xf32>
    %120 = vector.broadcast %119 : vector<8x1xf32> to vector<8x128xf32>
    %121 = arith.mulf %120, %110 : vector<8x128xf32>
    %122 = arith.addf %97, %121 : vector<8x128xf32>
    %123 = vector.extract_strided_slice %3 {offsets = [24, 4], sizes = [8, 1], strides = [1, 1]} : vector<48x8xf32> to vector<8x1xf32>
    %124 = vector.broadcast %123 : vector<8x1xf32> to vector<8x128xf32>
    %125 = arith.mulf %124, %110 : vector<8x128xf32>
    %126 = arith.addf %101, %125 : vector<8x128xf32>
    %127 = vector.extract_strided_slice %3 {offsets = [32, 4], sizes = [8, 1], strides = [1, 1]} : vector<48x8xf32> to vector<8x1xf32>
    %128 = vector.broadcast %127 : vector<8x1xf32> to vector<8x128xf32>
    %129 = arith.mulf %128, %110 : vector<8x128xf32>
    %130 = arith.addf %105, %129 : vector<8x128xf32>
    %131 = vector.extract_strided_slice %3 {offsets = [40, 4], sizes = [8, 1], strides = [1, 1]} : vector<48x8xf32> to vector<8x1xf32>
    %132 = vector.broadcast %131 : vector<8x1xf32> to vector<8x128xf32>
    %133 = arith.mulf %132, %110 : vector<8x128xf32>
    %134 = arith.addf %109, %133 : vector<8x128xf32>
    %135 = vector.extract_strided_slice %1 {offsets = [40, 0], sizes = [8, 128], strides = [1, 1]} : vector<64x128xf32> to vector<8x128xf32>
    %136 = vector.extract_strided_slice %3 {offsets = [0, 5], sizes = [8, 1], strides = [1, 1]} : vector<48x8xf32> to vector<8x1xf32>
    %137 = vector.broadcast %136 : vector<8x1xf32> to vector<8x128xf32>
    %138 = arith.mulf %137, %135 : vector<8x128xf32>
    %139 = arith.addf %114, %138 : vector<8x128xf32>
    %140 = vector.extract_strided_slice %3 {offsets = [8, 5], sizes = [8, 1], strides = [1, 1]} : vector<48x8xf32> to vector<8x1xf32>
    %141 = vector.broadcast %140 : vector<8x1xf32> to vector<8x128xf32>
    %142 = arith.mulf %141, %135 : vector<8x128xf32>
    %143 = arith.addf %118, %142 : vector<8x128xf32>
    %144 = vector.extract_strided_slice %3 {offsets = [16, 5], sizes = [8, 1], strides = [1, 1]} : vector<48x8xf32> to vector<8x1xf32>
    %145 = vector.broadcast %144 : vector<8x1xf32> to vector<8x128xf32>
    %146 = arith.mulf %145, %135 : vector<8x128xf32>
    %147 = arith.addf %122, %146 : vector<8x128xf32>
    %148 = vector.extract_strided_slice %3 {offsets = [24, 5], sizes = [8, 1], strides = [1, 1]} : vector<48x8xf32> to vector<8x1xf32>
    %149 = vector.broadcast %148 : vector<8x1xf32> to vector<8x128xf32>
    %150 = arith.mulf %149, %135 : vector<8x128xf32>
    %151 = arith.addf %126, %150 : vector<8x128xf32>
    %152 = vector.extract_strided_slice %3 {offsets = [32, 5], sizes = [8, 1], strides = [1, 1]} : vector<48x8xf32> to vector<8x1xf32>
    %153 = vector.broadcast %152 : vector<8x1xf32> to vector<8x128xf32>
    %154 = arith.mulf %153, %135 : vector<8x128xf32>
    %155 = arith.addf %130, %154 : vector<8x128xf32>
    %156 = vector.extract_strided_slice %3 {offsets = [40, 5], sizes = [8, 1], strides = [1, 1]} : vector<48x8xf32> to vector<8x1xf32>
    %157 = vector.broadcast %156 : vector<8x1xf32> to vector<8x128xf32>
    %158 = arith.mulf %157, %135 : vector<8x128xf32>
    %159 = arith.addf %134, %158 : vector<8x128xf32>
    %160 = vector.extract_strided_slice %1 {offsets = [48, 0], sizes = [8, 128], strides = [1, 1]} : vector<64x128xf32> to vector<8x128xf32>
    %161 = vector.extract_strided_slice %3 {offsets = [0, 6], sizes = [8, 1], strides = [1, 1]} : vector<48x8xf32> to vector<8x1xf32>
    %162 = vector.broadcast %161 : vector<8x1xf32> to vector<8x128xf32>
    %163 = arith.mulf %162, %160 : vector<8x128xf32>
    %164 = arith.addf %139, %163 : vector<8x128xf32>
    %165 = vector.extract_strided_slice %3 {offsets = [8, 6], sizes = [8, 1], strides = [1, 1]} : vector<48x8xf32> to vector<8x1xf32>
    %166 = vector.broadcast %165 : vector<8x1xf32> to vector<8x128xf32>
    %167 = arith.mulf %166, %160 : vector<8x128xf32>
    %168 = arith.addf %143, %167 : vector<8x128xf32>
    %169 = vector.extract_strided_slice %3 {offsets = [16, 6], sizes = [8, 1], strides = [1, 1]} : vector<48x8xf32> to vector<8x1xf32>
    %170 = vector.broadcast %169 : vector<8x1xf32> to vector<8x128xf32>
    %171 = arith.mulf %170, %160 : vector<8x128xf32>
    %172 = arith.addf %147, %171 : vector<8x128xf32>
    %173 = vector.extract_strided_slice %3 {offsets = [24, 6], sizes = [8, 1], strides = [1, 1]} : vector<48x8xf32> to vector<8x1xf32>
    %174 = vector.broadcast %173 : vector<8x1xf32> to vector<8x128xf32>
    %175 = arith.mulf %174, %160 : vector<8x128xf32>
    %176 = arith.addf %151, %175 : vector<8x128xf32>
    %177 = vector.extract_strided_slice %3 {offsets = [32, 6], sizes = [8, 1], strides = [1, 1]} : vector<48x8xf32> to vector<8x1xf32>
    %178 = vector.broadcast %177 : vector<8x1xf32> to vector<8x128xf32>
    %179 = arith.mulf %178, %160 : vector<8x128xf32>
    %180 = arith.addf %155, %179 : vector<8x128xf32>
    %181 = vector.extract_strided_slice %3 {offsets = [40, 6], sizes = [8, 1], strides = [1, 1]} : vector<48x8xf32> to vector<8x1xf32>
    %182 = vector.broadcast %181 : vector<8x1xf32> to vector<8x128xf32>
    %183 = arith.mulf %182, %160 : vector<8x128xf32>
    %184 = arith.addf %159, %183 : vector<8x128xf32>
    %185 = vector.extract_strided_slice %1 {offsets = [56, 0], sizes = [8, 128], strides = [1, 1]} : vector<64x128xf32> to vector<8x128xf32>
    %186 = vector.extract_strided_slice %3 {offsets = [0, 7], sizes = [8, 1], strides = [1, 1]} : vector<48x8xf32> to vector<8x1xf32>
    %187 = vector.broadcast %186 : vector<8x1xf32> to vector<8x128xf32>
    %188 = arith.mulf %187, %185 : vector<8x128xf32>
    %189 = arith.addf %164, %188 : vector<8x128xf32>
    %190 = vector.extract_strided_slice %3 {offsets = [8, 7], sizes = [8, 1], strides = [1, 1]} : vector<48x8xf32> to vector<8x1xf32>
    %191 = vector.broadcast %190 : vector<8x1xf32> to vector<8x128xf32>
    %192 = arith.mulf %191, %185 : vector<8x128xf32>
    %193 = arith.addf %168, %192 : vector<8x128xf32>
    %194 = vector.extract_strided_slice %3 {offsets = [16, 7], sizes = [8, 1], strides = [1, 1]} : vector<48x8xf32> to vector<8x1xf32>
    %195 = vector.broadcast %194 : vector<8x1xf32> to vector<8x128xf32>
    %196 = arith.mulf %195, %185 : vector<8x128xf32>
    %197 = arith.addf %172, %196 : vector<8x128xf32>
    %198 = vector.extract_strided_slice %3 {offsets = [24, 7], sizes = [8, 1], strides = [1, 1]} : vector<48x8xf32> to vector<8x1xf32>
    %199 = vector.broadcast %198 : vector<8x1xf32> to vector<8x128xf32>
    %200 = arith.mulf %199, %185 : vector<8x128xf32>
    %201 = arith.addf %176, %200 : vector<8x128xf32>
    %202 = vector.extract_strided_slice %3 {offsets = [32, 7], sizes = [8, 1], strides = [1, 1]} : vector<48x8xf32> to vector<8x1xf32>
    %203 = vector.broadcast %202 : vector<8x1xf32> to vector<8x128xf32>
    %204 = arith.mulf %203, %185 : vector<8x128xf32>
    %205 = arith.addf %180, %204 : vector<8x128xf32>
    %206 = vector.extract_strided_slice %3 {offsets = [40, 7], sizes = [8, 1], strides = [1, 1]} : vector<48x8xf32> to vector<8x1xf32>
    %207 = vector.broadcast %206 : vector<8x1xf32> to vector<8x128xf32>
    %208 = arith.mulf %207, %185 : vector<8x128xf32>
    %209 = arith.addf %184, %208 : vector<8x128xf32>
    %210 = tpu.concatenate %189, %193, %197, %201, %205, %209 in 1 : vector<8x128xf32>, vector<8x128xf32>, vector<8x128xf32>, vector<8x128xf32>, vector<8x128xf32>, vector<8x128xf32> -> vector<8x768xf32>
    %c0_10 = arith.constant 0 : index
    %c0_11 = arith.constant 0 : index
    %211 = vector.load %arg5[%c0_10, %c0_11] : memref<768x384xf32, #tpu.memory_space<vmem>>, vector<768x384xf32>
    %cst_12 = arith.constant dense<0.000000e+00> : vector<8x384xf32>
    %212 = tpu.matmul %210, %211, %cst_12 {dimension_numbers = #tpu.dot_dimension_numbers<[1], [0], [0], [1], [0, 0, 1, 1], [], []>} : vector<8x768xf32>, vector<768x384xf32>, vector<8x384xf32> -> vector<8x384xf32>
    %c0_13 = arith.constant 0 : index
    %c0_14 = arith.constant 0 : index
    %213 = vector.load %arg6[%c0_13, %c0_14] : memref<1x384xf32, #tpu.memory_space<vmem>>, vector<1x384xf32>
    %214 = vector.broadcast %213 : vector<1x384xf32> to vector<8x384xf32>
    %215 = arith.addf %212, %214 : vector<8x384xf32>
    %c0_15 = arith.constant 0 : index
    %c0_16 = arith.constant 0 : index
    %c0_17 = arith.constant 0 : index
    %216 = vector.load %arg4[%c0_15, %c0_16, %c0_17] : memref<1x8x8xf32, #tpu.memory_space<vmem>>, vector<1x8x8xf32>
    %217 = vector.shape_cast %216 : vector<1x8x8xf32> to vector<8x8xf32>
    %218 = vector.extract_strided_slice %217 {offsets = [0, 0], sizes = [8, 1], strides = [1, 1]} : vector<8x8xf32> to vector<8x1xf32>
    %219 = vector.extract_strided_slice %215 {offsets = [0, 0], sizes = [8, 128], strides = [1, 1]} : vector<8x384xf32> to vector<8x128xf32>
    %220 = math.tanh %219 : vector<8x128xf32>
    %221 = vector.broadcast %218 : vector<8x1xf32> to vector<8x128xf32>
    %222 = arith.mulf %221, %220 : vector<8x128xf32>
    %223 = vector.extract_strided_slice %217 {offsets = [0, 1], sizes = [8, 1], strides = [1, 1]} : vector<8x8xf32> to vector<8x1xf32>
    %224 = vector.extract_strided_slice %215 {offsets = [0, 128], sizes = [8, 128], strides = [1, 1]} : vector<8x384xf32> to vector<8x128xf32>
    %225 = math.tanh %224 : vector<8x128xf32>
    %226 = vector.broadcast %223 : vector<8x1xf32> to vector<8x128xf32>
    %227 = arith.mulf %226, %225 : vector<8x128xf32>
    %228 = arith.addf %222, %227 : vector<8x128xf32>
    %229 = vector.extract_strided_slice %217 {offsets = [0, 2], sizes = [8, 1], strides = [1, 1]} : vector<8x8xf32> to vector<8x1xf32>
    %230 = vector.extract_strided_slice %215 {offsets = [0, 256], sizes = [8, 128], strides = [1, 1]} : vector<8x384xf32> to vector<8x128xf32>
    %231 = math.tanh %230 : vector<8x128xf32>
    %232 = vector.broadcast %229 : vector<8x1xf32> to vector<8x128xf32>
    %233 = arith.mulf %232, %231 : vector<8x128xf32>
    %234 = arith.addf %228, %233 : vector<8x128xf32>
    %c8_i32 = arith.constant 8 : i32
    %235 = arith.muli %arg0, %c8_i32 : i32
    %236 = tpu.assume_multiple %235, 8 : i32
    %237 = arith.index_cast %236 : i32 to index
    %c0_18 = arith.constant 0 : index
    %238 = vector.load %arg13[%237, %c0_18] : memref<8x128xf32, #tpu.memory_space<vmem>>, vector<8x128xf32>
    tpu.vector_store %arg13[%237, %c0_18], %234 {strides = array<i32>} : memref<8x128xf32, #tpu.memory_space<vmem>>, vector<8x128xf32>,
    %c0_i32 = arith.constant 0 : i32
    %239 = arith.cmpi eq, %arg0, %c0_i32 : i32
    %240 = arith.extui %239 : i1 to i32
    %c0_i32_19 = arith.constant 0 : i32
    %241 = arith.cmpi ne, %240, %c0_i32_19 : i32
    scf.if %241 {
      %c0_20 = arith.constant 0 : index
      %c0_21 = arith.constant 0 : index
      %242 = vector.load %arg13[%c0_20, %c0_21] : memref<8x128xf32, #tpu.memory_space<vmem>>, vector<8x128xf32>
      %c0_22 = arith.constant 0 : index
      %c0_23 = arith.constant 0 : index
      %243 = vector.load %arg7[%c0_22, %c0_23] : memref<128x384xf32, #tpu.memory_space<vmem>>, vector<128x384xf32>
      %cst_24 = arith.constant dense<0.000000e+00> : vector<8x384xf32>
      %244 = tpu.matmul %242, %243, %cst_24 {dimension_numbers = #tpu.dot_dimension_numbers<[1], [0], [0], [1], [0, 0, 1, 1], [], []>} : vector<8x128xf32>, vector<128x384xf32>, vector<8x384xf32> -> vector<8x384xf32>
      %c0_25 = arith.constant 0 : index
      %c0_26 = arith.constant 0 : index
      %245 = vector.load %arg9[%c0_25, %c0_26] : memref<1x384xf32, #tpu.memory_space<vmem>>, vector<1x384xf32>
      %246 = vector.broadcast %245 : vector<1x384xf32> to vector<8x384xf32>
      %247 = arith.addf %244, %246 : vector<8x384xf32>
      %c0_27 = arith.constant 0 : index
      %c0_28 = arith.constant 0 : index
      %248 = vector.load %arg14[%c0_27, %c0_28] : memref<8x384xf32, #tpu.memory_space<vmem>>, vector<8x384xf32>
      tpu.vector_store %arg14[%c0_27, %c0_28], %247 {strides = array<i32>} : memref<8x384xf32, #tpu.memory_space<vmem>>, vector<8x384xf32>,
      %c0_29 = arith.constant 0 : index
      %c0_30 = arith.constant 0 : index
      %249 = vector.load %arg8[%c0_29, %c0_30] : memref<128x384xf32, #tpu.memory_space<vmem>>, vector<128x384xf32>
      %cst_31 = arith.constant 0.000000e+00 : f32
      %250 = vector.broadcast %cst_31 : f32 to vector<1x128xf32>
      %cst_32 = arith.constant 0.000000e+00 : f32
      %c0_i32_33 = arith.constant 0 : i32
      %251 = arith.index_cast %c0_i32_33 : i32 to index
      %c0_34 = arith.constant 0 : index
      %252 = vector.load %arg14[%251, %c0_34] : memref<8x384xf32, #tpu.memory_space<vmem>>, vector<1x384xf32>
      %cst_35 = arith.constant dense<0.000000e+00> : vector<1x384xf32>
      %253 = tpu.matmul %250, %249, %cst_35 {dimension_numbers = #tpu.dot_dimension_numbers<[1], [0], [0], [1], [0, 0, 1, 1], [], []>} : vector<1x128xf32>, vector<128x384xf32>, vector<1x384xf32> -> vector<1x384xf32>
      %254 = arith.addf %252, %253 : vector<1x384xf32>
      %255 = vector.extract_strided_slice %254 {offsets = [0, 0], sizes = [1, 128], strides = [1, 1]} : vector<1x384xf32> to vector<1x128xf32>
      %256 = arith.negf %255 : vector<1x128xf32>
      %257 = math.exp %256 : vector<1x128xf32>
      %cst_36 = arith.constant 1.000000e+00 : f32
      %258 = vector.broadcast %cst_36 : f32 to vector<1x128xf32>
      %259 = arith.addf %258, %257 : vector<1x128xf32>
      %260 = arith.divf %258, %259 : vector<1x128xf32>
      %261 = vector.extract_strided_slice %254 {offsets = [0, 128], sizes = [1, 128], strides = [1, 1]} : vector<1x384xf32> to vector<1x128xf32>
      %262 = arith.negf %261 : vector<1x128xf32>
      %263 = math.exp %262 : vector<1x128xf32>
      %cst_37 = arith.constant 1.000000e+00 : f32
      %264 = vector.broadcast %cst_37 : f32 to vector<1x128xf32>
      %265 = arith.addf %264, %263 : vector<1x128xf32>
      %266 = arith.divf %264, %265 : vector<1x128xf32>
      %267 = vector.extract_strided_slice %254 {offsets = [0, 256], sizes = [1, 128], strides = [1, 1]} : vector<1x384xf32> to vector<1x128xf32>
      %268 = math.tanh %267 : vector<1x128xf32>
      %269 = arith.mulf %266, %250 : vector<1x128xf32>
      %270 = arith.mulf %260, %268 : vector<1x128xf32>
      %271 = arith.addf %269, %270 : vector<1x128xf32>
      %272 = math.tanh %271 : vector<1x128xf32>
      %273 = arith.index_cast %c0_i32_33 : i32 to index
      %274 = memref.load %arg1[%273] : memref<8xi32, #tpu.memory_space<smem>>
      %c0_i32_38 = arith.constant 0 : i32
      %275 = arith.cmpi sgt, %274, %c0_i32_38 : i32
      %276 = arith.extui %275 : i1 to i32
      %277 = arith.sitofp %276 : i32 to f32
      %278 = arith.select %275, %272, %250 : vector<1x128xf32>
      %279 = vector.broadcast %277 : f32 to vector<1x128xf32>
      %280 = arith.mulf %279, %272 : vector<1x128xf32>
      %281 = arith.addf %250, %280 : vector<1x128xf32>
      %282 = arith.addf %cst_32, %277 : f32
      %c1_i32 = arith.constant 1 : i32
      %283 = arith.index_cast %c1_i32 : i32 to index
      %c0_39 = arith.constant 0 : index
      %284 = vector.load %arg14[%283, %c0_39] : memref<8x384xf32, #tpu.memory_space<vmem>>, vector<1x384xf32>
      %cst_40 = arith.constant dense<0.000000e+00> : vector<1x384xf32>
      %285 = tpu.matmul %278, %249, %cst_40 {dimension_numbers = #tpu.dot_dimension_numbers<[1], [0], [0], [1], [0, 0, 1, 1], [], []>} : vector<1x128xf32>, vector<128x384xf32>, vector<1x384xf32> -> vector<1x384xf32>
      %286 = arith.addf %284, %285 : vector<1x384xf32>
      %287 = vector.extract_strided_slice %286 {offsets = [0, 0], sizes = [1, 128], strides = [1, 1]} : vector<1x384xf32> to vector<1x128xf32>
      %288 = arith.negf %287 : vector<1x128xf32>
      %289 = math.exp %288 : vector<1x128xf32>
      %cst_41 = arith.constant 1.000000e+00 : f32
      %290 = vector.broadcast %cst_41 : f32 to vector<1x128xf32>
      %291 = arith.addf %290, %289 : vector<1x128xf32>
      %292 = arith.divf %290, %291 : vector<1x128xf32>
      %293 = vector.extract_strided_slice %286 {offsets = [0, 128], sizes = [1, 128], strides = [1, 1]} : vector<1x384xf32> to vector<1x128xf32>
      %294 = arith.negf %293 : vector<1x128xf32>
      %295 = math.exp %294 : vector<1x128xf32>
      %cst_42 = arith.constant 1.000000e+00 : f32
      %296 = vector.broadcast %cst_42 : f32 to vector<1x128xf32>
      %297 = arith.addf %296, %295 : vector<1x128xf32>
      %298 = arith.divf %296, %297 : vector<1x128xf32>
      %299 = vector.extract_strided_slice %286 {offsets = [0, 256], sizes = [1, 128], strides = [1, 1]} : vector<1x384xf32> to vector<1x128xf32>
      %300 = math.tanh %299 : vector<1x128xf32>
      %301 = arith.mulf %298, %278 : vector<1x128xf32>
      %302 = arith.mulf %292, %300 : vector<1x128xf32>
      %303 = arith.addf %301, %302 : vector<1x128xf32>
      %304 = math.tanh %303 : vector<1x128xf32>
      %305 = arith.index_cast %c1_i32 : i32 to index
      %306 = memref.load %arg1[%305] : memref<8xi32, #tpu.memory_space<smem>>
      %c0_i32_43 = arith.constant 0 : i32
      %307 = arith.cmpi sgt, %306, %c0_i32_43 : i32
      %308 = arith.extui %307 : i1 to i32
      %309 = arith.sitofp %308 : i32 to f32
      %310 = arith.select %307, %304, %278 : vector<1x128xf32>
      %311 = vector.broadcast %309 : f32 to vector<1x128xf32>
      %312 = arith.mulf %311, %304 : vector<1x128xf32>
      %313 = arith.addf %281, %312 : vector<1x128xf32>
      %314 = arith.addf %282, %309 : f32
      %c2_i32 = arith.constant 2 : i32
      %315 = arith.index_cast %c2_i32 : i32 to index
      %c0_44 = arith.constant 0 : index
      %316 = vector.load %arg14[%315, %c0_44] : memref<8x384xf32, #tpu.memory_space<vmem>>, vector<1x384xf32>
      %cst_45 = arith.constant dense<0.000000e+00> : vector<1x384xf32>
      %317 = tpu.matmul %310, %249, %cst_45 {dimension_numbers = #tpu.dot_dimension_numbers<[1], [0], [0], [1], [0, 0, 1, 1], [], []>} : vector<1x128xf32>, vector<128x384xf32>, vector<1x384xf32> -> vector<1x384xf32>
      %318 = arith.addf %316, %317 : vector<1x384xf32>
      %319 = vector.extract_strided_slice %318 {offsets = [0, 0], sizes = [1, 128], strides = [1, 1]} : vector<1x384xf32> to vector<1x128xf32>
      %320 = arith.negf %319 : vector<1x128xf32>
      %321 = math.exp %320 : vector<1x128xf32>
      %cst_46 = arith.constant 1.000000e+00 : f32
      %322 = vector.broadcast %cst_46 : f32 to vector<1x128xf32>
      %323 = arith.addf %322, %321 : vector<1x128xf32>
      %324 = arith.divf %322, %323 : vector<1x128xf32>
      %325 = vector.extract_strided_slice %318 {offsets = [0, 128], sizes = [1, 128], strides = [1, 1]} : vector<1x384xf32> to vector<1x128xf32>
      %326 = arith.negf %325 : vector<1x128xf32>
      %327 = math.exp %326 : vector<1x128xf32>
      %cst_47 = arith.constant 1.000000e+00 : f32
      %328 = vector.broadcast %cst_47 : f32 to vector<1x128xf32>
      %329 = arith.addf %328, %327 : vector<1x128xf32>
      %330 = arith.divf %328, %329 : vector<1x128xf32>
      %331 = vector.extract_strided_slice %318 {offsets = [0, 256], sizes = [1, 128], strides = [1, 1]} : vector<1x384xf32> to vector<1x128xf32>
      %332 = math.tanh %331 : vector<1x128xf32>
      %333 = arith.mulf %330, %310 : vector<1x128xf32>
      %334 = arith.mulf %324, %332 : vector<1x128xf32>
      %335 = arith.addf %333, %334 : vector<1x128xf32>
      %336 = math.tanh %335 : vector<1x128xf32>
      %337 = arith.index_cast %c2_i32 : i32 to index
      %338 = memref.load %arg1[%337] : memref<8xi32, #tpu.memory_space<smem>>
      %c0_i32_48 = arith.constant 0 : i32
      %339 = arith.cmpi sgt, %338, %c0_i32_48 : i32
      %340 = arith.extui %339 : i1 to i32
      %341 = arith.sitofp %340 : i32 to f32
      %342 = arith.select %339, %336, %310 : vector<1x128xf32>
      %343 = vector.broadcast %341 : f32 to vector<1x128xf32>
      %344 = arith.mulf %343, %336 : vector<1x128xf32>
      %345 = arith.addf %313, %344 : vector<1x128xf32>
      %346 = arith.addf %314, %341 : f32
      %c3_i32 = arith.constant 3 : i32
      %347 = arith.index_cast %c3_i32 : i32 to index
      %c0_49 = arith.constant 0 : index
      %348 = vector.load %arg14[%347, %c0_49] : memref<8x384xf32, #tpu.memory_space<vmem>>, vector<1x384xf32>
      %cst_50 = arith.constant dense<0.000000e+00> : vector<1x384xf32>
      %349 = tpu.matmul %342, %249, %cst_50 {dimension_numbers = #tpu.dot_dimension_numbers<[1], [0], [0], [1], [0, 0, 1, 1], [], []>} : vector<1x128xf32>, vector<128x384xf32>, vector<1x384xf32> -> vector<1x384xf32>
      %350 = arith.addf %348, %349 : vector<1x384xf32>
      %351 = vector.extract_strided_slice %350 {offsets = [0, 0], sizes = [1, 128], strides = [1, 1]} : vector<1x384xf32> to vector<1x128xf32>
      %352 = arith.negf %351 : vector<1x128xf32>
      %353 = math.exp %352 : vector<1x128xf32>
      %cst_51 = arith.constant 1.000000e+00 : f32
      %354 = vector.broadcast %cst_51 : f32 to vector<1x128xf32>
      %355 = arith.addf %354, %353 : vector<1x128xf32>
      %356 = arith.divf %354, %355 : vector<1x128xf32>
      %357 = vector.extract_strided_slice %350 {offsets = [0, 128], sizes = [1, 128], strides = [1, 1]} : vector<1x384xf32> to vector<1x128xf32>
      %358 = arith.negf %357 : vector<1x128xf32>
      %359 = math.exp %358 : vector<1x128xf32>
      %cst_52 = arith.constant 1.000000e+00 : f32
      %360 = vector.broadcast %cst_52 : f32 to vector<1x128xf32>
      %361 = arith.addf %360, %359 : vector<1x128xf32>
      %362 = arith.divf %360, %361 : vector<1x128xf32>
      %363 = vector.extract_strided_slice %350 {offsets = [0, 256], sizes = [1, 128], strides = [1, 1]} : vector<1x384xf32> to vector<1x128xf32>
      %364 = math.tanh %363 : vector<1x128xf32>
      %365 = arith.mulf %362, %342 : vector<1x128xf32>
      %366 = arith.mulf %356, %364 : vector<1x128xf32>
      %367 = arith.addf %365, %366 : vector<1x128xf32>
      %368 = math.tanh %367 : vector<1x128xf32>
      %369 = arith.index_cast %c3_i32 : i32 to index
      %370 = memref.load %arg1[%369] : memref<8xi32, #tpu.memory_space<smem>>
      %c0_i32_53 = arith.constant 0 : i32
      %371 = arith.cmpi sgt, %370, %c0_i32_53 : i32
      %372 = arith.extui %371 : i1 to i32
      %373 = arith.sitofp %372 : i32 to f32
      %374 = arith.select %371, %368, %342 : vector<1x128xf32>
      %375 = vector.broadcast %373 : f32 to vector<1x128xf32>
      %376 = arith.mulf %375, %368 : vector<1x128xf32>
      %377 = arith.addf %345, %376 : vector<1x128xf32>
      %378 = arith.addf %346, %373 : f32
      %c4_i32 = arith.constant 4 : i32
      %379 = arith.index_cast %c4_i32 : i32 to index
      %c0_54 = arith.constant 0 : index
      %380 = vector.load %arg14[%379, %c0_54] : memref<8x384xf32, #tpu.memory_space<vmem>>, vector<1x384xf32>
      %cst_55 = arith.constant dense<0.000000e+00> : vector<1x384xf32>
      %381 = tpu.matmul %374, %249, %cst_55 {dimension_numbers = #tpu.dot_dimension_numbers<[1], [0], [0], [1], [0, 0, 1, 1], [], []>} : vector<1x128xf32>, vector<128x384xf32>, vector<1x384xf32> -> vector<1x384xf32>
      %382 = arith.addf %380, %381 : vector<1x384xf32>
      %383 = vector.extract_strided_slice %382 {offsets = [0, 0], sizes = [1, 128], strides = [1, 1]} : vector<1x384xf32> to vector<1x128xf32>
      %384 = arith.negf %383 : vector<1x128xf32>
      %385 = math.exp %384 : vector<1x128xf32>
      %cst_56 = arith.constant 1.000000e+00 : f32
      %386 = vector.broadcast %cst_56 : f32 to vector<1x128xf32>
      %387 = arith.addf %386, %385 : vector<1x128xf32>
      %388 = arith.divf %386, %387 : vector<1x128xf32>
      %389 = vector.extract_strided_slice %382 {offsets = [0, 128], sizes = [1, 128], strides = [1, 1]} : vector<1x384xf32> to vector<1x128xf32>
      %390 = arith.negf %389 : vector<1x128xf32>
      %391 = math.exp %390 : vector<1x128xf32>
      %cst_57 = arith.constant 1.000000e+00 : f32
      %392 = vector.broadcast %cst_57 : f32 to vector<1x128xf32>
      %393 = arith.addf %392, %391 : vector<1x128xf32>
      %394 = arith.divf %392, %393 : vector<1x128xf32>
      %395 = vector.extract_strided_slice %382 {offsets = [0, 256], sizes = [1, 128], strides = [1, 1]} : vector<1x384xf32> to vector<1x128xf32>
      %396 = math.tanh %395 : vector<1x128xf32>
      %397 = arith.mulf %394, %374 : vector<1x128xf32>
      %398 = arith.mulf %388, %396 : vector<1x128xf32>
      %399 = arith.addf %397, %398 : vector<1x128xf32>
      %400 = math.tanh %399 : vector<1x128xf32>
      %401 = arith.index_cast %c4_i32 : i32 to index
      %402 = memref.load %arg1[%401] : memref<8xi32, #tpu.memory_space<smem>>
      %c0_i32_58 = arith.constant 0 : i32
      %403 = arith.cmpi sgt, %402, %c0_i32_58 : i32
      %404 = arith.extui %403 : i1 to i32
      %405 = arith.sitofp %404 : i32 to f32
      %406 = arith.select %403, %400, %374 : vector<1x128xf32>
      %407 = vector.broadcast %405 : f32 to vector<1x128xf32>
      %408 = arith.mulf %407, %400 : vector<1x128xf32>
      %409 = arith.addf %377, %408 : vector<1x128xf32>
      %410 = arith.addf %378, %405 : f32
      %c5_i32 = arith.constant 5 : i32
      %411 = arith.index_cast %c5_i32 : i32 to index
      %c0_59 = arith.constant 0 : index
      %412 = vector.load %arg14[%411, %c0_59] : memref<8x384xf32, #tpu.memory_space<vmem>>, vector<1x384xf32>
      %cst_60 = arith.constant dense<0.000000e+00> : vector<1x384xf32>
      %413 = tpu.matmul %406, %249, %cst_60 {dimension_numbers = #tpu.dot_dimension_numbers<[1], [0], [0], [1], [0, 0, 1, 1], [], []>} : vector<1x128xf32>, vector<128x384xf32>, vector<1x384xf32> -> vector<1x384xf32>
      %414 = arith.addf %412, %413 : vector<1x384xf32>
      %415 = vector.extract_strided_slice %414 {offsets = [0, 0], sizes = [1, 128], strides = [1, 1]} : vector<1x384xf32> to vector<1x128xf32>
      %416 = arith.negf %415 : vector<1x128xf32>
      %417 = math.exp %416 : vector<1x128xf32>
      %cst_61 = arith.constant 1.000000e+00 : f32
      %418 = vector.broadcast %cst_61 : f32 to vector<1x128xf32>
      %419 = arith.addf %418, %417 : vector<1x128xf32>
      %420 = arith.divf %418, %419 : vector<1x128xf32>
      %421 = vector.extract_strided_slice %414 {offsets = [0, 128], sizes = [1, 128], strides = [1, 1]} : vector<1x384xf32> to vector<1x128xf32>
      %422 = arith.negf %421 : vector<1x128xf32>
      %423 = math.exp %422 : vector<1x128xf32>
      %cst_62 = arith.constant 1.000000e+00 : f32
      %424 = vector.broadcast %cst_62 : f32 to vector<1x128xf32>
      %425 = arith.addf %424, %423 : vector<1x128xf32>
      %426 = arith.divf %424, %425 : vector<1x128xf32>
      %427 = vector.extract_strided_slice %414 {offsets = [0, 256], sizes = [1, 128], strides = [1, 1]} : vector<1x384xf32> to vector<1x128xf32>
      %428 = math.tanh %427 : vector<1x128xf32>
      %429 = arith.mulf %426, %406 : vector<1x128xf32>
      %430 = arith.mulf %420, %428 : vector<1x128xf32>
      %431 = arith.addf %429, %430 : vector<1x128xf32>
      %432 = math.tanh %431 : vector<1x128xf32>
      %433 = arith.index_cast %c5_i32 : i32 to index
      %434 = memref.load %arg1[%433] : memref<8xi32, #tpu.memory_space<smem>>
      %c0_i32_63 = arith.constant 0 : i32
      %435 = arith.cmpi sgt, %434, %c0_i32_63 : i32
      %436 = arith.extui %435 : i1 to i32
      %437 = arith.sitofp %436 : i32 to f32
      %438 = arith.select %435, %432, %406 : vector<1x128xf32>
      %439 = vector.broadcast %437 : f32 to vector<1x128xf32>
      %440 = arith.mulf %439, %432 : vector<1x128xf32>
      %441 = arith.addf %409, %440 : vector<1x128xf32>
      %442 = arith.addf %410, %437 : f32
      %c6_i32 = arith.constant 6 : i32
      %443 = arith.index_cast %c6_i32 : i32 to index
      %c0_64 = arith.constant 0 : index
      %444 = vector.load %arg14[%443, %c0_64] : memref<8x384xf32, #tpu.memory_space<vmem>>, vector<1x384xf32>
      %cst_65 = arith.constant dense<0.000000e+00> : vector<1x384xf32>
      %445 = tpu.matmul %438, %249, %cst_65 {dimension_numbers = #tpu.dot_dimension_numbers<[1], [0], [0], [1], [0, 0, 1, 1], [], []>} : vector<1x128xf32>, vector<128x384xf32>, vector<1x384xf32> -> vector<1x384xf32>
      %446 = arith.addf %444, %445 : vector<1x384xf32>
      %447 = vector.extract_strided_slice %446 {offsets = [0, 0], sizes = [1, 128], strides = [1, 1]} : vector<1x384xf32> to vector<1x128xf32>
      %448 = arith.negf %447 : vector<1x128xf32>
      %449 = math.exp %448 : vector<1x128xf32>
      %cst_66 = arith.constant 1.000000e+00 : f32
      %450 = vector.broadcast %cst_66 : f32 to vector<1x128xf32>
      %451 = arith.addf %450, %449 : vector<1x128xf32>
      %452 = arith.divf %450, %451 : vector<1x128xf32>
      %453 = vector.extract_strided_slice %446 {offsets = [0, 128], sizes = [1, 128], strides = [1, 1]} : vector<1x384xf32> to vector<1x128xf32>
      %454 = arith.negf %453 : vector<1x128xf32>
      %455 = math.exp %454 : vector<1x128xf32>
      %cst_67 = arith.constant 1.000000e+00 : f32
      %456 = vector.broadcast %cst_67 : f32 to vector<1x128xf32>
      %457 = arith.addf %456, %455 : vector<1x128xf32>
      %458 = arith.divf %456, %457 : vector<1x128xf32>
      %459 = vector.extract_strided_slice %446 {offsets = [0, 256], sizes = [1, 128], strides = [1, 1]} : vector<1x384xf32> to vector<1x128xf32>
      %460 = math.tanh %459 : vector<1x128xf32>
      %461 = arith.mulf %458, %438 : vector<1x128xf32>
      %462 = arith.mulf %452, %460 : vector<1x128xf32>
      %463 = arith.addf %461, %462 : vector<1x128xf32>
      %464 = math.tanh %463 : vector<1x128xf32>
      %465 = arith.index_cast %c6_i32 : i32 to index
      %466 = memref.load %arg1[%465] : memref<8xi32, #tpu.memory_space<smem>>
      %c0_i32_68 = arith.constant 0 : i32
      %467 = arith.cmpi sgt, %466, %c0_i32_68 : i32
      %468 = arith.extui %467 : i1 to i32
      %469 = arith.sitofp %468 : i32 to f32
      %470 = arith.select %467, %464, %438 : vector<1x128xf32>
      %471 = vector.broadcast %469 : f32 to vector<1x128xf32>
      %472 = arith.mulf %471, %464 : vector<1x128xf32>
      %473 = arith.addf %441, %472 : vector<1x128xf32>
      %474 = arith.addf %442, %469 : f32
      %c7_i32 = arith.constant 7 : i32
      %475 = arith.index_cast %c7_i32 : i32 to index
      %c0_69 = arith.constant 0 : index
      %476 = vector.load %arg14[%475, %c0_69] : memref<8x384xf32, #tpu.memory_space<vmem>>, vector<1x384xf32>
      %cst_70 = arith.constant dense<0.000000e+00> : vector<1x384xf32>
      %477 = tpu.matmul %470, %249, %cst_70 {dimension_numbers = #tpu.dot_dimension_numbers<[1], [0], [0], [1], [0, 0, 1, 1], [], []>} : vector<1x128xf32>, vector<128x384xf32>, vector<1x384xf32> -> vector<1x384xf32>
      %478 = arith.addf %476, %477 : vector<1x384xf32>
      %479 = vector.extract_strided_slice %478 {offsets = [0, 0], sizes = [1, 128], strides = [1, 1]} : vector<1x384xf32> to vector<1x128xf32>
      %480 = arith.negf %479 : vector<1x128xf32>
      %481 = math.exp %480 : vector<1x128xf32>
      %cst_71 = arith.constant 1.000000e+00 : f32
      %482 = vector.broadcast %cst_71 : f32 to vector<1x128xf32>
      %483 = arith.addf %482, %481 : vector<1x128xf32>
      %484 = arith.divf %482, %483 : vector<1x128xf32>
      %485 = vector.extract_strided_slice %478 {offsets = [0, 128], sizes = [1, 128], strides = [1, 1]} : vector<1x384xf32> to vector<1x128xf32>
      %486 = arith.negf %485 : vector<1x128xf32>
      %487 = math.exp %486 : vector<1x128xf32>
      %cst_72 = arith.constant 1.000000e+00 : f32
      %488 = vector.broadcast %cst_72 : f32 to vector<1x128xf32>
      %489 = arith.addf %488, %487 : vector<1x128xf32>
      %490 = arith.divf %488, %489 : vector<1x128xf32>
      %491 = vector.extract_strided_slice %478 {offsets = [0, 256], sizes = [1, 128], strides = [1, 1]} : vector<1x384xf32> to vector<1x128xf32>
      %492 = math.tanh %491 : vector<1x128xf32>
      %493 = arith.mulf %490, %470 : vector<1x128xf32>
      %494 = arith.mulf %484, %492 : vector<1x128xf32>
      %495 = arith.addf %493, %494 : vector<1x128xf32>
      %496 = math.tanh %495 : vector<1x128xf32>
      %497 = arith.index_cast %c7_i32 : i32 to index
      %498 = memref.load %arg1[%497] : memref<8xi32, #tpu.memory_space<smem>>
      %c0_i32_73 = arith.constant 0 : i32
      %499 = arith.cmpi sgt, %498, %c0_i32_73 : i32
      %500 = arith.extui %499 : i1 to i32
      %501 = arith.sitofp %500 : i32 to f32
      %502 = arith.select %499, %496, %470 : vector<1x128xf32>
      %503 = vector.broadcast %501 : f32 to vector<1x128xf32>
      %504 = arith.mulf %503, %496 : vector<1x128xf32>
      %505 = arith.addf %473, %504 : vector<1x128xf32>
      %506 = arith.addf %474, %501 : f32
      %c8_i32_74 = arith.constant 8 : i32
      %cst_75 = arith.constant 1.000000e+00 : f32
      %507 = arith.maximumf %506, %cst_75 : f32
      %508 = vector.broadcast %507 : f32 to vector<1x128xf32>
      %509 = arith.divf %505, %508 : vector<1x128xf32>
      %c0_76 = arith.constant 0 : index
      %c0_77 = arith.constant 0 : index
      %510 = vector.load %arg10[%c0_76, %c0_77] : memref<128x128xf32, #tpu.memory_space<vmem>>, vector<128x128xf32>
      %cst_78 = arith.constant dense<0.000000e+00> : vector<1x128xf32>
      %511 = tpu.matmul %509, %510, %cst_78 {dimension_numbers = #tpu.dot_dimension_numbers<[1], [0], [0], [1], [0, 0, 1, 1], [], []>} : vector<1x128xf32>, vector<128x128xf32>, vector<1x128xf32> -> vector<1x128xf32>
      %c0_79 = arith.constant 0 : index
      %c0_80 = arith.constant 0 : index
      %512 = vector.load %arg11[%c0_79, %c0_80] : memref<1x128xf32, #tpu.memory_space<vmem>>, vector<1x128xf32>
      %513 = arith.addf %511, %512 : vector<1x128xf32>
      %cst_81 = arith.constant dense<0xFF800000> : vector<1xf32>
      %514 = vector.multi_reduction <maximumf>, %513, %cst_81 [1] : vector<1x128xf32> to vector<1xf32>
      %515 = vector.shape_cast %514 : vector<1xf32> to vector<1x1xf32>
      %516 = vector.broadcast %515 : vector<1x1xf32> to vector<1x128xf32>
      %517 = arith.subf %513, %516 : vector<1x128xf32>
      %518 = math.exp %517 : vector<1x128xf32>
      %cst_82 = arith.constant dense<0.000000e+00> : vector<1xf32>
      %519 = vector.multi_reduction <add>, %518, %cst_82 [1] : vector<1x128xf32> to vector<1xf32>
      %520 = vector.shape_cast %519 : vector<1xf32> to vector<1x1xf32>
      %521 = vector.broadcast %520 : vector<1x1xf32> to vector<1x128xf32>
      %522 = arith.divf %518, %521 : vector<1x128xf32>
      %c0_83 = arith.constant 0 : index
      %c0_84 = arith.constant 0 : index
      %523 = vector.load %arg12[%c0_83, %c0_84] : memref<1x128xf32, #tpu.memory_space<vmem>>, vector<1x128xf32>
      tpu.vector_store %arg12[%c0_83, %c0_84], %522 {strides = array<i32>} : memref<1x128xf32, #tpu.memory_space<vmem>>, vector<1x128xf32>,
    } else {
    }
    return
  }
  func.func @transform_0(%arg0: i32, %arg1: memref<8xi32, #tpu.memory_space<smem>>) -> (i32, i32, i32) {
    %c0_i32 = arith.constant 0 : i32
    %c0_i32_0 = arith.constant 0 : i32
    %c0_i32_1 = arith.constant 0 : i32
    return %arg0, %c0_i32, %c0_i32_0 : i32, i32, i32
  }
  func.func @transform_1(%arg0: i32, %arg1: memref<8xi32, #tpu.memory_space<smem>>) -> (i32, i32, i32) {
    %c0_i32 = arith.constant 0 : i32
    %c0_i32_0 = arith.constant 0 : i32
    %c0_i32_1 = arith.constant 0 : i32
    return %arg0, %c0_i32, %c0_i32_0 : i32, i32, i32
  }
  func.func @transform_2(%arg0: i32, %arg1: memref<8xi32, #tpu.memory_space<smem>>) -> (i32, i32, i32) {
    %c0_i32 = arith.constant 0 : i32
    %c0_i32_0 = arith.constant 0 : i32
    %c0_i32_1 = arith.constant 0 : i32
    return %arg0, %c0_i32, %c0_i32_0 : i32, i32, i32
  }
  func.func @transform_3(%arg0: i32, %arg1: memref<8xi32, #tpu.memory_space<smem>>) -> (i32, i32) {
    %c0_i32 = arith.constant 0 : i32
    %c0_i32_0 = arith.constant 0 : i32
    %c0_i32_1 = arith.constant 0 : i32
    return %c0_i32, %c0_i32_0 : i32, i32
  }
  func.func @transform_4(%arg0: i32, %arg1: memref<8xi32, #tpu.memory_space<smem>>) -> (i32, i32) {
    %c0_i32 = arith.constant 0 : i32
    %c0_i32_0 = arith.constant 0 : i32
    %c0_i32_1 = arith.constant 0 : i32
    return %c0_i32, %c0_i32_0 : i32, i32
  }
  func.func @transform_5(%arg0: i32, %arg1: memref<8xi32, #tpu.memory_space<smem>>) -> (i32, i32) {
    %c0_i32 = arith.constant 0 : i32
    %c0_i32_0 = arith.constant 0 : i32
    %c0_i32_1 = arith.constant 0 : i32
    return %c0_i32, %c0_i32_0 : i32, i32
  }
  func.func @transform_6(%arg0: i32, %arg1: memref<8xi32, #tpu.memory_space<smem>>) -> (i32, i32) {
    %c0_i32 = arith.constant 0 : i32
    %c0_i32_0 = arith.constant 0 : i32
    %c0_i32_1 = arith.constant 0 : i32
    return %c0_i32, %c0_i32_0 : i32, i32
  }
  func.func @transform_7(%arg0: i32, %arg1: memref<8xi32, #tpu.memory_space<smem>>) -> (i32, i32) {
    %c0_i32 = arith.constant 0 : i32
    %c0_i32_0 = arith.constant 0 : i32
    %c0_i32_1 = arith.constant 0 : i32
    return %c0_i32, %c0_i32_0 : i32, i32
  }
  func.func @transform_8(%arg0: i32, %arg1: memref<8xi32, #tpu.memory_space<smem>>) -> (i32, i32) {
    %c0_i32 = arith.constant 0 : i32
    %c0_i32_0 = arith.constant 0 : i32
    %c0_i32_1 = arith.constant 0 : i32
    return %c0_i32, %c0_i32_0 : i32, i32
  }
  func.func @transform_9(%arg0: i32, %arg1: memref<8xi32, #tpu.memory_space<smem>>) -> (i32, i32) {
    %c0_i32 = arith.constant 0 : i32
    %c0_i32_0 = arith.constant 0 : i32
    %c0_i32_1 = arith.constant 0 : i32
    return %c0_i32, %c0_i32_0 : i32, i32
  }
  func.func @transform_10(%arg0: i32, %arg1: memref<8xi32, #tpu.memory_space<smem>>) -> (i32, i32) {
    %c0_i32 = arith.constant 0 : i32
    %c0_i32_0 = arith.constant 0 : i32
    %c0_i32_1 = arith.constant 0 : i32
    return %c0_i32, %c0_i32_0 : i32, i32
  }
}

</mosaic_0001>

<bundles_post_ra>
// kernel: docsen_forward.1
= control target key start
LH: loop header
LB: loop body
LE: loop exit
PB: predicated region body
PF: predicated region fallthrough
CT: control target
= control target key end

     0   :  { %s6807_s0 = inlined_call_operand.vmem [shape: s32[8], index: 0, kind: input, shape index: {}]   ;;  %s6808_s1 = inlined_call_operand.vmem [shape: f32[1,48,8], index: 1, kind: input, shape index: {}]   ;;  %s6809_s2 = inlined_call_operand.vmem [shape: f32[1,64,128], index: 2, kind: input, shape index: {}]   ;;  %s6810_s3 = inlined_call_operand.vmem [shape: f32[1,8,8], index: 3, kind: input, shape index: {}]   ;;  %s6811_s4 = inlined_call_operand.vmem [shape: f32[768,384], index: 4, kind: input, shape index: {}]   ;;  %s6812_s5 = inlined_call_operand.vmem [shape: f32[1,384], index: 5, kind: input, shape index: {}]   ;;  %s6813_s6 = inlined_call_operand.vmem [shape: f32[128,384], index: 6, kind: input, shape index: {}]   ;;  %s6814_s7 = inlined_call_operand.vmem [shape: f32[128,384], index: 7, kind: input, shape index: {}]   ;;  %s6815_s8 = inlined_call_operand.vmem [shape: f32[1,384], index: 8, kind: input, shape index: {}]   ;;  %s6816_s9 = inlined_call_operand.vmem [shape: f32[128,128], index: 9, kind: input, shape index: {}]   ;;  %s6817_s10 = inlined_call_operand.vmem [shape: f32[1,128], index: 10, kind: input, shape index: {}]   ;;  %s6818_s11 = inlined_call_operand.vmem [shape: f32[1,128], index: 11, kind: output, shape index: {}]  }
   0x1   :  { %s16_s19 = sshll.u32 %s6807_s0, 4  ;;  %s17_s19 = int_to_ptr.vmem [resolvable:$true] %s16_s19 }
   0x2   :  { %s4739_s20 = scalar_lea.vmem %s17_s19, 16  ;;  %p4744_p1 = scmp.lt.s32.totalorder %s17_s19, %s17_s19 }
   0x3   :  { %p4740_p0 = scmp.ne.s32.totalorder %s17_s19, %s4739_s20  ;;  %p4745_p2 = scmp.lt.s32.totalorder %s4739_s20, %s4739_s20 }
   0x5   :  { %p4746_p3 = por %p4745_p2, %p4744_p1 }
   0x7   :  { %p4747_p4 = pnand %p4746_p3, %p4740_p0 }
   0x9   :  { %4750 = shalt.err (!%p4747_p4)  }
   0xa   :  { %s4753_s21 = smov [#allocation5]  }
   0xb   :  { %19 = dma.vmem_to_smem %s17_s19, 16, %s4753_s21, [#allocation4] }
   0xc   :  { %4751 = dma.done.wait [#allocation4], 16 }
   0xd   :  { %4752 = vsyncadd [#allocation4], 4294967280 }
   0xe   :  { %21 = sfence }
   0xf   :  { %v4833_v0 = vld [vmem:[%s6808_s1 + $0x8] sm:$0xff]  ;;  %v4838_v1 = vld [vmem:[%s6808_s1] sm:$0xff]  ;;  %v4754_v2 = vmov 0   ;;  %v353_v6 = vld [vmem:[%s6811_s4 + $0x18] sm:$0xff]  ;;  %v4755_v11 = vmov 1   ;;  %v4756_v19 = vmov 2  }
  0x10   :  { %4589 = vset.pattern.permute.xlu1 %v4754_v2  ;;  %4587 = vset.pattern.permute.xlu0 %v4754_v2  ;;  %v351_v3 = vld [vmem:[%s6811_s4 + $0x8] sm:$0xff]  ;;  %v354_v4 = vld [vmem:[%s6811_s4 + $0x20] sm:$0xff]  ;;  %v357_v8 = vld [vmem:[%s6811_s4 + $0x38] sm:$0xff]  ;;  %v4757_v30 = vmov 3   ;;  %v4758_v31 = vmov 4   ;;  %v4759_v47 = vmov 5  }
  0x11   :  { %65 = vperm.xlu0 %4587, %v4833_v0   ;;  %58 = vperm.xlu1 %4589, %v4838_v1   ;;  %v350_v5 = vld [vmem:[%s6811_s4] sm:$0xff]  ;;  %v3751_v7 = vpack.c.bf16 %v354_v4, %v351_v3  ;;  %v360_v9 = vld [vmem:[%s6811_s4 + $0x50] sm:$0xff]  ;;  %v359_v14 = vld [vmem:[%s6811_s4 + $0x48] sm:$0xff]  ;;  %v4760_v61 = vmov 7   ;;  %vm4764_vm0 = vmmov 0   ;;  %s3107_s15 = sld [smem:[#allocation5 + $0x1]] }
  0x12   :  { %v3753_v10 = vpack.c.bf16 %v353_v6, %v350_v5  ;;  %v3755_v12 = vpack.c.bf16 %v360_v9, %v357_v8  ;;  %v356_v13 = vld [vmem:[%s6811_s4 + $0x30] sm:$0xff]  ;;  %v363_v15 = vld [vmem:[%s6811_s4 + $0x68] sm:$0xff]  ;;  %v366_v16 = vld [vmem:[%s6811_s4 + $0x80] sm:$0xff]  ;;  %s3113_s21 = sld [smem:[#allocation5 + $0x3]]  ;;  %s3119_s26 = sld [smem:[#allocation5 + $0x5]]  ;;  %vm3084_vm8 = vcmask 1040384  }
  0x13   :  { %3752 = vmatprep.subr.bf16.mxu0 %v3751_v7  ;;  %v3757_v17 = vpack.c.bf16 %v359_v14, %v356_v13  ;;  %v3759_v18 = vpack.c.bf16 %v366_v16, %v363_v15  ;;  %v362_v20 = vld [vmem:[%s6811_s4 + $0x60] sm:$0xff]  ;;  %v365_v21 = vld [vmem:[%s6811_s4 + $0x78] sm:$0xff]  ;;  %v372_v23 = vld [vmem:[%s6811_s4 + $0xb0] sm:$0xff]  ;;  %s3122_s28 = sld [smem:[#allocation5 + $0x6]] }
  0x14   :  { %3754 = vmatpush1.bf16.msra.mxu0 %v3753_v10  ;;  %v369_v22 = vld [vmem:[%s6811_s4 + $0x98] sm:$0xff]  ;;  %v3761_v24 = vpack.c.bf16 %v365_v21, %v362_v20  ;;  %v368_v25 = vld [vmem:[%s6811_s4 + $0x90] sm:$0xff]  ;;  %v371_v27 = vld [vmem:[%s6811_s4 + $0xa8] sm:$0xff] }
  0x15   :  { %4588 = vset.pattern.permute.xlu0 %v4755_v11  ;;  %4590 = vset.pattern.permute.xlu1 %v4755_v11  ;;  %v3763_v26 = vpack.c.bf16 %v372_v23, %v369_v22  ;;  %v375_v28 = vld [vmem:[%s6811_s4 + $0xc8] sm:$0xff]  ;;  %v400_v29 = vld [vmem:[%s6811_s4 + $0x190] sm:$0xff]  ;;  %v378_v32 = vld [vmem:[%s6811_s4 + $0xe0] sm:$0xff]  ;;  %v3765_v37 = vpack.c.bf16 %v371_v27, %v368_v25 }
  0x16   :  { %105 = vperm.xlu0 %4588, %v4833_v0   ;;  %99 = vperm.xlu1 %4590, %v4838_v1   ;;  %v403_v33 = vld [vmem:[%s6811_s4 + $0x1a8] sm:$0xff]  ;;  %v352_v34 = vld [vmem:[%s6811_s4 + $0x10] sm:$0xff]  ;;  %v3767_v39 = vpack.c.bf16 %v378_v32, %v375_v28  ;;  %v406_v40 = vld [vmem:[%s6811_s4 + $0x1c0] sm:$0xff] }
  0x17   :  { %3756 = vmatprep.subr.bf16.mxu0 %v3755_v12  ;;  %v3943_v35 = vpack.c.bf16 %v403_v33, %v400_v29  ;;  %v355_v36 = vld [vmem:[%s6811_s4 + $0x28] sm:$0xff]  ;;  %v409_v41 = vld [vmem:[%s6811_s4 + $0x1d8] sm:$0xff]  ;;  %v358_v42 = vld [vmem:[%s6811_s4 + $0x40] sm:$0xff]  ;;  %v4761_v29 = vmov 6   ;;  %p1762_p6 = scmp.gt.s32.totalorder %s3107_s15, 0 }
  0x18   :  { %3758 = vmatpush1.bf16.msra.mxu0 %v3757_v17  ;;  %v3945_v38 = vpack.c.bf16 %v355_v36, %v352_v34  ;;  %v374_v43 = vld [vmem:[%s6811_s4 + $0xc0] sm:$0xff]  ;;  %v377_v44 = vld [vmem:[%s6811_s4 + $0xd8] sm:$0xff]  ;;  %v3947_v45 = vpack.c.bf16 %v409_v41, %v406_v40  ;;  %v384_v49 = vld [vmem:[%s6811_s4 + $0x110] sm:$0xff]  ;;  %p2170_p8 = scmp.gt.s32.totalorder %s3113_s21, 0  ;;  %p2578_p10 = scmp.gt.s32.totalorder %s3119_s26, 0 }
  0x19   :  { %3760 = vmatprep.subr.bf16.mxu0 %v3759_v18  ;;  %3944 = vmatprep.subr.bf16.mxu1 %v3943_v35  ;;  %v361_v46 = vld [vmem:[%s6811_s4 + $0x58] sm:$0xff]  ;;  %v412_v51 = vld [vmem:[%s6811_s4 + $0x1f0] sm:$0xff]  ;;  %v3769_v52 = vpack.c.bf16 %v377_v44, %v374_v43  ;;  %v415_v53 = vld [vmem:[%s6811_s4 + $0x208] sm:$0xff]  ;;  %p2782_p11 = scmp.gt.s32.totalorder %s3122_s28, 0 }
  0x1a   :  { %4592 = vset.pattern.permute.xlu0 %v4756_v19  ;;  %4591 = vset.pattern.permute.xlu1 %v4756_v19  ;;  %v381_v48 = vld [vmem:[%s6811_s4 + $0xf8] sm:$0xff]  ;;  %v3949_v50 = vpack.c.bf16 %v361_v46, %v358_v42  ;;  %v364_v54 = vld [vmem:[%s6811_s4 + $0x70] sm:$0xff]  ;;  %v367_v55 = vld [vmem:[%s6811_s4 + $0x88] sm:$0xff]  ;;  %v3951_v57 = vpack.c.bf16 %v415_v53, %v412_v51  ;;  %s6542_s22 = scalar_select %p2170_p8, 1, 0 }
  0x1b   :  { %135 = vperm.xlu0 %4592, %v4838_v1   ;;  %141 = vperm.xlu1 %4591, %v4833_v0   ;;  %v3771_v56 = vpack.c.bf16 %v384_v49, %v381_v48  ;;  %v380_v58 = vld [vmem:[%s6811_s4 + $0xf0] sm:$0xff]  ;;  %v383_v59 = vld [vmem:[%s6811_s4 + $0x108] sm:$0xff]  ;;  %v3953_v60 = vpack.c.bf16 %v367_v55, %v364_v54  ;;  %v390_v63 = vld [vmem:[%s6811_s4 + $0x140] sm:$0xff]  ;;  %s6715_s29 = scalar_select %p2782_p11, 1, 0 }
  0x1c   :  { %3762 = vmatpush1.bf16.msra.mxu0 %v3761_v24  ;;  %3946 = vmatpush3.bf16.msra.mxu1 %v3945_v38  ;;  %v387_v62 = vld [vmem:[%s6811_s4 + $0x128] sm:$0xff]  ;;  %v418_v3 = vld [vmem:[%s6811_s4 + $0x220] sm:$0xff]  ;;  %v421_v4 = vld [vmem:[%s6811_s4 + $0x238] sm:$0xff]  ;;  %v3773_v6 = vpack.c.bf16 %v383_v59, %v380_v58  ;;  %s2172_s23 = scvt.s32.f32 %s6542_s22 }
  0x1d   :  { %3764 = vmatprep.subr.bf16.mxu0 %v3763_v26  ;;  %3948 = vmatprep.subr.bf16.mxu1 %v3947_v45  ;;  %v370_v5 = vld [vmem:[%s6811_s4 + $0xa0] sm:$0xff]  ;;  %v3955_v7 = vpack.c.bf16 %v421_v4, %v418_v3  ;;  %v373_v8 = vld [vmem:[%s6811_s4 + $0xb8] sm:$0xff]  ;;  %v3775_v10 = vpack.c.bf16 %v390_v63, %v387_v62  ;;  %v396_v16 = vld [vmem:[%s6811_s4 + $0x170] sm:$0xff]  ;;  %s2784_s30 = scvt.s32.f32 %s6715_s29 }
  0x1e   :  { %v4992_v9 = vld [vmem:[%s6808_s1 + $0x18] sm:$0xff]  ;;  %v386_v12 = vld [vmem:[%s6811_s4 + $0x120] sm:$0xff]  ;;  %v3957_v14 = vpack.c.bf16 %v373_v8, %v370_v5  ;;  %v424_v17 = vld [vmem:[%s6811_s4 + $0x250] sm:$0xff] }
  0x1f   :  { %4593 = vset.pattern.permute.xlu1 %v4757_v30  ;;  %4594 = vset.pattern.permute.xlu0 %v4758_v31  ;;  %v389_v13 = vld [vmem:[%s6811_s4 + $0x138] sm:$0xff]  ;;  %v427_v18 = vld [vmem:[%s6811_s4 + $0x268] sm:$0xff]  ;;  %v376_v20 = vld [vmem:[%s6811_s4 + $0xd0] sm:$0xff] }
  0x20   :  { %177 = vperm.xlu1 %4593, %v4833_v0   ;;  %213 = vperm.xlu0 %4594, %v4833_v0   ;;  %v393_v15 = vld [vmem:[%s6811_s4 + $0x158] sm:$0xff]  ;;  %v379_v21 = vld [vmem:[%s6811_s4 + $0xe8] sm:$0xff]  ;;  %v3959_v22 = vpack.c.bf16 %v427_v18, %v424_v17  ;;  %v3777_v23 = vpack.c.bf16 %v389_v13, %v386_v12  ;;  %v392_v25 = vld [vmem:[%s6811_s4 + $0x150] sm:$0xff] }
  0x21   :  { %3766 = vmatpush1.bf16.msra.mxu0 %v3765_v37  ;;  %3950 = vmatpush3.bf16.msra.mxu1 %v3949_v50  ;;  %v3779_v24 = vpack.c.bf16 %v396_v16, %v393_v15  ;;  %v395_v26 = vld [vmem:[%s6811_s4 + $0x168] sm:$0xff]  ;;  %v3961_v27 = vpack.c.bf16 %v379_v21, %v376_v20  ;;  %v430_v28 = vld [vmem:[%s6811_s4 + $0x280] sm:$0xff]  ;;  %v433_v34 = vld [vmem:[%s6811_s4 + $0x298] sm:$0xff] }
  0x22   :  { %3768 = vmatprep.subr.bf16.mxu0 %v3767_v39  ;;  %3952 = vmatprep.subr.bf16.mxu1 %v3951_v57  ;;  %v399_v32 = vld [vmem:[%s6811_s4 + $0x188] sm:$0xff]  ;;  %v402_v33 = vld [vmem:[%s6811_s4 + $0x1a0] sm:$0xff]  ;;  %v3963_v35 = vpack.c.bf16 %v433_v34, %v430_v28  ;;  %v385_v37 = vld [vmem:[%s6811_s4 + $0x118] sm:$0xff]  ;;  %v3781_v38 = vpack.c.bf16 %v395_v26, %v392_v25 }
  0x23   :  { %v382_v36 = vld [vmem:[%s6811_s4 + $0x100] sm:$0xff]  ;;  %v3783_v39 = vpack.c.bf16 %v402_v33, %v399_v32  ;;  %v401_v40 = vld [vmem:[%s6811_s4 + $0x198] sm:$0xff]  ;;  %v436_v41 = vld [vmem:[%s6811_s4 + $0x2b0] sm:$0xff] }
  0x24   :  { %171 = vperm.xlu1 %4593, %v4838_v1   ;;  %4597 = vset.pattern.permute.xlu0 %v4759_v47  ;;  %v405_v42 = vld [vmem:[%s6811_s4 + $0x1b8] sm:$0xff]  ;;  %v408_v43 = vld [vmem:[%s6811_s4 + $0x1d0] sm:$0xff]  ;;  %v3965_v44 = vpack.c.bf16 %v385_v37, %v382_v36  ;;  %v439_v45 = vld [vmem:[%s6811_s4 + $0x2c8] sm:$0xff] }
  0x25   :  { %243 = vperm.xlu0 %4597, %v4838_v1   ;;  %3770 = vmatpush1.bf16.msra.mxu0 %v3769_v52  ;;  %v3967_v46 = vpack.c.bf16 %v439_v45, %v436_v41  ;;  %v388_v48 = vld [vmem:[%s6811_s4 + $0x130] sm:$0xff]  ;;  %v391_v49 = vld [vmem:[%s6811_s4 + $0x148] sm:$0xff]  ;;  %v3787_v52 = vpack.c.bf16 %v408_v43, %v405_v42  ;;  %v442_v55 = vld [vmem:[%s6811_s4 + $0x2e0] sm:$0xff] }
  0x26   :  { %3772 = vmatprep.subr.bf16.mxu0 %v3771_v56  ;;  %3954 = vmatpush3.bf16.msra.mxu1 %v3953_v60  ;;  %v5078_v50 = vld [vmem:[%s6808_s1 + $0x10] sm:$0xff]  ;;  %v407_v54 = vld [vmem:[%s6811_s4 + $0x1c8] sm:$0xff]  ;;  %v414_v57 = vld [vmem:[%s6811_s4 + $0x200] sm:$0xff]  ;;  %v3969_v58 = vpack.c.bf16 %v391_v49, %v388_v48 }
  0x27   :  { %3956 = vmatprep.subr.bf16.mxu1 %v3955_v7  ;;  %v404_v53 = vld [vmem:[%s6811_s4 + $0x1b0] sm:$0xff]  ;;  %v411_v56 = vld [vmem:[%s6811_s4 + $0x1e8] sm:$0xff]  ;;  %v445_v59 = vld [vmem:[%s6811_s4 + $0x2f8] sm:$0xff] }
  0x28   :  { %4595 = vset.pattern.permute.xlu1 %v4758_v31  ;;  %v3971_v60 = vpack.c.bf16 %v445_v59, %v442_v55  ;;  %v394_v62 = vld [vmem:[%s6811_s4 + $0x160] sm:$0xff]  ;;  %v397_v63 = vld [vmem:[%s6811_s4 + $0x178] sm:$0xff]  ;;  %v3789_v3 = vpack.c.bf16 %v407_v54, %v404_v53  ;;  %v3791_v4 = vpack.c.bf16 %v414_v57, %v411_v56  ;;  %v420_v7 = vld [vmem:[%s6811_s4 + $0x230] sm:$0xff] }
  0x29   :  { %207 = vperm.xlu1 %4595, %v4838_v1   ;;  %4599 = vset.pattern.permute.xlu0 %v4760_v61  ;;  %v410_v5 = vld [vmem:[%s6811_s4 + $0x1e0] sm:$0xff]  ;;  %v3973_v8 = vpack.c.bf16 %v397_v63, %v394_v62  ;;  %v416_v13 = vld [vmem:[%s6811_s4 + $0x210] sm:$0xff]  ;;  %v423_v15 = vld [vmem:[%s6811_s4 + $0x248] sm:$0xff] }
  0x2a   :  { %321 = vperm.xlu0 %4599, %v4833_v0   ;;  %3774 = vmatpush1.bf16.msra.mxu0 %v3773_v6  ;;  %v413_v6 = vld [vmem:[%s6811_s4 + $0x1f8] sm:$0xff]  ;;  %v426_v16 = vld [vmem:[%s6811_s4 + $0x260] sm:$0xff]  ;;  %v431_v28 = vld [vmem:[%s6811_s4 + $0x288] sm:$0xff] }
  0x2b   :  { %3776 = vmatprep.subr.bf16.mxu0 %v3775_v10  ;;  %3958 = vmatpush3.bf16.msra.mxu1 %v3957_v14  ;;  %v3793_v10 = vpack.c.bf16 %v413_v6, %v410_v5  ;;  %v419_v14 = vld [vmem:[%s6811_s4 + $0x228] sm:$0xff]  ;;  %v3799_v18 = vpack.c.bf16 %v426_v16, %v423_v15  ;;  %v422_v20 = vld [vmem:[%s6811_s4 + $0x240] sm:$0xff]  ;;  %v425_v21 = vld [vmem:[%s6811_s4 + $0x258] sm:$0xff] }
  0x2c   :  { %3960 = vmatprep.subr.bf16.mxu1 %v3959_v22  ;;  %v3797_v17 = vpack.c.bf16 %v419_v14, %v416_v13  ;;  %v429_v22 = vld [vmem:[%s6811_s4 + $0x278] sm:$0xff]  ;;  %v3801_v25 = vpack.c.bf16 %v425_v21, %v422_v20  ;;  %v435_v32 = vld [vmem:[%s6811_s4 + $0x2a8] sm:$0xff]  ;;  %v438_v33 = vld [vmem:[%s6811_s4 + $0x2c0] sm:$0xff] }
  0x2d   :  { %4596 = vset.pattern.permute.xlu1 %v4759_v47  ;;  %v5175_v34 = vld [vmem:[%s6808_s1 + $0x20] sm:$0xff]  ;;  %v3807_v36 = vpack.c.bf16 %v438_v33, %v435_v32  ;;  %v440_v42 = vld [vmem:[%s6811_s4 + $0x2d0] sm:$0xff]  ;;  %v443_v43 = vld [vmem:[%s6811_s4 + $0x2e8] sm:$0xff] }
  0x2e   :  { %249 = vperm.xlu1 %4596, %v4833_v0   ;;  %4602 = vset.pattern.permute.xlu0 %v4755_v11  ;;  %v434_v37 = vld [vmem:[%s6811_s4 + $0x2a0] sm:$0xff]  ;;  %v499_v48 = vld [vmem:[%s6811_s4 + $0x4a8] sm:$0xff]  ;;  %v3813_v49 = vpack.c.bf16 %v443_v43, %v440_v42  ;;  %v5299_v20 = vld [vmem:[%s6809_s2 + $0x38] sm:$0xff] }
  0x2f   :  { %117 = vperm.xlu0 %4602, %v4992_v9   ;;  %3778 = vmatpush1.bf16.msra.mxu0 %v3777_v23  ;;  %v432_v23 = vld [vmem:[%s6811_s4 + $0x290] sm:$0xff]  ;;  %v450_v45 = vld [vmem:[%s6811_s4 + $0x320] sm:$0xff]  ;;  %v5258_v54 = vld [vmem:[%s6809_s2 + $0x8] sm:$0xff] }
  0x30   :  { %3780 = vmatprep.subr.bf16.mxu0 %v3779_v24  ;;  %3962 = vmatpush3.bf16.msra.mxu1 %v3961_v27  ;;  %v5154_v24 = vld [vmem:[%s6808_s1 + $0x28] sm:$0xff]  ;;  %v3803_v26 = vpack.c.bf16 %v432_v23, %v429_v22  ;;  %v428_v27 = vld [vmem:[%s6811_s4 + $0x270] sm:$0xff]  ;;  %s3110_s1 = sld [smem:[#allocation5 + $0x2]] }
  0x31   :  { %3964 = vmatprep.subr.bf16.mxu1 %v3963_v35  ;;  %v3805_v35 = vpack.c.bf16 %v431_v28, %v428_v27  ;;  %v5287_v13 = vld [vmem:[%s6809_s2 + $0x28] sm:$0xff] }
  0x32   :  { %4598 = vset.pattern.permute.xlu1 %v4761_v29  ;;  %v451_v42 = vld [vmem:[%s6811_s4 + $0x328] sm:$0xff] }
  0x33   :  { %285 = vperm.xlu1 %4598, %v4833_v0   ;;  %4604 = vset.pattern.permute.xlu0 %v4756_v19  ;;  %v398_v0 = vld [vmem:[%s6811_s4 + $0x180] sm:$0xff] }
  0x34   :  { %153 = vperm.xlu0 %4604, %v4992_v9   ;;  %3782 = vmatpush1.bf16.msra.mxu0 %v3781_v38  ;;  %v3785_v51 = vpack.c.bf16 %v401_v40, %v398_v0  ;;  %v437_v38 = vld [vmem:[%s6811_s4 + $0x2b8] sm:$0xff]  ;;  %v444_v0 = vld [vmem:[%s6811_s4 + $0x2f0] sm:$0xff] }
  0x35   :  { %3784 = vmatprep.subr.bf16.mxu0 %v3783_v39  ;;  %3966 = vmatpush3.bf16.msra.mxu1 %v3965_v44  ;;  %v441_v39 = vld [vmem:[%s6811_s4 + $0x2d8] sm:$0xff]  ;;  %v3809_v40 = vpack.c.bf16 %v437_v38, %v434_v37  ;;  %v447_v44 = vld [vmem:[%s6811_s4 + $0x308] sm:$0xff]  ;;  %v446_v38 = vld [vmem:[%s6811_s4 + $0x300] sm:$0xff] }
  0x36   :  { %3968 = vmatprep.subr.bf16.mxu1 %v3967_v46  ;;  %v3811_v41 = vpack.c.bf16 %v444_v0, %v441_v39  ;;  %v496_v46 = vld [vmem:[%s6811_s4 + $0x490] sm:$0xff]  ;;  %v449_v39 = vld [vmem:[%s6811_s4 + $0x318] sm:$0xff]  ;;  %p1966_p7 = scmp.gt.s32.totalorder %s3110_s1, 0  ;;  %s4766_s1 = smov 1.0  }
  0x37   :  { %279 = vperm.xlu1 %4598, %v4838_v1  }
  0x38   :  { %4607 = vset.pattern.permute.xlu0 %v4757_v30  ;;  %3786 = vmatpush1.bf16.msra.mxu0 %v3785_v51  ;;  %v3975_v51 = vpack.c.bf16 %v499_v48, %v496_v46  ;;  %v505_v46 = vld [vmem:[%s6811_s4 + $0x4d8] sm:$0xff]  ;;  %s6484_s18 = scalar_select %p1966_p7, 1, 0 }
  0x39   :  { %183 = vperm.xlu0 %4607, %v5078_v50   ;;  %3788 = vmatprep.subr.bf16.mxu0 %v3787_v52  ;;  %v3815_v52 = vpack.c.bf16 %v450_v45, %v447_v44  ;;  %v456_v44 = vld [vmem:[%s6811_s4 + $0x350] sm:$0xff]  ;;  %v502_v45 = vld [vmem:[%s6811_s4 + $0x4c0] sm:$0xff] }
  0x3a   :  { %3970 = vmatpush3.bf16.msra.mxu1 %v3969_v58  ;;  %v5271_v58 = vld [vmem:[%s6809_s2 + $0x18] sm:$0xff]  ;;  %s1968_s19 = scvt.s32.f32 %s6484_s18 }
  0x3b   :  { %4600 = vset.pattern.permute.xlu1 %v4760_v61  ;;  %3972 = vmatprep.subr.bf16.mxu1 %v3971_v60 }
  0x3c   :  { %315 = vperm.xlu1 %4600, %v4838_v1   ;;  %v417_v1 = vld [vmem:[%s6811_s4 + $0x218] sm:$0xff]  ;;  %3790 = vmatpush1.bf16.msra.mxu0 %v3789_v3 }
  0x3d   :  { %4609 = vset.pattern.permute.xlu0 %v4759_v47  ;;  %3792 = vmatprep.subr.bf16.mxu0 %v3791_v4  ;;  %v3795_v12 = vpack.c.bf16 %v420_v7, %v417_v1  ;;  %v5278_v4 = vld [vmem:[%s6809_s2 + $0x20] sm:$0xff] }
  0x3e   :  { %261 = vperm.xlu0 %4609, %v4992_v9   ;;  %3974 = vmatpush3.bf16.msra.mxu1 %v3973_v8 }
  0x3f   :  { %3976 = vmatprep.subr.bf16.mxu1 %v3975_v51  ;;  %v3817_v51 = vpack.c.bf16 %v449_v39, %v446_v38  ;;  %v473_v38 = vld [vmem:[%s6811_s4 + $0x3d8] sm:$0xff] }
  0x40   :  { %4601 = vset.pattern.permute.xlu1 %v4754_v2  ;;  %3794 = vmatpush1.bf16.msra.mxu0 %v3793_v10 }
  0x41   :  { %79 = vperm.xlu1 %4601, %v4992_v9   ;;  %3796 = vmatprep.subr.bf16.mxu0 %v3795_v12 }
  0x42   :  { %4612 = vset.pattern.permute.xlu0 %v4761_v29 }
  0x43   :  { %291 = vperm.xlu0 %4612, %v5078_v50  }
  0x44   :  { %3798 = vmatpush1.bf16.msra.mxu0 %v3797_v17  ;;  %v5294_v17 = vld [vmem:[%s6809_s2 + $0x30] sm:$0xff] }
  0x45   :  { %72 = vperm.xlu1 %4601, %v5078_v50   ;;  %3800 = vmatprep.subr.bf16.mxu0 %v3799_v18 }
  0x47   :  { %4614 = vset.pattern.permute.xlu0 %v4754_v2 }
  0x48   :  { %93 = vperm.xlu0 %4614, %v5154_v24   ;;  %3802 = vmatpush1.bf16.msra.mxu0 %v3801_v25 }
  0x49   :  { %4603 = vset.pattern.permute.xlu1 %v4755_v11  ;;  %3804 = vmatprep.subr.bf16.mxu0 %v3803_v26 }
  0x4a   :  { %111 = vperm.xlu1 %4603, %v5078_v50  }
  0x4c   :  { %4617 = vset.pattern.permute.xlu0 %v4755_v11  ;;  %3806 = vmatpush1.bf16.msra.mxu0 %v3805_v35 }
  0x4d   :  { %123 = vperm.xlu0 %4617, %v5175_v34   ;;  %3808 = vmatprep.subr.bf16.mxu0 %v3807_v36 }
  0x4e   :  { %4605 = vset.pattern.permute.xlu1 %v4756_v19 }
  0x4f   :  { %147 = vperm.xlu1 %4605, %v5078_v50  }
  0x50   :  { %3810 = vmatpush1.bf16.msra.mxu0 %v3809_v40  ;;  %v453_v40 = vld [vmem:[%s6811_s4 + $0x338] sm:$0xff] }
  0x51   :  { %4619 = vset.pattern.permute.xlu0 %v4757_v30  ;;  %3812 = vmatprep.subr.bf16.mxu0 %v3811_v41  ;;  %v448_v41 = vld [vmem:[%s6811_s4 + $0x310] sm:$0xff] }
  0x52   :  { %201 = vperm.xlu0 %4619, %v5154_v24  }
  0x53   :  { %4606 = vset.pattern.permute.xlu1 %v4757_v30 }
  0x54   :  { %189 = vperm.xlu1 %4606, %v4992_v9   ;;  %3814 = vmatpush1.bf16.msra.mxu0 %v3813_v49 }
  0x55   :  { %3816 = vmatprep.subr.bf16.mxu0 %v3815_v52  ;;  %v452_v52 = vld [vmem:[%s6811_s4 + $0x330] sm:$0xff] }
  0x56   :  { %4622 = vset.pattern.permute.xlu0 %v4758_v31 }
  0x57   :  { %231 = vperm.xlu0 %4622, %v5175_v34  }
  0x58   :  { %4608 = vset.pattern.permute.xlu1 %v4758_v31 }
  0x59   :  { %225 = vperm.xlu1 %4608, %v4992_v9  }
  0x5b   :  { %4624 = vset.pattern.permute.xlu0 %v4761_v29 }
  0x5c   :  { %309 = vperm.xlu0 %4624, %v5154_v24  }
  0x5d   :  { %219 = vperm.xlu1 %4608, %v5078_v50  }
  0x60   :  { %4627 = vset.pattern.permute.xlu0 %v4760_v61 }
  0x61   :  { %4610 = vset.pattern.permute.xlu1 %v4759_v47  ;;  %339 = vperm.xlu0 %4627, %v5175_v34  }
  0x62   :  { %255 = vperm.xlu1 %4610, %v5078_v50  }
  0x65   :  { %4630 = vset.pattern.permute.xlu0 %v4756_v19 }
  0x66   :  { %4611 = vset.pattern.permute.xlu1 %v4761_v29 }
  0x67   :  { %297 = vperm.xlu1 %4611, %v4992_v9  }
  0x6b   :  { %4613 = vset.pattern.permute.xlu1 %v4760_v61 }
  0x6c   :  { %333 = vperm.xlu1 %4613, %v4992_v9  }
  0x70   :  { %327 = vperm.xlu1 %4613, %v5078_v50  }
  0x74   :  { %4615 = vset.pattern.permute.xlu1 %v4755_v11 }
  0x75   :  { %129 = vperm.xlu1 %4615, %v5154_v24  }
  0x79   :  { %4616 = vset.pattern.permute.xlu1 %v4754_v2 }
  0x7a   :  { %86 = vperm.xlu1 %4616, %v5175_v34  }
  0x7e   :  { %4618 = vset.pattern.permute.xlu1 %v4756_v19 }
  0x7f   :  { %165 = vperm.xlu1 %4618, %v5154_v24  }
  0x83   :  { %159 = vperm.xlu1 %4618, %v5175_v34  }
  0x87   :  { %4620 = vset.pattern.permute.xlu1 %v4757_v30 }
  0x88   :  { %195 = vperm.xlu1 %4620, %v5175_v34  }
  0x8c   :  { %4621 = vset.pattern.permute.xlu1 %v4758_v31 }
  0x8d   :  { %237 = vperm.xlu1 %4621, %v5154_v24  }
  0x90   :  { %v59_v9 = vpop.permute.xlu1 %58  ;;  %v66_v19 = vpop.permute.xlu0 %65 }
  0x91   :  { %4623 = vset.pattern.permute.xlu1 %v4759_v47  ;;  %v5253_v47 = vld [vmem:[%s6809_s2] sm:$0xff] }
  0x92   :  { %273 = vperm.xlu1 %4623, %v5154_v24   ;;  %v61_v10 = vmul.f32 %v59_v9, %v5253_v47  ;;  %v455_v9 = vld [vmem:[%s6811_s4 + $0x348] sm:$0xff] }
  0x95   :  { %v100_v50 = vpop.permute.xlu1 %99  ;;  %v106_v30 = vpop.permute.xlu0 %105 }
  0x96   :  { %267 = vperm.xlu1 %4623, %v5175_v34   ;;  %v108_v55 = vmul.f32 %v106_v30, %v5258_v54  ;;  %v459_v30 = vld [vmem:[%s6811_s4 + $0x368] sm:$0xff] }
  0x9a   :  { %4625 = vset.pattern.permute.xlu1 %v4761_v29  ;;  %v142_v53 = vpop.permute.xlu1 %141  ;;  %v68_v29 = vmul.f32 %v66_v19, %v5253_v47  ;;  %v136_v57 = vpop.permute.xlu0 %135 }
  0x9b   :  { %303 = vperm.xlu1 %4625, %v5175_v34  }
  0x9c   :  { %v109_v59 = vadd.f32 %v108_v55, %v68_v29  ;;  %v454_v29 = vld [vmem:[%s6811_s4 + $0x340] sm:$0xff]  ;;  %v457_v55 = vld [vmem:[%s6811_s4 + $0x358] sm:$0xff] }
  0x9f   :  { %4626 = vset.pattern.permute.xlu1 %v4760_v61  ;;  %v178_v31 = vpop.permute.xlu1 %177  ;;  %v5265_v61 = vld [vmem:[%s6809_s2 + $0x10] sm:$0xff]  ;;  %v214_v62 = vpop.permute.xlu0 %213  ;;  %s6658_s2 = scalar_select %p2578_p10, 1, 0 }
  0xa0   :  { %345 = vperm.xlu1 %4626, %v5154_v24   ;;  %v144_v60 = vmul.f32 %v142_v53, %v5265_v61  ;;  %v180_v3 = vmul.f32 %v178_v31, %v5271_v58  ;;  %v216_v7 = vmul.f32 %v214_v62, %v5278_v4  ;;  %v138_v12 = vmul.f32 %v136_v57, %v5265_v61  ;;  %v508_v57 = vld [vmem:[%s6811_s4 + $0x4f0] sm:$0xff]  ;;  %v1078_v62 = vld [vmem:[%s6810_s3] sm:$0xff]  ;;  %s3116_s3 = sld [smem:[#allocation5 + $0x4]] }
  0xa1   :  { %v3819_v53 = vpack.c.bf16 %v456_v44, %v453_v40  ;;  %v3979_v31 = vpack.c.bf16 %v505_v46, %v502_v45  ;;  %1095 = vperm.xlu0 %4630, %v1078_v62   ;;  %v526_v44 = vld [vmem:[%s6811_s4 + $0x580] sm:$0xff]  ;;  %v529_v45 = vld [vmem:[%s6811_s4 + $0x598] sm:$0xff] }
  0xa2   :  { %v145_v5 = vadd.f32 %v144_v60, %v109_v59  ;;  %v511_v59 = vld [vmem:[%s6811_s4 + $0x508] sm:$0xff] }
  0xa3   :  { %v172_v56 = vpop.permute.xlu1 %171 }
  0xa4   :  { %4628 = vset.pattern.permute.xlu1 %v4754_v2  ;;  %v102_v2 = vmul.f32 %v100_v50, %v5258_v54  ;;  %v244_v6 = vpop.permute.xlu0 %243  ;;  %v181_v1 = vadd.f32 %v180_v3, %v145_v5  ;;  %v174_v16 = vmul.f32 %v172_v56, %v5271_v58  ;;  %v3977_v50 = vpack.c.bf16 %v451_v42, %v448_v41  ;;  %v462_v56 = vld [vmem:[%s6811_s4 + $0x380] sm:$0xff]  ;;  %v461_v5 = vld [vmem:[%s6811_s4 + $0x378] sm:$0xff]  ;;  %v472_v41 = vld [vmem:[%s6811_s4 + $0x3d0] sm:$0xff] }
  0xa5   :  { %v246_v34 = vmul.f32 %v244_v6, %v5287_v13  ;;  %v458_v3 = vld [vmem:[%s6811_s4 + $0x360] sm:$0xff]  ;;  %v3823_v6 = vpack.c.bf16 %v462_v56, %v459_v30  ;;  %1082 = vperm.xlu1 %4628, %v1078_v62   ;;  %v475_v42 = vld [vmem:[%s6811_s4 + $0x3e8] sm:$0xff]  ;;  %v481_v30 = vld [vmem:[%s6811_s4 + $0x418] sm:$0xff] }
  0xa6   :  { %v103_v15 = vadd.f32 %v102_v2, %v61_v10  ;;  %v217_v21 = vadd.f32 %v216_v7, %v181_v1  ;;  %v3981_v2 = vpack.c.bf16 %v457_v55, %v454_v29  ;;  %v465_v1 = vld [vmem:[%s6811_s4 + $0x398] sm:$0xff]  ;;  %v3983_v7 = vpack.c.bf16 %v511_v59, %v508_v57  ;;  %v463_v10 = vld [vmem:[%s6811_s4 + $0x388] sm:$0xff]  ;;  %v532_v29 = vld [vmem:[%s6811_s4 + $0x5b0] sm:$0xff]  ;;  %p2374_p9 = scmp.gt.s32.totalorder %s3116_s3, 0 }
  0xa7   :  { %v535_v55 = vld [vmem:[%s6811_s4 + $0x5c8] sm:$0xff]  ;;  %v482_v57 = vld [vmem:[%s6811_s4 + $0x420] sm:$0xff]  ;;  %v485_v59 = vld [vmem:[%s6811_s4 + $0x438] sm:$0xff] }
  0xa8   :  { %v208_v63 = vpop.permute.xlu1 %207  ;;  %v139_v22 = vadd.f32 %v138_v12, %v103_v15  ;;  %v468_v12 = vld [vmem:[%s6811_s4 + $0x3b0] sm:$0xff]  ;;  %v517_v15 = vld [vmem:[%s6811_s4 + $0x538] sm:$0xff]  ;;  %s6600_s24 = scalar_select %p2374_p9, 1, 0 }
  0xa9   :  { %v322_v18 = vpop.permute.xlu0 %321  ;;  %v210_v23 = vmul.f32 %v208_v63, %v5278_v4  ;;  %v3821_v63 = vpack.c.bf16 %v455_v9, %v452_v52  ;;  %4629 = vset.pattern.permute.xlu1 %v4755_v11  ;;  %v477_v11 = vld [vmem:[%s6811_s4 + $0x3f8] sm:$0xff] }
  0xaa   :  { %v324_v27 = vmul.f32 %v322_v18, %v5299_v20  ;;  %v175_v28 = vadd.f32 %v174_v16, %v139_v22  ;;  %v3825_v18 = vpack.c.bf16 %v461_v5, %v458_v3  ;;  %v467_v22 = vld [vmem:[%s6811_s4 + $0x3a8] sm:$0xff]  ;;  %1088 = vperm.xlu1 %4629, %v1078_v62   ;;  %v489_v3 = vld [vmem:[%s6811_s4 + $0x458] sm:$0xff]  ;;  %v3999_v5 = vpack.c.bf16 %v535_v55, %v532_v29  ;;  %s2376_s0 = scvt.s32.f32 %s6600_s24 }
  0xac   :  { %v211_v33 = vadd.f32 %v210_v23, %v175_v28  ;;  %v469_v28 = vld [vmem:[%s6811_s4 + $0x3b8] sm:$0xff] }
  0xad   :  { %v250_v8 = vpop.permute.xlu1 %249 }
  0xae   :  { %v252_v14 = vmul.f32 %v250_v8, %v5287_v13  ;;  %v247_v0 = vadd.f32 %v246_v34, %v211_v33  ;;  %v460_v8 = vld [vmem:[%s6811_s4 + $0x370] sm:$0xff]  ;;  %v523_v34 = vld [vmem:[%s6811_s4 + $0x568] sm:$0xff] }
  0xaf   :  { %v3985_v23 = vpack.c.bf16 %v463_v10, %v460_v8  ;;  %v520_v33 = vld [vmem:[%s6811_s4 + $0x550] sm:$0xff]  ;;  %v538_v10 = vld [vmem:[%s6811_s4 + $0x5e0] sm:$0xff] }
  0xb0   :  { %v253_v25 = vadd.f32 %v252_v14, %v217_v21  ;;  %v514_v14 = vld [vmem:[%s6811_s4 + $0x520] sm:$0xff]  ;;  %v464_v21 = vld [vmem:[%s6811_s4 + $0x390] sm:$0xff]  ;;  %v3991_v40 = vpack.c.bf16 %v523_v34, %v520_v33 }
  0xb1   :  { %v492_v8 = vld [vmem:[%s6811_s4 + $0x470] sm:$0xff] }
  0xb2   :  { %v286_v24 = vpop.permute.xlu1 %285 }
  0xb3   :  { %v288_v26 = vmul.f32 %v286_v24, %v5294_v17  ;;  %v3827_v24 = vpack.c.bf16 %v468_v12, %v465_v1  ;;  %v118_v1 = vpop.permute.xlu0 %117  ;;  %v541_v12 = vld [vmem:[%s6811_s4 + $0x5f8] sm:$0xff] }
  0xb5   :  { %v289_v32 = vadd.f32 %v288_v26, %v253_v25  ;;  %v471_v25 = vld [vmem:[%s6811_s4 + $0x3c8] sm:$0xff]  ;;  %v3987_v26 = vpack.c.bf16 %v517_v15, %v514_v14  ;;  %v3841_v14 = vpack.c.bf16 %v485_v59, %v482_v57  ;;  %v488_v15 = vld [vmem:[%s6811_s4 + $0x450] sm:$0xff] }
  0xb6   :  { %v280_v35 = vpop.permute.xlu1 %279 }
  0xb7   :  { %v325_v36 = vadd.f32 %v324_v27, %v289_v32  ;;  %v282_v37 = vmul.f32 %v280_v35, %v5294_v17  ;;  %v466_v27 = vld [vmem:[%s6811_s4 + $0x3a0] sm:$0xff]  ;;  %v154_v34 = vpop.permute.xlu0 %153 }
  0xb8   :  { %v474_v32 = vld [vmem:[%s6811_s4 + $0x3e0] sm:$0xff]  ;;  %v3989_v39 = vpack.c.bf16 %v469_v28, %v466_v27  ;;  %v493_v27 = vld [vmem:[%s6811_s4 + $0x478] sm:$0xff]  ;;  %v592_v28 = vld [vmem:[%s6811_s4 + $0x790] sm:$0xff] }
  0xb9   :  { %719 = vmatprep.mubr.f32.mxu0 %v325_v36  ;;  %932 = vmatprep.mubr.f32.mxu1 %v325_v36  ;;  %v283_v48 = vadd.f32 %v282_v37, %v247_v0  ;;  %v3829_v36 = vpack.c.bf16 %v467_v22, %v464_v21  ;;  %v470_v37 = vld [vmem:[%s6811_s4 + $0x3c0] sm:$0xff]  ;;  %v3831_v0 = vpack.c.bf16 %v474_v32, %v471_v25  ;;  %v495_v21 = vld [vmem:[%s6811_s4 + $0x488] sm:$0xff] }
  0xba   :  { %v3833_v46 = vpack.c.bf16 %v473_v38, %v470_v37  ;;  %v4003_v25 = vpack.c.bf16 %v541_v12, %v538_v10  ;;  %v595_v32 = vld [vmem:[%s6811_s4 + $0x7a8] sm:$0xff] }
  0xbb   :  { %v316_v43 = vpop.permute.xlu1 %315 }
  0xbc   :  { %v318_v49 = vmul.f32 %v316_v43, %v5299_v20  ;;  %v480_v43 = vld [vmem:[%s6811_s4 + $0x410] sm:$0xff] }
  0xbd   :  { %v3835_v9 = vpack.c.bf16 %v480_v43, %v477_v11  ;;  %v494_v11 = vld [vmem:[%s6811_s4 + $0x480] sm:$0xff] }
  0xbe   :  { %v319_v19 = vadd.f32 %v318_v49, %v283_v48  ;;  %v476_v48 = vld [vmem:[%s6811_s4 + $0x3f0] sm:$0xff]  ;;  %v479_v49 = vld [vmem:[%s6811_s4 + $0x408] sm:$0xff] }
  0xbf   :  { %v3837_v56 = vpack.c.bf16 %v479_v49, %v476_v48  ;;  %v156_v49 = vmul.f32 %v154_v34, %v5265_v61 }
  0xc0   :  { %720 = vmatmul.mubr.f32.vlgmr.msra.gmra.mrb[0].mxu0 %v319_v19  ;;  %933 = vmatmul.mubr.f32.vlgmr.msra.gmra.mrb[0].mxu1 %v319_v19  ;;  %v5355_v60 = vpop.permute.xlu1 %79  ;;  %v3995_v19 = vpack.c.bf16 %v529_v45, %v526_v44 }
  0xc1   :  { %3818 = vmatpush1.bf16.msra.mxu0 %v3817_v51  ;;  %3978 = vmatpush3.bf16.msra.mxu1 %v3977_v50  ;;  %v3993_v51 = vpack.c.bf16 %v475_v42, %v472_v41  ;;  %v483_v50 = vld [vmem:[%s6811_s4 + $0x428] sm:$0xff]  ;;  %v4007_v41 = vpack.c.bf16 %v595_v32, %v592_v28  ;;  %v501_v42 = vld [vmem:[%s6811_s4 + $0x4b8] sm:$0xff] }
  0xc2   :  { %3820 = vmatprep.subr.bf16.mxu0 %v3819_v53  ;;  %3980 = vmatprep.subr.bf16.mxu1 %v3979_v31  ;;  %v478_v53 = vld [vmem:[%s6811_s4 + $0x400] sm:$0xff] }
  0xc3   :  { %v486_v31 = vld [vmem:[%s6811_s4 + $0x440] sm:$0xff]  ;;  %v3997_v62 = vpack.c.bf16 %v481_v30, %v478_v53 }
  0xc4   :  { %v5384_v16 = vpop.permute.xlu1 %72 }
  0xc5   :  { %3822 = vmatpush1.bf16.msra.mxu0 %v3821_v63  ;;  %3982 = vmatpush3.bf16.msra.mxu1 %v3981_v2  ;;  %v3839_v63 = vpack.c.bf16 %v486_v31, %v483_v50  ;;  %v484_v2 = vld [vmem:[%s6811_s4 + $0x430] sm:$0xff]  ;;  %v75_v43 = vmul.f32 %v5384_v16, %v5253_v47  ;;  %v503_v16 = vld [vmem:[%s6811_s4 + $0x4c8] sm:$0xff]  ;;  %v184_v50 = vpop.permute.xlu0 %183 }
  0xc6   :  { %3824 = vmatprep.subr.bf16.mxu0 %v3823_v6  ;;  %3984 = vmatprep.subr.bf16.mxu1 %v3983_v7  ;;  %v487_v6 = vld [vmem:[%s6811_s4 + $0x448] sm:$0xff] }
  0xc7   :  { %v4001_v22 = vpack.c.bf16 %v487_v6, %v484_v2  ;;  %v186_v6 = vmul.f32 %v184_v50, %v5271_v58  ;;  %v598_v50 = vld [vmem:[%s6811_s4 + $0x7c0] sm:$0xff] }
  0xc9   :  { %3826 = vmatpush1.bf16.msra.mxu0 %v3825_v18  ;;  %v5411_v35 = vpop.permute.xlu1 %111  ;;  %3986 = vmatpush3.bf16.msra.mxu1 %v3985_v23  ;;  %v491_v18 = vld [vmem:[%s6811_s4 + $0x468] sm:$0xff]  ;;  %v3843_v23 = vpack.c.bf16 %v492_v8, %v489_v3  ;;  %v262_v3 = vpop.permute.xlu0 %261 }
  0xca   :  { %3828 = vmatprep.subr.bf16.mxu0 %v3827_v24  ;;  %3988 = vmatprep.subr.bf16.mxu1 %v3987_v26  ;;  %v498_v24 = vld [vmem:[%s6811_s4 + $0x4a0] sm:$0xff]  ;;  %v114_v44 = vmul.f32 %v5411_v35, %v5258_v54  ;;  %v507_v35 = vld [vmem:[%s6811_s4 + $0x4e8] sm:$0xff]  ;;  %v264_v10 = vmul.f32 %v262_v3, %v5287_v13  ;;  %v553_v3 = vld [vmem:[%s6811_s4 + $0x658] sm:$0xff] }
  0xcb   :  { %v490_v26 = vld [vmem:[%s6811_s4 + $0x460] sm:$0xff]  ;;  %v3847_v37 = vpack.c.bf16 %v498_v24, %v495_v21  ;;  %v515_v21 = vld [vmem:[%s6811_s4 + $0x528] sm:$0xff] }
  0xcc   :  { %v4005_v38 = vpack.c.bf16 %v493_v27, %v490_v26  ;;  %v115_v53 = vadd.f32 %v114_v44, %v75_v43  ;;  %v524_v43 = vld [vmem:[%s6811_s4 + $0x570] sm:$0xff]  ;;  %v527_v44 = vld [vmem:[%s6811_s4 + $0x588] sm:$0xff] }
  0xcd   :  { %3830 = vmatpush1.bf16.msra.mxu0 %v3829_v36  ;;  %3990 = vmatpush3.bf16.msra.mxu1 %v3989_v39  ;;  %v3845_v36 = vpack.c.bf16 %v491_v18, %v488_v15  ;;  %v82_v39 = vmul.f32 %v5355_v60, %v5253_v47  ;;  %v504_v60 = vld [vmem:[%s6811_s4 + $0x4d0] sm:$0xff]  ;;  %v292_v27 = vpop.permute.xlu0 %291 }
  0xce   :  { %v5443_v52 = vpop.permute.xlu1 %147  ;;  %3832 = vmatprep.subr.bf16.mxu0 %v3831_v0  ;;  %3992 = vmatprep.subr.bf16.mxu1 %v3991_v40  ;;  %v120_v0 = vmul.f32 %v118_v1, %v5258_v54  ;;  %v497_v40 = vld [vmem:[%s6811_s4 + $0x498] sm:$0xff]  ;;  %v512_v18 = vld [vmem:[%s6811_s4 + $0x510] sm:$0xff] }
  0xcf   :  { %v150_v30 = vmul.f32 %v5443_v52, %v5265_v61  ;;  %v513_v52 = vld [vmem:[%s6811_s4 + $0x518] sm:$0xff]  ;;  %v3861_v28 = vpack.c.bf16 %v515_v21, %v512_v18  ;;  %v556_v18 = vld [vmem:[%s6811_s4 + $0x670] sm:$0xff]  ;;  %v559_v21 = vld [vmem:[%s6811_s4 + $0x688] sm:$0xff] }
  0xd0   :  { %v121_v48 = vadd.f32 %v120_v0, %v82_v39  ;;  %v525_v39 = vld [vmem:[%s6811_s4 + $0x578] sm:$0xff]  ;;  %v528_v0 = vld [vmem:[%s6811_s4 + $0x590] sm:$0xff] }
  0xd1   :  { %3834 = vmatpush1.bf16.msra.mxu0 %v3833_v46  ;;  %3994 = vmatpush3.bf16.msra.mxu1 %v3993_v51  ;;  %v3849_v46 = vpack.c.bf16 %v497_v40, %v494_v11  ;;  %v3851_v51 = vpack.c.bf16 %v504_v60, %v501_v42  ;;  %v151_v2 = vadd.f32 %v150_v30, %v115_v53 }
  0xd2   :  { %3836 = vmatprep.subr.bf16.mxu0 %v3835_v9  ;;  %3996 = vmatprep.subr.bf16.mxu1 %v3995_v19  ;;  %v500_v9 = vld [vmem:[%s6811_s4 + $0x4b0] sm:$0xff]  ;;  %v510_v19 = vld [vmem:[%s6811_s4 + $0x500] sm:$0xff]  ;;  %v294_v40 = vmul.f32 %v292_v27, %v5294_v17  ;;  %v3869_v30 = vpack.c.bf16 %v527_v44, %v524_v43 }
  0xd3   :  { %v190_v7 = vpop.permute.xlu1 %189  ;;  %v3853_v55 = vpack.c.bf16 %v503_v16, %v500_v9  ;;  %v3855_v59 = vpack.c.bf16 %v510_v19, %v507_v35  ;;  %v187_v24 = vadd.f32 %v186_v6, %v151_v2  ;;  %v534_v16 = vld [vmem:[%s6811_s4 + $0x5c0] sm:$0xff]  ;;  %v601_v35 = vld [vmem:[%s6811_s4 + $0x7d8] sm:$0xff]  ;;  %v607_v2 = vld [vmem:[%s6811_s4 + $0x808] sm:$0xff] }
  0xd4   :  { %v192_v31 = vmul.f32 %v190_v7, %v5271_v58  ;;  %v542_v27 = vld [vmem:[%s6811_s4 + $0x600] sm:$0xff] }
  0xd5   :  { %3838 = vmatpush1.bf16.msra.mxu0 %v3837_v56  ;;  %3998 = vmatpush3.bf16.msra.mxu1 %v3997_v62  ;;  %v157_v56 = vadd.f32 %v156_v49, %v121_v48  ;;  %v506_v62 = vld [vmem:[%s6811_s4 + $0x4e0] sm:$0xff]  ;;  %v531_v48 = vld [vmem:[%s6811_s4 + $0x5a8] sm:$0xff]  ;;  %v544_v49 = vld [vmem:[%s6811_s4 + $0x610] sm:$0xff] }
  0xd6   :  { %3840 = vmatprep.subr.bf16.mxu0 %v3839_v63  ;;  %4000 = vmatprep.subr.bf16.mxu1 %v3999_v5  ;;  %v509_v63 = vld [vmem:[%s6811_s4 + $0x4f8] sm:$0xff]  ;;  %v516_v5 = vld [vmem:[%s6811_s4 + $0x530] sm:$0xff] }
  0xd7   :  { %v193_v1 = vadd.f32 %v192_v31, %v157_v56  ;;  %v3857_v7 = vpack.c.bf16 %v509_v63, %v506_v62  ;;  %v3859_v15 = vpack.c.bf16 %v516_v5, %v513_v52  ;;  %v530_v31 = vld [vmem:[%s6811_s4 + $0x5a0] sm:$0xff]  ;;  %v4011_v62 = vpack.c.bf16 %v601_v35, %v598_v50  ;;  %v540_v52 = vld [vmem:[%s6811_s4 + $0x5f0] sm:$0xff]  ;;  %v625_v50 = vld [vmem:[%s6811_s4 + $0x898] sm:$0xff] }
  0xd8   :  { %v226_v33 = vpop.permute.xlu1 %225  ;;  %v550_v63 = vld [vmem:[%s6811_s4 + $0x640] sm:$0xff]  ;;  %v604_v5 = vld [vmem:[%s6811_s4 + $0x7f0] sm:$0xff] }
  0xd9   :  { %3842 = vmatpush1.bf16.msra.mxu0 %v3841_v14  ;;  %4002 = vmatpush3.bf16.msra.mxu1 %v4001_v22  ;;  %v228_v57 = vmul.f32 %v226_v33, %v5278_v4  ;;  %v519_v22 = vld [vmem:[%s6811_s4 + $0x548] sm:$0xff] }
  0xda   :  { %3844 = vmatprep.subr.bf16.mxu0 %v3843_v23  ;;  %4004 = vmatprep.subr.bf16.mxu1 %v4003_v25  ;;  %v522_v23 = vld [vmem:[%s6811_s4 + $0x560] sm:$0xff] }
  0xdb   :  { %v229_v8 = vadd.f32 %v228_v57, %v193_v1  ;;  %v3863_v34 = vpack.c.bf16 %v522_v23, %v519_v22  ;;  %v3871_v57 = vpack.c.bf16 %v534_v16, %v531_v48  ;;  %v546_v22 = vld [vmem:[%s6811_s4 + $0x620] sm:$0xff] }
  0xdc   :  { %v220_v45 = vpop.permute.xlu1 %219  ;;  %v610_v23 = vld [vmem:[%s6811_s4 + $0x820] sm:$0xff] }
  0xdd   :  { %3846 = vmatpush1.bf16.msra.mxu0 %v3845_v36  ;;  %4006 = vmatpush3.bf16.msra.mxu1 %v4005_v38  ;;  %v222_v12 = vmul.f32 %v220_v45, %v5278_v4  ;;  %v265_v32 = vadd.f32 %v264_v10, %v229_v8  ;;  %v518_v36 = vld [vmem:[%s6811_s4 + $0x540] sm:$0xff]  ;;  %v539_v8 = vld [vmem:[%s6811_s4 + $0x5e8] sm:$0xff]  ;;  %v4013_v10 = vpack.c.bf16 %v553_v3, %v550_v63  ;;  %v628_v63 = vld [vmem:[%s6811_s4 + $0x8b0] sm:$0xff] }
  0xde   :  { %3848 = vmatprep.subr.bf16.mxu0 %v3847_v37  ;;  %4008 = vmatprep.subr.bf16.mxu1 %v4007_v41  ;;  %v521_v37 = vld [vmem:[%s6811_s4 + $0x558] sm:$0xff]  ;;  %v622_v16 = vld [vmem:[%s6811_s4 + $0x880] sm:$0xff]  ;;  %v631_v3 = vld [vmem:[%s6811_s4 + $0x8c8] sm:$0xff] }
  0xdf   :  { %v223_v33 = vadd.f32 %v222_v12, %v187_v24  ;;  %v3865_v60 = vpack.c.bf16 %v521_v37, %v518_v36  ;;  %v613_v24 = vld [vmem:[%s6811_s4 + $0x838] sm:$0xff]  ;;  %v562_v37 = vld [vmem:[%s6811_s4 + $0x6a0] sm:$0xff] }
  0xe0   :  { %v4019_v36 = vpack.c.bf16 %v613_v24, %v610_v23  ;;  %v570_v23 = vld [vmem:[%s6811_s4 + $0x6e0] sm:$0xff] }
  0xe1   :  { %3850 = vmatpush1.bf16.msra.mxu0 %v3849_v46  ;;  %v256_v29 = vpop.permute.xlu1 %255  ;;  %v3867_v46 = vpack.c.bf16 %v528_v0, %v525_v39  ;;  %v552_v39 = vld [vmem:[%s6811_s4 + $0x650] sm:$0xff]  ;;  %v634_v24 = vld [vmem:[%s6811_s4 + $0x8e0] sm:$0xff] }
  0xe2   :  { %3852 = vmatprep.subr.bf16.mxu0 %v3851_v51  ;;  %v258_v25 = vmul.f32 %v256_v29, %v5287_v13  ;;  %v547_v51 = vld [vmem:[%s6811_s4 + $0x628] sm:$0xff]  ;;  %v533_v29 = vld [vmem:[%s6811_s4 + $0x5b8] sm:$0xff]  ;;  %v616_v0 = vld [vmem:[%s6811_s4 + $0x850] sm:$0xff] }
  0xe3   :  { %v3873_v1 = vpack.c.bf16 %v533_v29, %v530_v31 }
  0xe4   :  { %v259_v11 = vadd.f32 %v258_v25, %v223_v33 }
  0xe5   :  { %3854 = vmatpush1.bf16.msra.mxu0 %v3853_v55  ;;  %v4009_v55 = vpack.c.bf16 %v547_v51, %v544_v49  ;;  %v568_v49 = vld [vmem:[%s6811_s4 + $0x6d0] sm:$0xff]  ;;  %v571_v51 = vld [vmem:[%s6811_s4 + $0x6e8] sm:$0xff] }
  0xe6   :  { %v298_v14 = vpop.permute.xlu1 %297  ;;  %3856 = vmatprep.subr.bf16.mxu0 %v3855_v59  ;;  %v295_v19 = vadd.f32 %v294_v40, %v259_v11  ;;  %v537_v59 = vld [vmem:[%s6811_s4 + $0x5d8] sm:$0xff]  ;;  %v619_v11 = vld [vmem:[%s6811_s4 + $0x868] sm:$0xff] }
  0xe7   :  { %v300_v26 = vmul.f32 %v298_v14, %v5294_v17  ;;  %v3875_v12 = vpack.c.bf16 %v540_v52, %v537_v59  ;;  %v543_v14 = vld [vmem:[%s6811_s4 + $0x608] sm:$0xff]  ;;  %v4023_v48 = vpack.c.bf16 %v619_v11, %v616_v0  ;;  %v577_v59 = vld [vmem:[%s6811_s4 + $0x718] sm:$0xff]  ;;  %v576_v11 = vld [vmem:[%s6811_s4 + $0x710] sm:$0xff] }
  0xe8   :  { %v3879_v33 = vpack.c.bf16 %v546_v22, %v543_v14  ;;  %v567_v14 = vld [vmem:[%s6811_s4 + $0x6c8] sm:$0xff]  ;;  %v573_v0 = vld [vmem:[%s6811_s4 + $0x6f8] sm:$0xff] }
  0xe9   :  { %3858 = vmatpush1.bf16.msra.mxu0 %v3857_v7  ;;  %v301_v41 = vadd.f32 %v300_v26, %v265_v32  ;;  %v536_v7 = vld [vmem:[%s6811_s4 + $0x5d0] sm:$0xff]  ;;  %v4017_v32 = vpack.c.bf16 %v559_v21, %v556_v18  ;;  %v583_v21 = vld [vmem:[%s6811_s4 + $0x748] sm:$0xff] }
  0xea   :  { %3860 = vmatprep.subr.bf16.mxu0 %v3859_v15  ;;  %v4015_v15 = vpack.c.bf16 %v607_v2, %v604_v5  ;;  %v3877_v25 = vpack.c.bf16 %v539_v8, %v536_v7  ;;  %v560_v7 = vld [vmem:[%s6811_s4 + $0x690] sm:$0xff]  ;;  %v563_v8 = vld [vmem:[%s6811_s4 + $0x6a8] sm:$0xff] }
  0xeb   :  { %v334_v38 = vpop.permute.xlu1 %333  ;;  %v580_v18 = vld [vmem:[%s6811_s4 + $0x730] sm:$0xff] }
  0xec   :  { %v336_v42 = vmul.f32 %v334_v38, %v5299_v20  ;;  %v565_v38 = vld [vmem:[%s6811_s4 + $0x6b8] sm:$0xff] }
  0xed   :  { %3862 = vmatpush1.bf16.msra.mxu0 %v3861_v28  ;;  %v545_v28 = vld [vmem:[%s6811_s4 + $0x618] sm:$0xff] }
  0xee   :  { %v337_v45 = vadd.f32 %v336_v42, %v301_v41  ;;  %3864 = vmatprep.subr.bf16.mxu0 %v3863_v34  ;;  %v549_v34 = vld [vmem:[%s6811_s4 + $0x638] sm:$0xff]  ;;  %v3881_v40 = vpack.c.bf16 %v545_v28, %v542_v27  ;;  %v548_v41 = vld [vmem:[%s6811_s4 + $0x630] sm:$0xff]  ;;  %v551_v42 = vld [vmem:[%s6811_s4 + $0x648] sm:$0xff]  ;;  %v3893_v28 = vpack.c.bf16 %v563_v8, %v560_v7 }
  0xef   :  { %v328_v9 = vpop.permute.xlu1 %327  ;;  %v3883_v44 = vpack.c.bf16 %v552_v39, %v549_v34  ;;  %v3885_v35 = vpack.c.bf16 %v551_v42, %v548_v41  ;;  %v566_v34 = vld [vmem:[%s6811_s4 + $0x6c0] sm:$0xff]  ;;  %v589_v39 = vld [vmem:[%s6811_s4 + $0x778] sm:$0xff]  ;;  %v587_v7 = vld [vmem:[%s6811_s4 + $0x768] sm:$0xff] }
  0xf0   :  { %v330_v53 = vmul.f32 %v328_v9, %v5299_v20  ;;  %790 = vmatprep.mubr.f32.mxu0 %v337_v45  ;;  %1002 = vmatprep.mubr.f32.mxu1 %v337_v45  ;;  %v555_v45 = vld [vmem:[%s6811_s4 + $0x668] sm:$0xff]  ;;  %v558_v9 = vld [vmem:[%s6811_s4 + $0x680] sm:$0xff] }
  0xf1   :  { %3866 = vmatpush1.bf16.msra.mxu0 %v3865_v60  ;;  %v4021_v60 = vpack.c.bf16 %v565_v38, %v562_v37  ;;  %v3887_v29 = vpack.c.bf16 %v558_v9, %v555_v45  ;;  %v4033_v37 = vpack.c.bf16 %v583_v21, %v580_v18  ;;  %v3895_v38 = vpack.c.bf16 %v570_v23, %v567_v14  ;;  %v594_v8 = vld [vmem:[%s6811_s4 + $0x7a0] sm:$0xff] }
  0xf2   :  { %v331_v56 = vadd.f32 %v330_v53, %v295_v19  ;;  %3868 = vmatprep.subr.bf16.mxu0 %v3867_v46  ;;  %v94_v46 = vpop.permute.xlu0 %93  ;;  %v554_v19 = vld [vmem:[%s6811_s4 + $0x660] sm:$0xff]  ;;  %v557_v53 = vld [vmem:[%s6811_s4 + $0x678] sm:$0xff] }
  0xf3   :  { %v3889_v52 = vpack.c.bf16 %v557_v53, %v554_v19  ;;  %v96_v27 = vmul.f32 %v94_v46, %v5253_v47  ;;  %v590_v23 = vld [vmem:[%s6811_s4 + $0x780] sm:$0xff] }
  0xf4   :  { %1003 = vmatmul.mubr.f32.vlgmr.msra.gmra.mrb[2].mxu1 %v331_v56  ;;  %v5639_v6 = vpop.permute.xlu1 %129 }
  0xf5   :  { %3870 = vmatpush1.bf16.msra.mxu0 %v3869_v30  ;;  %4010 = vmatpush3.bf16.msra.mxu1 %v4009_v55  ;;  %v4025_v30 = vpack.c.bf16 %v571_v51, %v568_v49  ;;  %v561_v55 = vld [vmem:[%s6811_s4 + $0x698] sm:$0xff]  ;;  %v572_v49 = vld [vmem:[%s6811_s4 + $0x6f0] sm:$0xff]  ;;  %v575_v51 = vld [vmem:[%s6811_s4 + $0x708] sm:$0xff] }
  0xf6   :  { %3872 = vmatprep.subr.bf16.mxu0 %v3871_v57  ;;  %4012 = vmatprep.subr.bf16.mxu1 %v4011_v62  ;;  %v574_v57 = vld [vmem:[%s6811_s4 + $0x700] sm:$0xff]  ;;  %v564_v62 = vld [vmem:[%s6811_s4 + $0x6b0] sm:$0xff]  ;;  %v124_v5 = vpop.permute.xlu0 %123 }
  0xf9   :  { %3874 = vmatpush1.bf16.msra.mxu0 %v3873_v1  ;;  %v87_v26 = vpop.permute.xlu1 %86  ;;  %4014 = vmatpush3.bf16.msra.mxu1 %v4013_v10  ;;  %v126_v1 = vmul.f32 %v124_v5, %v5258_v54  ;;  %v4029_v10 = vpack.c.bf16 %v577_v59, %v574_v57 }
  0xfa   :  { %3876 = vmatprep.subr.bf16.mxu0 %v3875_v12  ;;  %4016 = vmatprep.subr.bf16.mxu1 %v4015_v15  ;;  %v89_v2 = vmul.f32 %v87_v26, %v5253_v47  ;;  %v3891_v12 = vpack.c.bf16 %v564_v62, %v561_v55  ;;  %v4031_v15 = vpack.c.bf16 %v631_v3, %v628_v63  ;;  %v581_v55 = vld [vmem:[%s6811_s4 + $0x738] sm:$0xff] }
  0xfb   :  { %v132_v26 = vmul.f32 %v5639_v6, %v5258_v54  ;;  %v202_v54 = vpop.permute.xlu0 %201  ;;  %v586_v6 = vld [vmem:[%s6811_s4 + $0x760] sm:$0xff] }
  0xfc   :  { %v4037_v46 = vpack.c.bf16 %v589_v39, %v586_v6 }
  0xfd   :  { %3878 = vmatpush1.bf16.msra.mxu0 %v3877_v25  ;;  %4018 = vmatpush3.bf16.msra.mxu1 %v4017_v32  ;;  %v637_v25 = vld [vmem:[%s6811_s4 + $0x8f8] sm:$0xff]  ;;  %v133_v41 = vadd.f32 %v132_v26, %v96_v27  ;;  %v600_v26 = vld [vmem:[%s6811_s4 + $0x7d0] sm:$0xff] }
  0xfe   :  { %3880 = vmatprep.subr.bf16.mxu0 %v3879_v33  ;;  %v5695_v43 = vpop.permute.xlu1 %165  ;;  %4020 = vmatprep.subr.bf16.mxu1 %v4019_v36  ;;  %v127_v33 = vadd.f32 %v126_v1, %v89_v2  ;;  %v569_v36 = vld [vmem:[%s6811_s4 + $0x6d8] sm:$0xff]  ;;  %v4035_v47 = vpack.c.bf16 %v637_v25, %v634_v24  ;;  %v584_v1 = vld [vmem:[%s6811_s4 + $0x750] sm:$0xff] }
  0xff   :  { %v593_v24 = vld [vmem:[%s6811_s4 + $0x798] sm:$0xff] }
 0x100   :  { %791 = vmatmul.mubr.f32.vlgmr.msra.gmra.mrb[0].mxu0 %v331_v56  ;;  %v4027_v56 = vpack.c.bf16 %v625_v50, %v622_v16  ;;  %v204_v16 = vmul.f32 %v202_v54, %v5271_v58  ;;  %v232_v50 = vpop.permute.xlu0 %231 }
 0x101   :  { %3882 = vmatpush1.bf16.msra.mxu0 %v3881_v40  ;;  %4022 = vmatpush3.bf16.msra.mxu1 %v4021_v60  ;;  %v168_v40 = vmul.f32 %v5695_v43, %v5265_v61  ;;  %v3897_v60 = vpack.c.bf16 %v569_v36, %v566_v34  ;;  %v582_v43 = vld [vmem:[%s6811_s4 + $0x740] sm:$0xff]  ;;  %v234_v53 = vmul.f32 %v232_v50, %v5278_v4  ;;  %v617_v50 = vld [vmem:[%s6811_s4 + $0x858] sm:$0xff] }
 0x102   :  { %3884 = vmatprep.subr.bf16.mxu0 %v3883_v44  ;;  %v160_v31 = vpop.permute.xlu1 %159  ;;  %4024 = vmatprep.subr.bf16.mxu1 %v4023_v48  ;;  %v3899_v48 = vpack.c.bf16 %v576_v11, %v573_v0  ;;  %v3913_v34 = vpack.c.bf16 %v593_v24, %v590_v23  ;;  %v1114_v23 = vld [vmem:[%s6813_s6 + $0x30] sm:$0xff]  ;;  %v1117_v24 = vld [vmem:[%s6813_s6 + $0x48] sm:$0xff] }
 0x103   :  { %v162_v32 = vmul.f32 %v160_v31, %v5265_v61  ;;  %v579_v61 = vld [vmem:[%s6811_s4 + $0x728] sm:$0xff]  ;;  %v169_v9 = vadd.f32 %v168_v40, %v133_v41 }
 0x104   :  { %v3903_v31 = vpack.c.bf16 %v582_v43, %v579_v61  ;;  %v310_v5 = vpop.permute.xlu0 %309  ;;  %v618_v61 = vld [vmem:[%s6811_s4 + $0x860] sm:$0xff] }
 0x105   :  { %3886 = vmatpush1.bf16.msra.mxu0 %v3885_v35  ;;  %4026 = vmatpush3.bf16.msra.mxu1 %v4025_v30  ;;  %v163_v45 = vadd.f32 %v162_v32, %v127_v33  ;;  %v3901_v30 = vpack.c.bf16 %v575_v51, %v572_v49  ;;  %v205_v59 = vadd.f32 %v204_v16, %v169_v9  ;;  %v611_v49 = vld [vmem:[%s6811_s4 + $0x828] sm:$0xff]  ;;  %v614_v16 = vld [vmem:[%s6811_s4 + $0x840] sm:$0xff] }
 0x106   :  { %3888 = vmatprep.subr.bf16.mxu0 %v3887_v29  ;;  %4028 = vmatprep.subr.bf16.mxu1 %v4027_v56  ;;  %v578_v29 = vld [vmem:[%s6811_s4 + $0x720] sm:$0xff]  ;;  %v588_v56 = vld [vmem:[%s6811_s4 + $0x770] sm:$0xff]  ;;  %v615_v51 = vld [vmem:[%s6811_s4 + $0x848] sm:$0xff] }
 0x107   :  { %v196_v22 = vpop.permute.xlu1 %195  ;;  %v3905_v3 = vpack.c.bf16 %v581_v55, %v578_v29  ;;  %v3927_v9 = vpack.c.bf16 %v618_v61, %v615_v51  ;;  %v623_v29 = vld [vmem:[%s6811_s4 + $0x888] sm:$0xff]  ;;  %v1148_v61 = vld [vmem:[%s6813_s6 + $0x140] sm:$0xff] }
 0x108   :  { %v198_v44 = vmul.f32 %v196_v22, %v5271_v58  ;;  %v585_v58 = vld [vmem:[%s6811_s4 + $0x758] sm:$0xff]  ;;  %v340_v21 = vpop.permute.xlu0 %339  ;;  %v627_v55 = vld [vmem:[%s6811_s4 + $0x8a8] sm:$0xff] }
 0x109   :  { %3890 = vmatpush1.bf16.msra.mxu0 %v3889_v52  ;;  %4030 = vmatpush3.bf16.msra.mxu1 %v4029_v10  ;;  %v3907_v2 = vpack.c.bf16 %v588_v56, %v585_v58  ;;  %v342_v33 = vmul.f32 %v340_v21, %v5299_v20  ;;  %v630_v58 = vld [vmem:[%s6811_s4 + $0x8c0] sm:$0xff]  ;;  %v1118_v21 = vld [vmem:[%s6813_s6 + $0x50] sm:$0xff]  ;;  %v1145_v51 = vld [vmem:[%s6813_s6 + $0x128] sm:$0xff] }
 0x10a   :  { %3892 = vmatprep.subr.bf16.mxu0 %v3891_v12  ;;  %4032 = vmatprep.subr.bf16.mxu1 %v4031_v15  ;;  %v199_v19 = vadd.f32 %v198_v44, %v163_v45  ;;  %v3909_v15 = vpack.c.bf16 %v587_v7, %v584_v1  ;;  %v609_v44 = vld [vmem:[%s6811_s4 + $0x818] sm:$0xff]  ;;  %v635_v1 = vld [vmem:[%s6811_s4 + $0x8e8] sm:$0xff] }
 0x10c   :  { %v238_v42 = vpop.permute.xlu1 %237  ;;  %v235_v62 = vadd.f32 %v234_v53, %v199_v19  ;;  %v624_v19 = vld [vmem:[%s6811_s4 + $0x890] sm:$0xff]  ;;  %v3929_v53 = vpack.c.bf16 %v617_v50, %v614_v16  ;;  %v1147_v16 = vld [vmem:[%s6813_s6 + $0x138] sm:$0xff] }
 0x10d   :  { %3894 = vmatpush1.bf16.msra.mxu0 %v3893_v28  ;;  %4034 = vmatpush3.bf16.msra.mxu1 %v4033_v37  ;;  %v240_v57 = vmul.f32 %v238_v42, %v5278_v4  ;;  %v591_v4 = vld [vmem:[%s6811_s4 + $0x788] sm:$0xff]  ;;  %v312_v28 = vmul.f32 %v310_v5, %v5294_v17  ;;  %v596_v37 = vld [vmem:[%s6811_s4 + $0x7b0] sm:$0xff]  ;;  %v602_v42 = vld [vmem:[%s6811_s4 + $0x7e0] sm:$0xff] }
 0x10e   :  { %3896 = vmatprep.subr.bf16.mxu0 %v3895_v38  ;;  %4036 = vmatprep.subr.bf16.mxu1 %v4035_v47  ;;  %v3911_v22 = vpack.c.bf16 %v594_v8, %v591_v4  ;;  %v599_v38 = vld [vmem:[%s6811_s4 + $0x7c8] sm:$0xff]  ;;  %v606_v47 = vld [vmem:[%s6811_s4 + $0x800] sm:$0xff] }
 0x10f   :  { %v241_v10 = vadd.f32 %v240_v57, %v205_v59  ;;  %v3917_v11 = vpack.c.bf16 %v599_v38, %v596_v37  ;;  %v3935_v57 = vpack.c.bf16 %v630_v58, %v627_v55  ;;  %v626_v59 = vld [vmem:[%s6811_s4 + $0x8a0] sm:$0xff]  ;;  %v1109_v4 = vld [vmem:[%s6813_s6 + $0x8] sm:$0xff]  ;;  %v1126_v38 = vld [vmem:[%s6813_s6 + $0x90] sm:$0xff]  ;;  %v4762_v55 = vmov 0.0  }
 0x110   :  { %v1112_v8 = vld [vmem:[%s6813_s6 + $0x20] sm:$0xff]  ;;  %v4763_v58 = vmov 0.0|0.0  }
 0x111   :  { %3898 = vmatpush1.bf16.msra.mxu0 %v3897_v60  ;;  %v274_v35 = vpop.permute.xlu1 %273  ;;  %4038 = vmatpush3.bf16.msra.mxu1 %v4037_v46  ;;  %v605_v60 = vld [vmem:[%s6811_s4 + $0x7f8] sm:$0xff] }
 0x112   :  { %3900 = vmatprep.subr.bf16.mxu0 %v3899_v48  ;;  %v276_v12 = vmul.f32 %v274_v35, %v5287_v13  ;;  %v3921_v45 = vpack.c.bf16 %v605_v60, %v602_v42  ;;  %v608_v48 = vld [vmem:[%s6811_s4 + $0x810] sm:$0xff]  ;;  %v621_v35 = vld [vmem:[%s6811_s4 + $0x878] sm:$0xff] }
 0x113   :  { %v3925_v43 = vpack.c.bf16 %v611_v49, %v608_v48  ;;  %v1135_v42 = vld [vmem:[%s6813_s6 + $0xd8] sm:$0xff]  ;;  %v1141_v48 = vld [vmem:[%s6813_s6 + $0x108] sm:$0xff] }
 0x114   :  { %v277_v27 = vadd.f32 %v276_v12, %v241_v10  ;;  %v1108_v10 = vld [vmem:[%s6813_s6] sm:$0xff]  ;;  %v4039_v12 = vpack.c.bf16 %v1112_v8, %v1109_v4 }
 0x115   :  { %3902 = vmatpush1.bf16.msra.mxu0 %v3901_v30  ;;  %v268_v63 = vpop.permute.xlu1 %267  ;;  %v3931_v30 = vpack.c.bf16 %v624_v19, %v621_v35  ;;  %v1151_v35 = vld [vmem:[%s6813_s6 + $0x158] sm:$0xff]  ;;  %v1154_v19 = vld [vmem:[%s6813_s6 + $0x170] sm:$0xff] }
 0x116   :  { %v270_v52 = vmul.f32 %v268_v63, %v5287_v13  ;;  %3904 = vmatprep.subr.bf16.mxu0 %v3903_v31  ;;  %v597_v13 = vld [vmem:[%s6811_s4 + $0x7b8] sm:$0xff]  ;;  %v313_v6 = vadd.f32 %v312_v28, %v277_v27  ;;  %v620_v31 = vld [vmem:[%s6811_s4 + $0x870] sm:$0xff]  ;;  %4040 = vmatprep.subr.bf16.mxu1 %v4039_v12  ;;  %v1120_v27 = vld [vmem:[%s6813_s6 + $0x60] sm:$0xff] }
 0x117   :  { %v3915_v36 = vpack.c.bf16 %v600_v26, %v597_v13  ;;  %v3933_v56 = vpack.c.bf16 %v623_v29, %v620_v31  ;;  %v633_v63 = vld [vmem:[%s6811_s4 + $0x8d8] sm:$0xff]  ;;  %v4045_v13 = vpack.c.bf16 %v1117_v24, %v1114_v23  ;;  %v1124_v26 = vld [vmem:[%s6813_s6 + $0x80] sm:$0xff]  ;;  %v1153_v31 = vld [vmem:[%s6813_s6 + $0x168] sm:$0xff] }
 0x118   :  { %v271_v14 = vadd.f32 %v270_v52, %v235_v62  ;;  %v629_v62 = vld [vmem:[%s6811_s4 + $0x8b8] sm:$0xff] }
 0x119   :  { %3906 = vmatpush1.bf16.msra.mxu0 %v3905_v3  ;;  %v636_v3 = vld [vmem:[%s6811_s4 + $0x8f0] sm:$0xff]  ;;  %v3937_v52 = vpack.c.bf16 %v629_v62, %v626_v59  ;;  %v1123_v28 = vld [vmem:[%s6813_s6 + $0x78] sm:$0xff]  ;;  %v6030_v62 = vld [vmem:[%s6812_s5] sm:$0x7]  ;;  %s6425_s5 = scalar_select %p1762_p6, 1, 0 }
 0x11a   :  { %v304_v18 = vpop.permute.xlu1 %303  ;;  %3908 = vmatprep.subr.bf16.mxu0 %v3907_v2  ;;  %v3939_v5 = vpack.c.bf16 %v636_v3, %v633_v63  ;;  %v632_v2 = vld [vmem:[%s6811_s4 + $0x8d0] sm:$0xff]  ;;  %v1328_v12 = vld [vmem:[%s6814_s7 + $0x58] sm:$0xff] }
 0x11b   :  { %v306_v25 = vmul.f32 %v304_v18, %v5294_v17  ;;  %v603_v17 = vld [vmem:[%s6811_s4 + $0x7e8] sm:$0xff]  ;;  %v3941_v7 = vpack.c.bf16 %v635_v1, %v632_v2  ;;  %v1115_v18 = vld [vmem:[%s6813_s6 + $0x38] sm:$0xff]  ;;  %s1764_s16 = scvt.s32.f32 %s6425_s5 }
 0x11c   :  { %v3919_v41 = vpack.c.bf16 %v606_v47, %v603_v17  ;;  %v1322_v2 = vld [vmem:[%s6814_s7 + $0x28] sm:$0xff]  ;;  %v1340_v23 = vld [vmem:[%s6814_s7 + $0xb8] sm:$0xff] }
 0x11d   :  { %v307_v32 = vadd.f32 %v306_v25, %v271_v14  ;;  %3910 = vmatpush1.bf16.msra.mxu0 %v3909_v15  ;;  %v1111_v14 = vld [vmem:[%s6813_s6 + $0x18] sm:$0xff]  ;;  %v1121_v25 = vld [vmem:[%s6813_s6 + $0x68] sm:$0xff] }
 0x11e   :  { %3912 = vmatprep.subr.bf16.mxu0 %v3911_v22  ;;  %v4041_v15 = vpack.c.bf16 %v1111_v14, %v1108_v10  ;;  %v4043_v22 = vpack.c.bf16 %v1118_v21, %v1115_v18  ;;  %v1325_v10 = vld [vmem:[%s6814_s7 + $0x40] sm:$0xff]  ;;  %v1334_v18 = vld [vmem:[%s6814_s7 + $0x88] sm:$0xff] }
 0x11f   :  { %v346_v54 = vpop.permute.xlu1 %345  ;;  %v343_v0 = vadd.f32 %v342_v33, %v307_v32  ;;  %v4047_v32 = vpack.c.bf16 %v1124_v26, %v1121_v25  ;;  %v4049_v33 = vpack.c.bf16 %v1123_v28, %v1120_v27  ;;  %v6053_v14 = vpack.c.bf16 %v1328_v12, %v1325_v10  ;;  %v1343_v25 = vld [vmem:[%s6814_s7 + $0xd0] sm:$0xff]  ;;  %v1349_v27 = vld [vmem:[%s6814_s7 + $0x100] sm:$0xff]  ;;  %v1352_v28 = vld [vmem:[%s6814_s7 + $0x118] sm:$0xff] }
 0x120   :  { %v348_v39 = vmul.f32 %v346_v54, %v5299_v20  ;;  %v612_v20 = vld [vmem:[%s6811_s4 + $0x830] sm:$0xff]  ;;  %v1129_v54 = vld [vmem:[%s6813_s6 + $0xa8] sm:$0xff]  ;;  %v1140_v10 = vld [vmem:[%s6813_s6 + $0x100] sm:$0xff] }
 0x121   :  { %3914 = vmatpush1.bf16.msra.mxu0 %v3913_v34  ;;  %v3923_v46 = vpack.c.bf16 %v612_v20, %v609_v44  ;;  %v1127_v34 = vld [vmem:[%s6813_s6 + $0x98] sm:$0xff]  ;;  %v4053_v17 = vpack.c.bf16 %v1129_v54, %v1126_v38  ;;  %v1142_v20 = vld [vmem:[%s6813_s6 + $0x110] sm:$0xff] }
 0x122   :  { %v349_v40 = vadd.f32 %v348_v39, %v313_v6  ;;  %3916 = vmatprep.subr.bf16.mxu0 %v3915_v36  ;;  %v1130_v36 = vld [vmem:[%s6813_s6 + $0xb0] sm:$0xff]  ;;  %v1133_v39 = vld [vmem:[%s6813_s6 + $0xc8] sm:$0xff]  ;;  %v1139_v44 = vld [vmem:[%s6813_s6 + $0xf8] sm:$0xff] }
 0x123   :  { %v4051_v37 = vpack.c.bf16 %v1130_v36, %v1127_v34  ;;  %v1358_v34 = vld [vmem:[%s6814_s7 + $0x148] sm:$0xff]  ;;  %v1364_v38 = vld [vmem:[%s6814_s7 + $0x178] sm:$0xff] }
 0x124   :  { %861 = vmatprep.mubr.f32.mxu0 %v349_v40  ;;  %1072 = vmatprep.mubr.f32.mxu1 %v349_v40  ;;  %v1143_v12 = vld [vmem:[%s6813_s6 + $0x118] sm:$0xff] }
 0x125   :  { %3918 = vmatpush1.bf16.msra.mxu0 %v3917_v11  ;;  %1073 = vmatmul.mubr.f32.vlgmr.msra.gmra.mrb[4].mxu1 %v343_v0 }
 0x126   :  { %3920 = vmatprep.subr.bf16.mxu0 %v3919_v41  ;;  %4042 = vmatpush1.bf16.msra.mxu1 %v4041_v15  ;;  %v1132_v41 = vld [vmem:[%s6813_s6 + $0xc0] sm:$0xff]  ;;  %v1331_v15 = vld [vmem:[%s6814_s7 + $0x70] sm:$0xff] }
 0x127   :  { %4044 = vmatprep.subr.bf16.mxu1 %v4043_v22  ;;  %v4057_v60 = vpack.c.bf16 %v1135_v42, %v1132_v41  ;;  %1237 = vmatprep.mubr.f32.mxu1 %v4762_v55  ;;  %v6063_v21 = vpack.c.bf16 %v1334_v18, %v1331_v15  ;;  %v1337_v22 = vld [vmem:[%s6814_s7 + $0xa0] sm:$0xff]  ;;  %v4087_v15 = vpack.c.bf16 %v1143_v12, %v1140_v10  ;;  %v1146_v18 = vld [vmem:[%s6813_s6 + $0x130] sm:$0xff]  ;;  %v1360_v10 = vld [vmem:[%s6814_s7 + $0x158] sm:$0xff] }
 0x128   :  { %v6073_v24 = vpack.c.bf16 %v1340_v23, %v1337_v22  ;;  %v1149_v22 = vld [vmem:[%s6813_s6 + $0x148] sm:$0xff]  ;;  %v1363_v12 = vld [vmem:[%s6814_s7 + $0x170] sm:$0xff] }
 0x129   :  { %3922 = vmatpush1.bf16.msra.mxu0 %v3921_v45  ;;  %v4059_v45 = vpack.c.bf16 %v1142_v20, %v1139_v44  ;;  %v4090_v23 = vpack.c.bf16 %v1149_v22, %v1146_v18  ;;  %v6333_v18 = vpack.c.bf16 %v1363_v12, %v1360_v10  ;;  %v1359_v22 = vld [vmem:[%s6814_s7 + $0x150] sm:$0xff] }
 0x12a   :  { %3924 = vmatprep.subr.bf16.mxu0 %v3923_v46  ;;  %4046 = vmatpush1.bf16.msra.mxu1 %v4045_v13  ;;  %v1138_v46 = vld [vmem:[%s6813_s6 + $0xf0] sm:$0xff]  ;;  %v1346_v13 = vld [vmem:[%s6814_s7 + $0xe8] sm:$0xff] }
 0x12b   :  { %4048 = vmatprep.subr.bf16.mxu1 %v4047_v32  ;;  %v4061_v49 = vpack.c.bf16 %v1141_v48, %v1138_v46  ;;  %v6083_v26 = vpack.c.bf16 %v1346_v13, %v1343_v25  ;;  %v6093_v32 = vpack.c.bf16 %v1352_v28, %v1349_v27  ;;  %v1152_v25 = vld [vmem:[%s6813_s6 + $0x160] sm:$0xff]  ;;  %v1155_v13 = vld [vmem:[%s6813_s6 + $0x178] sm:$0xff]  ;;  %v1318_v27 = vld [vmem:[%s6814_s7 + $0x8] sm:$0xff] }
 0x12c   :  { %v1321_v28 = vld [vmem:[%s6814_s7 + $0x20] sm:$0xff] }
 0x12d   :  { %3926 = vmatpush1.bf16.msra.mxu0 %v3925_v43  ;;  %v4063_v43 = vpack.c.bf16 %v1148_v61, %v1145_v51  ;;  %v1096_v61 = vpop.permute.xlu0 %1095 }
 0x12e   :  { %3928 = vmatprep.subr.bf16.mxu0 %v3927_v9  ;;  %4050 = vmatpush1.bf16.msra.mxu1 %v4049_v33  ;;  %v1144_v9 = vld [vmem:[%s6813_s6 + $0x120] sm:$0xff]  ;;  %v1355_v33 = vld [vmem:[%s6814_s7 + $0x130] sm:$0xff] }
 0x12f   :  { %4052 = vmatprep.subr.bf16.mxu1 %v4051_v37  ;;  %v4065_v50 = vpack.c.bf16 %v1147_v16, %v1144_v9  ;;  %v6103_v36 = vpack.c.bf16 %v1358_v34, %v1355_v33  ;;  %v1361_v37 = vld [vmem:[%s6814_s7 + $0x160] sm:$0xff]  ;;  %v1110_v16 = vld [vmem:[%s6813_s6 + $0x10] sm:$0xff]  ;;  %v4093_v33 = vpack.c.bf16 %v1155_v13, %v1152_v25  ;;  %v6207_v34 = vpack.c.bf16 %v1321_v28, %v1318_v27 }
 0x130   :  { %v6113_v54 = vpack.c.bf16 %v1364_v38, %v1361_v37  ;;  %v1317_v37 = vld [vmem:[%s6814_s7] sm:$0xff]  ;;  %v1320_v38 = vld [vmem:[%s6814_s7 + $0x18] sm:$0xff] }
 0x131   :  { %3930 = vmatpush1.bf16.msra.mxu0 %v3929_v53  ;;  %v4067_v53 = vpack.c.bf16 %v1154_v19, %v1151_v35  ;;  %v1156_v28 = vld [vmem:[%s6815_s8] sm:$0x7]  ;;  %s1557_s8 = sld [smem:[#allocation5]] }
 0x132   :  { %3932 = vmatprep.subr.bf16.mxu0 %v3931_v30  ;;  %4054 = vmatpush1.bf16.msra.mxu1 %v4053_v17  ;;  %v1150_v30 = vld [vmem:[%s6813_s6 + $0x150] sm:$0xff] }
 0x133   :  { %v4069_v29 = vpack.c.bf16 %v1153_v31, %v1150_v30  ;;  %v1116_v31 = vld [vmem:[%s6813_s6 + $0x40] sm:$0xff] }
 0x135   :  { %3934 = vmatpush1.bf16.msra.mxu0 %v3933_v56  ;;  %v640_v56 = vlaneseq }
 0x136   :  { %3936 = vmatprep.subr.bf16.mxu0 %v3935_v57 }
 0x137   :  { %v6024_v57 = vshrl.u32 %v640_v56, 7  ;;  %p1558_p5 = scmp.gt.s32.totalorder %s1557_s8, 0 }
 0x139   :  { %3938 = vmatpush1.bf16.msra.mxu0 %v3937_v52  ;;  %v650_v59 = vsub.s32 2, %v6024_v57  ;;  %s6380_s13 = scalar_select %p1558_p5, 1, 0 }
 0x13a   :  { %3940 = vmatprep.subr.bf16.mxu0 %v3939_v5  ;;  %v1319_v5 = vld [vmem:[%s6814_s7 + $0x10] sm:$0xff] }
 0x13b   :  { %v651_v63 = vrot.slane %v6030_v62, %v650_v59  ;;  %v6043_v4 = vpack.c.bf16 %v1322_v2, %v1319_v5  ;;  %v1131_v5 = vld [vmem:[%s6813_s6 + $0xb8] sm:$0xff]  ;;  %s1560_s14 = scvt.s32.f32 %s6380_s13 }
 0x13d   :  { %3942 = vmatpush1.bf16.msra.mxu0 %v3941_v7  ;;  %s6432_s17 = sadd.f32 %s1764_s16, %s1560_s14 }
 0x13e   :  { %4127 = vmatprep.subr.bf16.mxu0 %v4763_v58 }
 0x13f   :  { %s6490_s20 = sadd.f32 %s1968_s19, %s6432_s17 }
 0x140   :  { %862 = vmatmul.mubr.f32.vlgmr.msra.gmra.mrb[0].mxu0 %v343_v0  ;;  %v1136_v0 = vld [vmem:[%s6813_s6 + $0xe0] sm:$0xff] }
 0x141   :  { %v4055_v40 = vpack.c.bf16 %v1136_v0, %v1133_v39  ;;  %3468 = vmatprep.mubr.msk.f32.mxu0 %vm4764_vm0, %v4762_v55  ;;  %4129 = vmatpush3.bf16.msra.mxu0 %v6043_v4  ;;  %v642_v0 = vsub.s32 0, %v6024_v57  ;;  %s6548_s4 = sadd.f32 %s2172_s23, %s6490_s20 }
 0x142   :  { %4130 = vmatprep.subr.bf16.mxu0 %v4763_v58 }
 0x143   :  { %4056 = vmatprep.subr.bf16.mxu1 %v4055_v40  ;;  %v643_v40 = vrot.slane %v6030_v62, %v642_v0  ;;  %s6606_s25 = sadd.f32 %s2376_s0, %s6548_s4 }
 0x144   :  { %4058 = vmatpush1.bf16.msra.mxu1 %v4057_v60 }
 0x145   :  { %4060 = vmatprep.subr.bf16.mxu1 %v4059_v45  ;;  %4132 = vmatpush3.bf16.msra.mxu0 %v6053_v14  ;;  %v1083_v45 = vpop.permute.xlu1 %1082 }
 0x146   :  { %4133 = vmatprep.subr.bf16.mxu0 %v4763_v58 }
 0x148   :  { %4062 = vmatpush1.bf16.msra.mxu1 %v4061_v49 }
 0x149   :  { %4064 = vmatprep.subr.bf16.mxu1 %v4063_v43  ;;  %4135 = vmatpush3.bf16.msra.mxu0 %v6063_v21  ;;  %v1089_v48 = vpop.permute.xlu1 %1088 }
 0x14a   :  { %4136 = vmatprep.subr.bf16.mxu0 %v4763_v58 }
 0x14c   :  { %4066 = vmatpush1.bf16.msra.mxu1 %v4065_v50  ;;  %v1113_v50 = vld [vmem:[%s6813_s6 + $0x28] sm:$0xff] }
 0x14d   :  { %4068 = vmatprep.subr.bf16.mxu1 %v4067_v53  ;;  %4138 = vmatpush3.bf16.msra.mxu0 %v6073_v24  ;;  %v4072_v53 = vpack.c.bf16 %v1113_v50, %v1110_v16  ;;  %v1342_v16 = vld [vmem:[%s6814_s7 + $0xc8] sm:$0xff]  ;;  %v1345_v50 = vld [vmem:[%s6814_s7 + $0xe0] sm:$0xff] }
 0x14e   :  { %4139 = vmatprep.subr.bf16.mxu0 %v4763_v58 }
 0x150   :  { %4070 = vmatpush1.bf16.msra.mxu1 %v4069_v29  ;;  %v1119_v29 = vld [vmem:[%s6813_s6 + $0x58] sm:$0xff] }
 0x151   :  { %4071 = vmatprep.subr.bf16.mxu1 %v4763_v58  ;;  %4141 = vmatpush3.bf16.msra.mxu0 %v6083_v26  ;;  %v4075_v56 = vpack.c.bf16 %v1119_v29, %v1116_v31  ;;  %v1348_v31 = vld [vmem:[%s6814_s7 + $0xf8] sm:$0xff]  ;;  %v1351_v29 = vld [vmem:[%s6814_s7 + $0x110] sm:$0xff] }
 0x152   :  { %4142 = vmatprep.subr.bf16.mxu0 %v4763_v58 }
 0x155   :  { %4144 = vmatpush3.bf16.msra.mxu0 %v6093_v32 }
 0x156   :  { %4145 = vmatprep.subr.bf16.mxu0 %v4763_v58 }
 0x159   :  { %4147 = vmatpush3.bf16.msra.mxu0 %v6103_v36 }
 0x15a   :  { %4148 = vmatprep.subr.bf16.mxu0 %v4763_v58 }
 0x15d   :  { %4150 = vmatpush3.bf16.msra.mxu0 %v6113_v54 }
 0x15e   :  { %4183 = vmatprep.subr.bf16.mxu0 %v4763_v58 }
 0x160   :  { %3469 = vmatmul.mubr.f32.vlgmr.msra.gmra.mrb[2].mxu0 %v4762_v55 }
 0x161   :  { %4185 = vmatpush3.bf16.msra.mxu0 %v6043_v4  ;;  %3503 = vmatprep.mubr.msk.f32.mxu0 %vm4764_vm0, %v4762_v55 }
 0x162   :  { %4186 = vmatprep.subr.bf16.mxu0 %v4763_v58 }
 0x165   :  { %4188 = vmatpush3.bf16.msra.mxu0 %v6053_v14 }
 0x166   :  { %4189 = vmatprep.subr.bf16.mxu0 %v4763_v58 }
 0x169   :  { %4191 = vmatpush3.bf16.msra.mxu0 %v6063_v21 }
 0x16a   :  { %4192 = vmatprep.subr.bf16.mxu0 %v4763_v58 }
 0x16d   :  { %4194 = vmatpush3.bf16.msra.mxu0 %v6073_v24 }
 0x16e   :  { %4195 = vmatprep.subr.bf16.mxu0 %v4763_v58 }
 0x171   :  { %4197 = vmatpush3.bf16.msra.mxu0 %v6083_v26 }
 0x172   :  { %4198 = vmatprep.subr.bf16.mxu0 %v4763_v58 }
 0x175   :  { %4200 = vmatpush3.bf16.msra.mxu0 %v6093_v32 }
 0x176   :  { %4201 = vmatprep.subr.bf16.mxu0 %v4763_v58 }
 0x179   :  { %4203 = vmatpush3.bf16.msra.mxu0 %v6103_v36 }
 0x17a   :  { %4204 = vmatprep.subr.bf16.mxu0 %v4763_v58 }
 0x17d   :  { %4206 = vmatpush3.bf16.msra.mxu0 %v6113_v54 }
 0x17e   :  { %4239 = vmatprep.subr.bf16.mxu0 %v4763_v58 }
 0x193   :  { %v3158_v47 = vpop.f32.mrb[0].mxu1 }
 0x194   :  { %v3159_v6 = vpop.f32.mrb[1].mxu1 }
 0x195   :  { %v3160_v11 = vadd.f32 %v3159_v6, %v3158_v47 }
 0x197   :  { %v935_v1 = vadd.f32 %v3160_v11, %v651_v63  ;;  %v646_v11 = vsub.s32 1, %v6024_v57  ;;  %v1125_v63 = vld [vmem:[%s6813_s6 + $0x88] sm:$0xff] }
 0x199   :  { %v647_v41 = vrot.slane %v6030_v62, %v646_v11  ;;  %v1122_v62 = vld [vmem:[%s6813_s6 + $0x70] sm:$0xff] }
 0x1c7   :  { %v3193_v3 = vpop.f32.mrb[2].mxu1 }
 0x1c8   :  { %v3194_v52 = vpop.f32.mrb[3].mxu1 }
 0x1c9   :  { %v3195_v7 = vadd.f32 %v3194_v52, %v3193_v3  ;;  %v4078_v3 = vpack.c.bf16 %v1125_v63, %v1122_v62  ;;  %v1128_v52 = vld [vmem:[%s6813_s6 + $0xa0] sm:$0xff]  ;;  %v6297_v62 = vpack.c.bf16 %v1351_v29, %v1348_v31  ;;  %v1347_v63 = vld [vmem:[%s6814_s7 + $0xf0] sm:$0xff] }
 0x1ca   :  { %v4081_v2 = vpack.c.bf16 %v1131_v5, %v1128_v52  ;;  %v1354_v52 = vld [vmem:[%s6814_s7 + $0x128] sm:$0xff]  ;;  %v1357_v5 = vld [vmem:[%s6814_s7 + $0x140] sm:$0xff] }
 0x1cb   :  { %v1005_v8 = vadd.f32 %v3195_v7, %v935_v1  ;;  %v1134_v1 = vld [vmem:[%s6813_s6 + $0xd0] sm:$0xff]  ;;  %v1137_v7 = vld [vmem:[%s6813_s6 + $0xe8] sm:$0xff]  ;;  %s2580_s6 = scvt.s32.f32 %s6658_s2 }
 0x1cd   :  { %s6664_s27 = sadd.f32 %s2580_s6, %s6606_s25 }
 0x1f8   :  { %v3228_v17 = vpop.f32.mrb[4].mxu1 }
 0x1f9   :  { %v3229_v47 = vpop.f32.mrb[5].mxu1 }
 0x1fa   :  { %v3230_v6 = vadd.f32 %v3229_v47, %v3228_v17  ;;  %v1324_v17 = vld [vmem:[%s6814_s7 + $0x38] sm:$0xff]  ;;  %v1327_v47 = vld [vmem:[%s6814_s7 + $0x50] sm:$0xff] }
 0x1fc   :  { %v1075_v39 = vadd.f32 %v3230_v6, %v1005_v8  ;;  %v4084_v8 = vpack.c.bf16 %v1137_v7, %v1134_v1  ;;  %v6221_v6 = vpack.c.bf16 %v1320_v38, %v1317_v37  ;;  %v6315_v1 = vpack.c.bf16 %v1357_v5, %v1354_v52  ;;  %v1353_v7 = vld [vmem:[%s6814_s7 + $0x120] sm:$0xff] }
 0x1fd   :  { %v1165_v37 = vrot.slane %v1156_v28, %v646_v11 }
 0x1fe   :  { %4631 = vtanh.f32 %v1075_v39  ;;  %v6224_v39 = vpack.c.bf16 %v1327_v47, %v1324_v17 }
 0x208   :  { %v4632_v46 = vpop.eup %4631 }
 0x209   :  { %v1098_v35 = vmul.f32 %v4632_v46, %v1096_v61  ;;  %v1332_v46 = vld [vmem:[%s6814_s7 + $0x78] sm:$0xff] }
 0x213   :  { %v863_v42 = vpop.f32.mrb[0].mxu0 }
 0x214   :  { %v4567_v60 = vadd.f32 %v863_v42, %v643_v40  ;;  %v865_v44 = vpop.f32.mrb[1].mxu0  ;;  %v1323_v40 = vld [vmem:[%s6814_s7 + $0x30] sm:$0xff]  ;;  %v1330_v42 = vld [vmem:[%s6814_s7 + $0x68] sm:$0xff] }
 0x215   :  { %v4568_v20 = vadd.f32 %v865_v44, %v647_v41  ;;  %v1326_v41 = vld [vmem:[%s6814_s7 + $0x48] sm:$0xff] }
 0x216   :  { %4633 = vtanh.f32 %v4567_v60  ;;  %v1333_v60 = vld [vmem:[%s6814_s7 + $0x80] sm:$0xff]  ;;  %v6239_v44 = vpack.c.bf16 %v1326_v41, %v1323_v40  ;;  %v1169_v41 = vrot.slane %v1156_v28, %v650_v59 }
 0x217   :  { %4635 = vtanh.f32 %v4568_v20  ;;  %v6243_v20 = vpack.c.bf16 %v1333_v60, %v1330_v42 }
 0x220   :  { %v4634_v49 = vpop.eup %4633 }
 0x221   :  { %v4636_v51 = vpop.eup %4635  ;;  %v1085_v43 = vmul.f32 %v4634_v49, %v1083_v45  ;;  %v1329_v45 = vld [vmem:[%s6814_s7 + $0x60] sm:$0xff]  ;;  %v1339_v49 = vld [vmem:[%s6814_s7 + $0xb0] sm:$0xff] }
 0x222   :  { %v1091_v9 = vmul.f32 %v4636_v51, %v1089_v48  ;;  %v1336_v48 = vld [vmem:[%s6814_s7 + $0x98] sm:$0xff]  ;;  %v6258_v51 = vpack.c.bf16 %v1332_v46, %v1329_v45  ;;  %v4765_v46 = vmov 1966171168  }
 0x223   :  { %v6261_v61 = vpack.c.bf16 %v1339_v49, %v1336_v48  ;;  %v1512_v48 = vunpack.c.l.s4 %v4765_v46 }
 0x224   :  { %v1092_v19 = vadd.f32 %v1091_v9, %v1085_v43  ;;  %v1335_v43 = vld [vmem:[%s6814_s7 + $0x90] sm:$0xff]  ;;  %v1338_v9 = vld [vmem:[%s6814_s7 + $0xa8] sm:$0xff] }
 0x225   :  { %v1513_v49 = vunpack.c.0.s8 %v1512_v48 }
 0x226   :  { %v1099_v30 = vadd.f32 %v1098_v35, %v1092_v19  ;;  %v6276_v35 = vpack.c.bf16 %v1338_v9, %v1335_v43  ;;  %v6279_v19 = vpack.c.bf16 %v1345_v50, %v1342_v16 }
 0x228   :  { %1238 = vmatmul.mubr.f32.vlgmr.msra.gmra.mrb[6].mxu1 %v1099_v30 }
 0x229   :  { %4073 = vmatpush3.bf16.msra.mxu1 %v4072_v53  ;;  %3433 = vmatprep.mubr.msk.f32.mxu1 %vm4764_vm0, %v4762_v55  ;;  %v1341_v53 = vld [vmem:[%s6814_s7 + $0xc0] sm:$0xff] }
 0x22a   :  { %4074 = vmatprep.subr.bf16.mxu1 %v4763_v58 }
 0x22d   :  { %4076 = vmatpush3.bf16.msra.mxu1 %v4075_v56 }
 0x22e   :  { %4077 = vmatprep.subr.bf16.mxu1 %v4763_v58 }
 0x231   :  { %4079 = vmatpush3.bf16.msra.mxu1 %v4078_v3  ;;  %v1350_v3 = vld [vmem:[%s6814_s7 + $0x108] sm:$0xff] }
 0x232   :  { %4080 = vmatprep.subr.bf16.mxu1 %v4763_v58 }
 0x233   :  { %v1503_v13 = vpop.f32.mrb[2].mxu0 }
 0x234   :  { %v3470_v27 = vpop.f32.mrb[3].mxu0 }
 0x235   :  { %4082 = vmatpush3.bf16.msra.mxu1 %v4081_v2  ;;  %v6312_v2 = vpack.c.bf16 %v1350_v3, %v1347_v63 }
 0x236   :  { %4083 = vmatprep.subr.bf16.mxu1 %v4763_v58 }
 0x239   :  { %4085 = vmatpush3.bf16.msra.mxu1 %v4084_v8  ;;  %v1356_v8 = vld [vmem:[%s6814_s7 + $0x138] sm:$0xff] }
 0x23a   :  { %4086 = vmatprep.subr.bf16.mxu1 %v4763_v58 }
 0x23d   :  { %4088 = vmatpush3.bf16.msra.mxu1 %v4087_v15  ;;  %v6330_v15 = vpack.c.bf16 %v1356_v8, %v1353_v7 }
 0x23e   :  { %4089 = vmatprep.subr.bf16.mxu1 %v4763_v58 }
 0x241   :  { %4091 = vmatpush3.bf16.msra.mxu1 %v4090_v23  ;;  %v1362_v23 = vld [vmem:[%s6814_s7 + $0x168] sm:$0xff] }
 0x242   :  { %4092 = vmatprep.subr.bf16.mxu1 %v4763_v58  ;;  %v6342_v25 = vpack.c.bf16 %v1362_v23, %v1359_v22 }
 0x245   :  { %4094 = vmatpush3.bf16.msra.mxu1 %v4093_v33  ;;  %v1161_v33 = vrot.slane %v1156_v28, %v642_v0  ;;  %v6375_v0 = vsub.s32 %v1513_v49, %v6024_v57  ;;  %v1561_v28 = vstv %s6380_s13 }
 0x246   :  { %4096 = vmatprep.subr.bf16.mxu1 %v6207_v34  ;;  %vm1562_vm1 = vcmp.eq.s32.totalorder %v1561_v28, 1 }
 0x247   :  { %v1524_v16 = vrot.slane %v1503_v13, %v6375_v0 }
 0x248   :  { %3434 = vmatmul.mubr.f32.vlgmr.msra.gmra.mrb[8].mxu1 %v1099_v30  ;;  %v1344_v30 = vld [vmem:[%s6814_s7 + $0xd8] sm:$0xff]  ;;  %s6721_s7 = sadd.f32 %s2784_s30, %s6664_s27 }
 0x249   :  { %4098 = vmatpush1.bf16.msra.mxu1 %v6221_v6  ;;  %1430 = vmatprep.mubr.f32.mxu1 %v4762_v55  ;;  %v6294_v56 = vpack.c.bf16 %v1344_v30, %v1341_v53 }
 0x24a   :  { %4100 = vmatprep.subr.bf16.mxu1 %v6224_v39 }
 0x24d   :  { %4102 = vmatpush1.bf16.msra.mxu1 %v6239_v44 }
 0x24e   :  { %4104 = vmatprep.subr.bf16.mxu1 %v6243_v20 }
 0x251   :  { %4106 = vmatpush1.bf16.msra.mxu1 %v6258_v51 }
 0x252   :  { %4108 = vmatprep.subr.bf16.mxu1 %v6261_v61 }
 0x255   :  { %4110 = vmatpush1.bf16.msra.mxu1 %v6276_v35 }
 0x256   :  { %4112 = vmatprep.subr.bf16.mxu1 %v6279_v19 }
 0x259   :  { %4114 = vmatpush1.bf16.msra.mxu1 %v6294_v56 }
 0x25a   :  { %4116 = vmatprep.subr.bf16.mxu1 %v6297_v62 }
 0x25d   :  { %4118 = vmatpush1.bf16.msra.mxu1 %v6312_v2 }
 0x25e   :  { %4120 = vmatprep.subr.bf16.mxu1 %v6315_v1 }
 0x261   :  { %4122 = vmatpush1.bf16.msra.mxu1 %v6330_v15 }
 0x262   :  { %4124 = vmatprep.subr.bf16.mxu1 %v6333_v18 }
 0x265   :  { %4126 = vmatpush1.bf16.msra.mxu1 %v6342_v25 }
 0x266   :  { %4152 = vmatprep.subr.bf16.mxu1 %v6207_v34 }
 0x268   :  { %1431 = vmatmul.mubr.f32.vlgmr.msra.gmra.mrb[10].mxu1 %v4762_v55 }
 0x269   :  { %4154 = vmatpush1.bf16.msra.mxu1 %v6221_v6  ;;  %1634 = vmatprep.mubr.f32.mxu1 %v4762_v55 }
 0x26a   :  { %4156 = vmatprep.subr.bf16.mxu1 %v6224_v39 }
 0x26d   :  { %4158 = vmatpush1.bf16.msra.mxu1 %v6239_v44 }
 0x26e   :  { %4160 = vmatprep.subr.bf16.mxu1 %v6243_v20 }
 0x271   :  { %4162 = vmatpush1.bf16.msra.mxu1 %v6258_v51 }
 0x272   :  { %4164 = vmatprep.subr.bf16.mxu1 %v6261_v61 }
 0x275   :  { %4166 = vmatpush1.bf16.msra.mxu1 %v6276_v35 }
 0x276   :  { %4168 = vmatprep.subr.bf16.mxu1 %v6279_v19 }
 0x279   :  { %4170 = vmatpush1.bf16.msra.mxu1 %v6294_v56 }
 0x27a   :  { %4172 = vmatprep.subr.bf16.mxu1 %v6297_v62 }
 0x27d   :  { %4174 = vmatpush1.bf16.msra.mxu1 %v6312_v2 }
 0x27e   :  { %4176 = vmatprep.subr.bf16.mxu1 %v6315_v1 }
 0x281   :  { %4178 = vmatpush1.bf16.msra.mxu1 %v6330_v15 }
 0x282   :  { %4180 = vmatprep.subr.bf16.mxu1 %v6333_v18 }
 0x285   :  { %4182 = vmatpush1.bf16.msra.mxu1 %v6342_v25 }
 0x286   :  { %4208 = vmatprep.subr.bf16.mxu1 %v6207_v34 }
 0x2fb   :  { %v1239_v38 = vpop.f32.mrb[6].mxu1 }
 0x2fc   :  { %v1240_v17 = vadd.f32 %v1239_v38, %v1161_v33  ;;  %v1241_v47 = vpop.f32.mrb[7].mxu1  ;;  %v1564_v33 = vstv %s1560_s14 }
 0x2fd   :  { %v1242_v40 = vadd.f32 %v1241_v47, %v1165_v37 }
 0x2fe   :  { %1314 = vst [vmem:[#allocation3] sm:$0xff] %v1240_v17 }
 0x2ff   :  { %1315 = vst [vmem:[#allocation3 + $0x8] sm:$0xff] %v1242_v40 }
 0x31b   :  { %v1310_v42 = vpop.f32.mrb[8].mxu1 }
 0x31c   :  { %v1311_v60 = vadd.f32 %v1310_v42, %v1169_v41  ;;  %v3435_v45 = vpop.f32.mrb[9].mxu1 }
 0x31e   :  { %1316 = vst [vmem:[#allocation3 + $0x10] sm:$0xff] %v1311_v60 }
 0x325   :  { %v1365_v30 = vld [vmem:[#allocation3] ss:$8 sm:$0x7] }
 0x33b   :  { %v1432_v11 = vpop.f32.mrb[10].mxu1 }
 0x33c   :  { %v1434_v43 = vpop.f32.mrb[11].mxu1 }
 0x33d   :  { %v1510_v9 = vcombine.low %v1432_v11, %v1434_v43  ;;  %v1569_v11 = vld [vmem:[#allocation3 + $0x1] ss:$8 sm:$0x7] }
 0x33f   :  { %v1517_v50 = vrot.slane %v1510_v9, %v6375_v0 }
 0x341   :  { %v1525_v53 = vcombine.low %v1517_v50, %v1524_v16 }
 0x343   :  { %v1532_v59 = vrot.slane %v1525_v53, %v6375_v0 }
 0x345   :  { %v1534_v31 = vadd.f32 %v1532_v59, %v1365_v30 }
 0x347   :  { %v3101_v29 = vmul.f32 -1.442695, %v1534_v31  ;;  %v1542_v63 = vrot.slane %v1534_v31, 1  ;;  %v1550_v57 = vrot.slane %v1534_v31, 2 }
 0x349   :  { %4637 = vpow2.f32 %v3101_v29  ;;  %v3102_v3 = vmul.f32 -1.442695, %v1542_v63 }
 0x34b   :  { %4639 = vpow2.f32 %v3102_v3 }
 0x353   :  { %v4638_v52 = vpop.eup %4637 }
 0x354   :  { %v1538_v5 = vadd.f32 1.0, %v4638_v52 }
 0x355   :  { %v4640_v7 = vpop.eup %4639 }
 0x356   :  { %4641 = vrcp.f32 %v1538_v5  ;;  %v1547_v8 = vadd.f32 1.0, %v4640_v7 }
 0x357   :  { %4643 = vtanh.f32 %v1550_v57 }
 0x358   :  { %4645 = vrcp.f32 %v1547_v8  ;;  %v1765_v8 = vstv %s6425_s5 }
 0x359   :  { %vm1766_vm2 = vcmp.eq.s32.totalorder %v1765_v8, 1 }
 0x360   :  { %v4642_v10 = vpop.eup %4641 }
 0x361   :  { %v4644_v12 = vpop.eup %4643 }
 0x362   :  { %v4646_v22 = vpop.eup %4645  ;;  %v1554_v13 = vmul.f32 %v4644_v12, %v4642_v10  ;;  %v1768_v10 = vstv %s1764_s16 }
 0x363   :  { %v1553_v23 = vmul.f32 0.0, %v4646_v22 }
 0x365   :  { %v1555_v27 = vadd.f32 %v1554_v13, %v1553_v23 }
 0x367   :  { %4647 = vtanh.f32 %v1555_v27 }
 0x371   :  { %v4648_v37 = vpop.eup %4647 }
 0x372   :  { %v6386_v38 = vmul.f32 %v4648_v37, %v1564_v33  ;;  %3103 = vmatmul.mubr.msk.f32.vlgmr.msra.gmra.mrb[12].mxu1 %vm1562_vm1, %v4648_v37  ;;  %3504 = vmatmul.mubr.msk.f32.vlgmr.msra.gmra.mrb[4].mxu0 %vm1562_vm1, %v4648_v37  ;;  %v6388_v17 = vsel %vm1562_vm1, %v4648_v37, 0.0 }
 0x373   :  { %4210 = vmatpush1.bf16.msra.mxu1 %v6221_v6  ;;  %4241 = vmatpush3.bf16.msra.mxu0 %v6043_v4 }
 0x374   :  { %4212 = vmatprep.subr.bf16.mxu1 %v6224_v39  ;;  %4242 = vmatprep.subr.bf16.mxu0 %v4763_v58 }
 0x375   :  { %1838 = vmatprep.mubr.f32.mxu1 %v4762_v55  ;;  %3538 = vmatprep.mubr.msk.f32.mxu0 %vm4764_vm0, %v4762_v55 }
 0x377   :  { %4214 = vmatpush1.bf16.msra.mxu1 %v6239_v44  ;;  %4244 = vmatpush3.bf16.msra.mxu0 %v6053_v14 }
 0x378   :  { %4216 = vmatprep.subr.bf16.mxu1 %v6243_v20  ;;  %4245 = vmatprep.subr.bf16.mxu0 %v4763_v58 }
 0x37b   :  { %4218 = vmatpush1.bf16.msra.mxu1 %v6258_v51  ;;  %4247 = vmatpush3.bf16.msra.mxu0 %v6063_v21 }
 0x37c   :  { %4220 = vmatprep.subr.bf16.mxu1 %v6261_v61  ;;  %4248 = vmatprep.subr.bf16.mxu0 %v4763_v58 }
 0x37f   :  { %4222 = vmatpush1.bf16.msra.mxu1 %v6276_v35  ;;  %4250 = vmatpush3.bf16.msra.mxu0 %v6073_v24 }
 0x380   :  { %4224 = vmatprep.subr.bf16.mxu1 %v6279_v19  ;;  %4251 = vmatprep.subr.bf16.mxu0 %v4763_v58 }
 0x383   :  { %4226 = vmatpush1.bf16.msra.mxu1 %v6294_v56  ;;  %4253 = vmatpush3.bf16.msra.mxu0 %v6083_v26 }
 0x384   :  { %4228 = vmatprep.subr.bf16.mxu1 %v6297_v62  ;;  %4254 = vmatprep.subr.bf16.mxu0 %v4763_v58 }
 0x387   :  { %4230 = vmatpush1.bf16.msra.mxu1 %v6312_v2  ;;  %4256 = vmatpush3.bf16.msra.mxu0 %v6093_v32 }
 0x388   :  { %4232 = vmatprep.subr.bf16.mxu1 %v6315_v1  ;;  %4257 = vmatprep.subr.bf16.mxu0 %v4763_v58 }
 0x38b   :  { %4234 = vmatpush1.bf16.msra.mxu1 %v6330_v15  ;;  %4259 = vmatpush3.bf16.msra.mxu0 %v6103_v36 }
 0x38c   :  { %4236 = vmatprep.subr.bf16.mxu1 %v6333_v18  ;;  %4260 = vmatprep.subr.bf16.mxu0 %v4763_v58 }
 0x38f   :  { %4238 = vmatpush1.bf16.msra.mxu1 %v6342_v25  ;;  %4262 = vmatpush3.bf16.msra.mxu0 %v6113_v54 }
 0x390   :  { %4264 = vmatprep.subr.bf16.mxu1 %v6207_v34  ;;  %4295 = vmatprep.subr.bf16.mxu0 %v4763_v58 }
 0x445   :  { %v1636_v47 = vpop.f32.mrb[12].mxu1  ;;  %v1707_v40 = vpop.f32.mrb[4].mxu0 }
 0x446   :  { %v1638_v41 = vpop.f32.mrb[13].mxu1  ;;  %v3505_v42 = vpop.f32.mrb[5].mxu0  ;;  %v1728_v45 = vrot.slane %v1707_v40, %v6375_v0 }
 0x447   :  { %v1714_v60 = vcombine.low %v1636_v47, %v1638_v41  ;;  %v1773_v42 = vld [vmem:[#allocation3 + $0x2] ss:$8 sm:$0x7] }
 0x449   :  { %v1721_v46 = vrot.slane %v1714_v60, %v6375_v0 }
 0x44b   :  { %v1729_v48 = vcombine.low %v1721_v46, %v1728_v45 }
 0x44d   :  { %v1736_v49 = vrot.slane %v1729_v48, %v6375_v0 }
 0x44f   :  { %v1738_v43 = vadd.f32 %v1736_v49, %v1569_v11 }
 0x451   :  { %v3105_v9 = vmul.f32 -1.442695, %v1738_v43  ;;  %v1746_v16 = vrot.slane %v1738_v43, 1  ;;  %v1754_v59 = vrot.slane %v1738_v43, 2 }
 0x453   :  { %4649 = vpow2.f32 %v3105_v9  ;;  %v3106_v50 = vmul.f32 -1.442695, %v1746_v16 }
 0x455   :  { %4651 = vpow2.f32 %v3106_v50 }
 0x45d   :  { %v4650_v53 = vpop.eup %4649 }
 0x45e   :  { %v1742_v30 = vadd.f32 1.0, %v4650_v53 }
 0x45f   :  { %v4652_v31 = vpop.eup %4651 }
 0x460   :  { %4653 = vrcp.f32 %v1742_v30  ;;  %v1751_v29 = vadd.f32 1.0, %v4652_v31 }
 0x461   :  { %4655 = vtanh.f32 %v1754_v59 }
 0x462   :  { %4657 = vrcp.f32 %v1751_v29 }
 0x46a   :  { %v4654_v63 = vpop.eup %4653 }
 0x46b   :  { %v4656_v3 = vpop.eup %4655 }
 0x46c   :  { %v4658_v52 = vpop.eup %4657  ;;  %v1758_v5 = vmul.f32 %v4656_v3, %v4654_v63  ;;  %v1969_v63 = vstv %s6484_s18  ;;  %v1972_v3 = vstv %s1968_s19 }
 0x46d   :  { %v1757_v57 = vmul.f32 %v4658_v52, %v6388_v17  ;;  %vm1970_vm3 = vcmp.eq.s32.totalorder %v1969_v63, 1 }
 0x46f   :  { %v1759_v7 = vadd.f32 %v1758_v5, %v1757_v57 }
 0x471   :  { %4659 = vtanh.f32 %v1759_v7 }
 0x47b   :  { %v4660_v12 = vpop.eup %4659 }
 0x47c   :  { %v6442_v22 = vsel %vm1766_vm2, %v4660_v12, %v6388_v17  ;;  %v1769_v23 = vmul.f32 %v4660_v12, %v1768_v10 }
 0x47d   :  { %1839 = vmatmul.mubr.f32.vlgmr.msra.gmra.mrb[14].mxu1 %v6442_v22  ;;  %3539 = vmatmul.mubr.f32.vlgmr.msra.gmra.mrb[6].mxu0 %v6442_v22 }
 0x47e   :  { %v6447_v13 = vadd.f32 %v1769_v23, %v6386_v38  ;;  %4266 = vmatpush1.bf16.msra.mxu1 %v6221_v6  ;;  %4297 = vmatpush3.bf16.msra.mxu0 %v6043_v4 }
 0x47f   :  { %4268 = vmatprep.subr.bf16.mxu1 %v6224_v39  ;;  %4298 = vmatprep.subr.bf16.mxu0 %v4763_v58 }
 0x480   :  { %2042 = vmatprep.mubr.f32.mxu1 %v4762_v55  ;;  %3573 = vmatprep.mubr.msk.f32.mxu0 %vm4764_vm0, %v4762_v55 }
 0x482   :  { %4270 = vmatpush1.bf16.msra.mxu1 %v6239_v44  ;;  %4300 = vmatpush3.bf16.msra.mxu0 %v6053_v14 }
 0x483   :  { %4272 = vmatprep.subr.bf16.mxu1 %v6243_v20  ;;  %4301 = vmatprep.subr.bf16.mxu0 %v4763_v58 }
 0x486   :  { %4274 = vmatpush1.bf16.msra.mxu1 %v6258_v51  ;;  %4303 = vmatpush3.bf16.msra.mxu0 %v6063_v21 }
 0x487   :  { %4276 = vmatprep.subr.bf16.mxu1 %v6261_v61  ;;  %4304 = vmatprep.subr.bf16.mxu0 %v4763_v58 }
 0x48a   :  { %4278 = vmatpush1.bf16.msra.mxu1 %v6276_v35  ;;  %4306 = vmatpush3.bf16.msra.mxu0 %v6073_v24 }
 0x48b   :  { %4280 = vmatprep.subr.bf16.mxu1 %v6279_v19  ;;  %4307 = vmatprep.subr.bf16.mxu0 %v4763_v58 }
 0x48e   :  { %4282 = vmatpush1.bf16.msra.mxu1 %v6294_v56  ;;  %4309 = vmatpush3.bf16.msra.mxu0 %v6083_v26 }
 0x48f   :  { %4284 = vmatprep.subr.bf16.mxu1 %v6297_v62  ;;  %4310 = vmatprep.subr.bf16.mxu0 %v4763_v58 }
 0x492   :  { %4286 = vmatpush1.bf16.msra.mxu1 %v6312_v2  ;;  %4312 = vmatpush3.bf16.msra.mxu0 %v6093_v32 }
 0x493   :  { %4288 = vmatprep.subr.bf16.mxu1 %v6315_v1  ;;  %4313 = vmatprep.subr.bf16.mxu0 %v4763_v58 }
 0x496   :  { %4290 = vmatpush1.bf16.msra.mxu1 %v6330_v15  ;;  %4315 = vmatpush3.bf16.msra.mxu0 %v6103_v36 }
 0x497   :  { %4292 = vmatprep.subr.bf16.mxu1 %v6333_v18  ;;  %4316 = vmatprep.subr.bf16.mxu0 %v4763_v58 }
 0x49a   :  { %4294 = vmatpush1.bf16.msra.mxu1 %v6342_v25  ;;  %4318 = vmatpush3.bf16.msra.mxu0 %v6113_v54 }
 0x49b   :  { %4320 = vmatprep.subr.bf16.mxu1 %v6207_v34  ;;  %4351 = vmatprep.subr.bf16.mxu0 %v4763_v58 }
 0x550   :  { %v1840_v27 = vpop.f32.mrb[14].mxu1  ;;  %v1911_v28 = vpop.f32.mrb[6].mxu0 }
 0x551   :  { %v1842_v33 = vpop.f32.mrb[15].mxu1  ;;  %v3540_v37 = vpop.f32.mrb[7].mxu0  ;;  %v1932_v17 = vrot.slane %v1911_v28, %v6375_v0 }
 0x552   :  { %v1918_v38 = vcombine.low %v1840_v27, %v1842_v33  ;;  %v1977_v37 = vld [vmem:[#allocation3 + $0x3] ss:$8 sm:$0x7] }
 0x554   :  { %v1925_v47 = vrot.slane %v1918_v38, %v6375_v0 }
 0x556   :  { %v1933_v40 = vcombine.low %v1925_v47, %v1932_v17 }
 0x558   :  { %v1940_v41 = vrot.slane %v1933_v40, %v6375_v0 }
 0x55a   :  { %v1942_v60 = vadd.f32 %v1940_v41, %v1773_v42 }
 0x55c   :  { %v3108_v45 = vmul.f32 -1.442695, %v1942_v60  ;;  %v1950_v46 = vrot.slane %v1942_v60, 1  ;;  %v1958_v11 = vrot.slane %v1942_v60, 2 }
 0x55e   :  { %4661 = vpow2.f32 %v3108_v45  ;;  %v3109_v48 = vmul.f32 -1.442695, %v1950_v46 }
 0x560   :  { %4663 = vpow2.f32 %v3109_v48 }
 0x568   :  { %v4662_v49 = vpop.eup %4661 }
 0x569   :  { %v1946_v43 = vadd.f32 1.0, %v4662_v49 }
 0x56a   :  { %v4664_v9 = vpop.eup %4663 }
 0x56b   :  { %4665 = vrcp.f32 %v1946_v43  ;;  %v1955_v16 = vadd.f32 1.0, %v4664_v9 }
 0x56c   :  { %4667 = vtanh.f32 %v1958_v11 }
 0x56d   :  { %4669 = vrcp.f32 %v1955_v16 }
 0x575   :  { %v4666_v50 = vpop.eup %4665 }
 0x576   :  { %v4668_v53 = vpop.eup %4667 }
 0x577   :  { %v4670_v59 = vpop.eup %4669  ;;  %v1962_v30 = vmul.f32 %v4668_v53, %v4666_v50  ;;  %v2173_v50 = vstv %s6542_s22  ;;  %v2176_v53 = vstv %s2172_s23 }
 0x578   :  { %v1961_v31 = vmul.f32 %v4670_v59, %v6442_v22  ;;  %vm2174_vm4 = vcmp.eq.s32.totalorder %v2173_v50, 1 }
 0x57a   :  { %v1963_v29 = vadd.f32 %v1962_v30, %v1961_v31 }
 0x57c   :  { %4671 = vtanh.f32 %v1963_v29 }
 0x586   :  { %v4672_v52 = vpop.eup %4671 }
 0x587   :  { %v6500_v57 = vsel %vm1970_vm3, %v4672_v52, %v6442_v22  ;;  %v1973_v5 = vmul.f32 %v4672_v52, %v1972_v3 }
 0x588   :  { %2043 = vmatmul.mubr.f32.vlgmr.msra.gmra.mrb[16].mxu1 %v6500_v57  ;;  %3574 = vmatmul.mubr.f32.vlgmr.msra.gmra.mrb[8].mxu0 %v6500_v57 }
 0x589   :  { %v6505_v7 = vadd.f32 %v1973_v5, %v6447_v13  ;;  %4322 = vmatpush1.bf16.msra.mxu1 %v6221_v6  ;;  %4353 = vmatpush3.bf16.msra.mxu0 %v6043_v4 }
 0x58a   :  { %4324 = vmatprep.subr.bf16.mxu1 %v6224_v39  ;;  %4354 = vmatprep.subr.bf16.mxu0 %v4763_v58 }
 0x58b   :  { %2246 = vmatprep.mubr.f32.mxu1 %v4762_v55  ;;  %3608 = vmatprep.mubr.msk.f32.mxu0 %vm4764_vm0, %v4762_v55 }
 0x58d   :  { %4326 = vmatpush1.bf16.msra.mxu1 %v6239_v44  ;;  %4356 = vmatpush3.bf16.msra.mxu0 %v6053_v14 }
 0x58e   :  { %4328 = vmatprep.subr.bf16.mxu1 %v6243_v20  ;;  %4357 = vmatprep.subr.bf16.mxu0 %v4763_v58 }
 0x591   :  { %4330 = vmatpush1.bf16.msra.mxu1 %v6258_v51  ;;  %4359 = vmatpush3.bf16.msra.mxu0 %v6063_v21 }
 0x592   :  { %4332 = vmatprep.subr.bf16.mxu1 %v6261_v61  ;;  %4360 = vmatprep.subr.bf16.mxu0 %v4763_v58 }
 0x595   :  { %4334 = vmatpush1.bf16.msra.mxu1 %v6276_v35  ;;  %4362 = vmatpush3.bf16.msra.mxu0 %v6073_v24 }
 0x596   :  { %4336 = vmatprep.subr.bf16.mxu1 %v6279_v19  ;;  %4363 = vmatprep.subr.bf16.mxu0 %v4763_v58 }
 0x599   :  { %4338 = vmatpush1.bf16.msra.mxu1 %v6294_v56  ;;  %4365 = vmatpush3.bf16.msra.mxu0 %v6083_v26 }
 0x59a   :  { %4340 = vmatprep.subr.bf16.mxu1 %v6297_v62  ;;  %4366 = vmatprep.subr.bf16.mxu0 %v4763_v58 }
 0x59d   :  { %4342 = vmatpush1.bf16.msra.mxu1 %v6312_v2  ;;  %4368 = vmatpush3.bf16.msra.mxu0 %v6093_v32 }
 0x59e   :  { %4344 = vmatprep.subr.bf16.mxu1 %v6315_v1  ;;  %4369 = vmatprep.subr.bf16.mxu0 %v4763_v58 }
 0x5a1   :  { %4346 = vmatpush1.bf16.msra.mxu1 %v6330_v15  ;;  %4371 = vmatpush3.bf16.msra.mxu0 %v6103_v36 }
 0x5a2   :  { %4348 = vmatprep.subr.bf16.mxu1 %v6333_v18  ;;  %4372 = vmatprep.subr.bf16.mxu0 %v4763_v58 }
 0x5a5   :  { %4350 = vmatpush1.bf16.msra.mxu1 %v6342_v25  ;;  %4374 = vmatpush3.bf16.msra.mxu0 %v6113_v54 }
 0x5a6   :  { %4376 = vmatprep.subr.bf16.mxu1 %v6207_v34  ;;  %4407 = vmatprep.subr.bf16.mxu0 %v4763_v58 }
 0x65b   :  { %v2044_v8 = vpop.f32.mrb[16].mxu1  ;;  %v2115_v10 = vpop.f32.mrb[8].mxu0 }
 0x65c   :  { %v2046_v12 = vpop.f32.mrb[17].mxu1  ;;  %v3575_v22 = vpop.f32.mrb[9].mxu0  ;;  %v2136_v13 = vrot.slane %v2115_v10, %v6375_v0 }
 0x65d   :  { %v2122_v23 = vcombine.low %v2044_v8, %v2046_v12  ;;  %v2181_v22 = vld [vmem:[#allocation3 + $0x4] ss:$8 sm:$0x7] }
 0x65f   :  { %v2129_v27 = vrot.slane %v2122_v23, %v6375_v0 }
 0x661   :  { %v2137_v28 = vcombine.low %v2129_v27, %v2136_v13 }
 0x663   :  { %v2144_v33 = vrot.slane %v2137_v28, %v6375_v0 }
 0x665   :  { %v2146_v38 = vadd.f32 %v2144_v33, %v1977_v37 }
 0x667   :  { %v3111_v17 = vmul.f32 -1.442695, %v2146_v38  ;;  %v2154_v47 = vrot.slane %v2146_v38, 1  ;;  %v2162_v42 = vrot.slane %v2146_v38, 2 }
 0x669   :  { %4673 = vpow2.f32 %v3111_v17  ;;  %v3112_v40 = vmul.f32 -1.442695, %v2154_v47 }
 0x66b   :  { %4675 = vpow2.f32 %v3112_v40 }
 0x673   :  { %v4674_v41 = vpop.eup %4673 }
 0x674   :  { %v2150_v60 = vadd.f32 1.0, %v4674_v41 }
 0x675   :  { %v4676_v45 = vpop.eup %4675 }
 0x676   :  { %4677 = vrcp.f32 %v2150_v60  ;;  %v2159_v46 = vadd.f32 1.0, %v4676_v45 }
 0x677   :  { %4679 = vtanh.f32 %v2162_v42 }
 0x678   :  { %4681 = vrcp.f32 %v2159_v46 }
 0x680   :  { %v4678_v48 = vpop.eup %4677 }
 0x681   :  { %v4680_v49 = vpop.eup %4679 }
 0x682   :  { %v4682_v11 = vpop.eup %4681  ;;  %v2166_v43 = vmul.f32 %v4680_v49, %v4678_v48  ;;  %v2377_v48 = vstv %s6600_s24  ;;  %v2380_v49 = vstv %s2376_s0 }
 0x683   :  { %v2165_v9 = vmul.f32 %v4682_v11, %v6500_v57  ;;  %vm2378_vm5 = vcmp.eq.s32.totalorder %v2377_v48, 1 }
 0x685   :  { %v2167_v16 = vadd.f32 %v2166_v43, %v2165_v9 }
 0x687   :  { %4683 = vtanh.f32 %v2167_v16 }
 0x691   :  { %v4684_v59 = vpop.eup %4683 }
 0x692   :  { %v6558_v30 = vsel %vm2174_vm4, %v4684_v59, %v6500_v57  ;;  %v2177_v31 = vmul.f32 %v4684_v59, %v2176_v53 }
 0x693   :  { %2247 = vmatmul.mubr.f32.vlgmr.msra.gmra.mrb[18].mxu1 %v6558_v30  ;;  %3609 = vmatmul.mubr.f32.vlgmr.msra.gmra.mrb[10].mxu0 %v6558_v30 }
 0x694   :  { %v6563_v29 = vadd.f32 %v2177_v31, %v6505_v7  ;;  %4378 = vmatpush1.bf16.msra.mxu1 %v6221_v6  ;;  %4409 = vmatpush3.bf16.msra.mxu0 %v6043_v4 }
 0x695   :  { %4380 = vmatprep.subr.bf16.mxu1 %v6224_v39  ;;  %4410 = vmatprep.subr.bf16.mxu0 %v4763_v58 }
 0x696   :  { %2450 = vmatprep.mubr.f32.mxu1 %v4762_v55  ;;  %3643 = vmatprep.mubr.msk.f32.mxu0 %vm4764_vm0, %v4762_v55 }
 0x698   :  { %4382 = vmatpush1.bf16.msra.mxu1 %v6239_v44  ;;  %4412 = vmatpush3.bf16.msra.mxu0 %v6053_v14 }
 0x699   :  { %4384 = vmatprep.subr.bf16.mxu1 %v6243_v20  ;;  %4413 = vmatprep.subr.bf16.mxu0 %v4763_v58 }
 0x69c   :  { %4386 = vmatpush1.bf16.msra.mxu1 %v6258_v51  ;;  %4415 = vmatpush3.bf16.msra.mxu0 %v6063_v21 }
 0x69d   :  { %4388 = vmatprep.subr.bf16.mxu1 %v6261_v61  ;;  %4416 = vmatprep.subr.bf16.mxu0 %v4763_v58 }
 0x6a0   :  { %4390 = vmatpush1.bf16.msra.mxu1 %v6276_v35  ;;  %4418 = vmatpush3.bf16.msra.mxu0 %v6073_v24 }
 0x6a1   :  { %4392 = vmatprep.subr.bf16.mxu1 %v6279_v19  ;;  %4419 = vmatprep.subr.bf16.mxu0 %v4763_v58 }
 0x6a4   :  { %4394 = vmatpush1.bf16.msra.mxu1 %v6294_v56  ;;  %4421 = vmatpush3.bf16.msra.mxu0 %v6083_v26 }
 0x6a5   :  { %4396 = vmatprep.subr.bf16.mxu1 %v6297_v62  ;;  %4422 = vmatprep.subr.bf16.mxu0 %v4763_v58 }
 0x6a8   :  { %4398 = vmatpush1.bf16.msra.mxu1 %v6312_v2  ;;  %4424 = vmatpush3.bf16.msra.mxu0 %v6093_v32 }
 0x6a9   :  { %4400 = vmatprep.subr.bf16.mxu1 %v6315_v1  ;;  %4425 = vmatprep.subr.bf16.mxu0 %v4763_v58 }
 0x6ac   :  { %4402 = vmatpush1.bf16.msra.mxu1 %v6330_v15  ;;  %4427 = vmatpush3.bf16.msra.mxu0 %v6103_v36 }
 0x6ad   :  { %4404 = vmatprep.subr.bf16.mxu1 %v6333_v18  ;;  %4428 = vmatprep.subr.bf16.mxu0 %v4763_v58 }
 0x6b0   :  { %4406 = vmatpush1.bf16.msra.mxu1 %v6342_v25  ;;  %4430 = vmatpush3.bf16.msra.mxu0 %v6113_v54 }
 0x6b1   :  { %4432 = vmatprep.subr.bf16.mxu1 %v6207_v34  ;;  %4463 = vmatprep.subr.bf16.mxu0 %v4763_v58 }
 0x766   :  { %v2248_v63 = vpop.f32.mrb[18].mxu1  ;;  %v2319_v3 = vpop.f32.mrb[10].mxu0 }
 0x767   :  { %v2250_v52 = vpop.f32.mrb[19].mxu1  ;;  %v3610_v57 = vpop.f32.mrb[11].mxu0  ;;  %v2340_v7 = vrot.slane %v2319_v3, %v6375_v0 }
 0x768   :  { %v2326_v5 = vcombine.low %v2248_v63, %v2250_v52  ;;  %v2385_v52 = vld [vmem:[#allocation3 + $0x5] ss:$8 sm:$0x7] }
 0x76a   :  { %v2333_v8 = vrot.slane %v2326_v5, %v6375_v0 }
 0x76c   :  { %v2341_v10 = vcombine.low %v2333_v8, %v2340_v7 }
 0x76e   :  { %v2348_v12 = vrot.slane %v2341_v10, %v6375_v0 }
 0x770   :  { %v2350_v23 = vadd.f32 %v2348_v12, %v2181_v22 }
 0x772   :  { %v3114_v13 = vmul.f32 -1.442695, %v2350_v23  ;;  %v2358_v27 = vrot.slane %v2350_v23, 1  ;;  %v2366_v37 = vrot.slane %v2350_v23, 2 }
 0x774   :  { %4685 = vpow2.f32 %v3114_v13  ;;  %v3115_v28 = vmul.f32 -1.442695, %v2358_v27 }
 0x776   :  { %4687 = vpow2.f32 %v3115_v28 }
 0x77e   :  { %v4686_v33 = vpop.eup %4685 }
 0x77f   :  { %v2354_v38 = vadd.f32 1.0, %v4686_v33 }
 0x780   :  { %v4688_v17 = vpop.eup %4687 }
 0x781   :  { %4689 = vrcp.f32 %v2354_v38  ;;  %v2363_v47 = vadd.f32 1.0, %v4688_v17 }
 0x782   :  { %4691 = vtanh.f32 %v2366_v37 }
 0x783   :  { %4693 = vrcp.f32 %v2363_v47  ;;  %v2581_v47 = vstv %s6658_s2 }
 0x784   :  { %vm2582_vm6 = vcmp.eq.s32.totalorder %v2581_v47, 1 }
 0x78b   :  { %v4690_v40 = vpop.eup %4689 }
 0x78c   :  { %v4692_v41 = vpop.eup %4691 }
 0x78d   :  { %v4694_v42 = vpop.eup %4693  ;;  %v2370_v60 = vmul.f32 %v4692_v41, %v4690_v40  ;;  %v2584_v40 = vstv %s2580_s6 }
 0x78e   :  { %v2369_v45 = vmul.f32 %v4694_v42, %v6558_v30 }
 0x790   :  { %v2371_v46 = vadd.f32 %v2370_v60, %v2369_v45 }
 0x792   :  { %4695 = vtanh.f32 %v2371_v46 }
 0x79c   :  { %v4696_v11 = vpop.eup %4695 }
 0x79d   :  { %v6616_v43 = vsel %vm2378_vm5, %v4696_v11, %v6558_v30  ;;  %v2381_v9 = vmul.f32 %v4696_v11, %v2380_v49  ;;  %v2785_v49 = vstv %s6715_s29  ;;  %v2788_v11 = vstv %s2784_s30 }
 0x79e   :  { %2451 = vmatmul.mubr.f32.vlgmr.msra.gmra.mrb[20].mxu1 %v6616_v43  ;;  %3644 = vmatmul.mubr.f32.vlgmr.msra.gmra.mrb[12].mxu0 %v6616_v43  ;;  %vm2786_vm7 = vcmp.eq.s32.totalorder %v2785_v49, 1 }
 0x79f   :  { %v6621_v16 = vadd.f32 %v2381_v9, %v6563_v29  ;;  %4434 = vmatpush1.bf16.msra.mxu1 %v6221_v6  ;;  %4465 = vmatpush3.bf16.msra.mxu0 %v6043_v4 }
 0x7a0   :  { %4436 = vmatprep.subr.bf16.mxu1 %v6224_v39  ;;  %4466 = vmatprep.subr.bf16.mxu0 %v4763_v58 }
 0x7a1   :  { %2654 = vmatprep.mubr.f32.mxu1 %v4762_v55  ;;  %3678 = vmatprep.mubr.msk.f32.mxu0 %vm4764_vm0, %v4762_v55 }
 0x7a3   :  { %4438 = vmatpush1.bf16.msra.mxu1 %v6239_v44  ;;  %4468 = vmatpush3.bf16.msra.mxu0 %v6053_v14 }
 0x7a4   :  { %4440 = vmatprep.subr.bf16.mxu1 %v6243_v20  ;;  %4469 = vmatprep.subr.bf16.mxu0 %v4763_v58 }
 0x7a7   :  { %4442 = vmatpush1.bf16.msra.mxu1 %v6258_v51  ;;  %4471 = vmatpush3.bf16.msra.mxu0 %v6063_v21 }
 0x7a8   :  { %4444 = vmatprep.subr.bf16.mxu1 %v6261_v61  ;;  %4472 = vmatprep.subr.bf16.mxu0 %v4763_v58 }
 0x7ab   :  { %4446 = vmatpush1.bf16.msra.mxu1 %v6276_v35  ;;  %4474 = vmatpush3.bf16.msra.mxu0 %v6073_v24 }
 0x7ac   :  { %4448 = vmatprep.subr.bf16.mxu1 %v6279_v19  ;;  %4475 = vmatprep.subr.bf16.mxu0 %v4763_v58 }
 0x7af   :  { %4450 = vmatpush1.bf16.msra.mxu1 %v6294_v56  ;;  %4477 = vmatpush3.bf16.msra.mxu0 %v6083_v26 }
 0x7b0   :  { %4452 = vmatprep.subr.bf16.mxu1 %v6297_v62  ;;  %4478 = vmatprep.subr.bf16.mxu0 %v4763_v58 }
 0x7b3   :  { %4454 = vmatpush1.bf16.msra.mxu1 %v6312_v2  ;;  %4480 = vmatpush3.bf16.msra.mxu0 %v6093_v32 }
 0x7b4   :  { %4456 = vmatprep.subr.bf16.mxu1 %v6315_v1  ;;  %4481 = vmatprep.subr.bf16.mxu0 %v4763_v58 }
 0x7b7   :  { %4458 = vmatpush1.bf16.msra.mxu1 %v6330_v15  ;;  %4483 = vmatpush3.bf16.msra.mxu0 %v6103_v36 }
 0x7b8   :  { %4460 = vmatprep.subr.bf16.mxu1 %v6333_v18  ;;  %4484 = vmatprep.subr.bf16.mxu0 %v4763_v58 }
 0x7bb   :  { %4462 = vmatpush1.bf16.msra.mxu1 %v6342_v25  ;;  %4486 = vmatpush3.bf16.msra.mxu0 %v6113_v54 }
 0x7bc   :  { %4488 = vmatprep.subr.bf16.mxu1 %v6207_v34  ;;  %4519 = vmatprep.subr.bf16.mxu0 %v4763_v58 }
 0x871   :  { %v2452_v50 = vpop.f32.mrb[20].mxu1  ;;  %v2523_v53 = vpop.f32.mrb[12].mxu0 }
 0x872   :  { %v2454_v59 = vpop.f32.mrb[21].mxu1  ;;  %v3645_v30 = vpop.f32.mrb[13].mxu0  ;;  %v2544_v29 = vrot.slane %v2523_v53, %v6375_v0  ;;  %v2997_v53 = vld [vmem:[%s6816_s9] sm:$0xff] }
 0x873   :  { %v2530_v31 = vcombine.low %v2452_v50, %v2454_v59  ;;  %v2998_v59 = vld [vmem:[%s6816_s9 + $0x8] sm:$0xff] }
 0x874   :  { %v4544_v30 = vpack.c.bf16 %v2998_v59, %v2997_v53 }
 0x875   :  { %v2537_v34 = vrot.slane %v2530_v31, %v6375_v0  ;;  %v2999_v31 = vld [vmem:[%s6816_s9 + $0x10] sm:$0xff] }
 0x877   :  { %v2545_v63 = vcombine.low %v2537_v34, %v2544_v29  ;;  %v3001_v34 = vld [vmem:[%s6816_s9 + $0x20] sm:$0xff] }
 0x879   :  { %v2552_v3 = vrot.slane %v2545_v63, %v6375_v0  ;;  %v3002_v63 = vld [vmem:[%s6816_s9 + $0x28] sm:$0xff] }
 0x87b   :  { %v2554_v57 = vadd.f32 %v2552_v3, %v2385_v52  ;;  %v3003_v3 = vld [vmem:[%s6816_s9 + $0x30] sm:$0xff]  ;;  %v4550_v52 = vpack.c.bf16 %v3002_v63, %v3001_v34 }
 0x87d   :  { %v3117_v5 = vmul.f32 -1.442695, %v2554_v57  ;;  %v2562_v7 = vrot.slane %v2554_v57, 1  ;;  %v2570_v12 = vrot.slane %v2554_v57, 2  ;;  %v3004_v57 = vld [vmem:[%s6816_s9 + $0x38] sm:$0xff] }
 0x87f   :  { %4697 = vpow2.f32 %v3117_v5  ;;  %v3118_v8 = vmul.f32 -1.442695, %v2562_v7  ;;  %v4553_v5 = vpack.c.bf16 %v3004_v57, %v3003_v3  ;;  %v3005_v7 = vld [vmem:[%s6816_s9 + $0x40] sm:$0xff] }
 0x881   :  { %4699 = vpow2.f32 %v3118_v8  ;;  %v3006_v8 = vld [vmem:[%s6816_s9 + $0x48] sm:$0xff] }
 0x889   :  { %v4698_v10 = vpop.eup %4697 }
 0x88a   :  { %v2558_v22 = vadd.f32 1.0, %v4698_v10  ;;  %v4556_v10 = vpack.c.bf16 %v3006_v8, %v3005_v7 }
 0x88b   :  { %v4700_v23 = vpop.eup %4699 }
 0x88c   :  { %4701 = vrcp.f32 %v2558_v22  ;;  %v2567_v13 = vadd.f32 1.0, %v4700_v23  ;;  %v3008_v22 = vld [vmem:[%s6816_s9 + $0x58] sm:$0xff] }
 0x88d   :  { %4703 = vtanh.f32 %v2570_v12  ;;  %v3007_v12 = vld [vmem:[%s6816_s9 + $0x50] sm:$0xff] }
 0x88e   :  { %4705 = vrcp.f32 %v2567_v13  ;;  %v4559_v23 = vpack.c.bf16 %v3008_v22, %v3007_v12  ;;  %v3009_v13 = vld [vmem:[%s6816_s9 + $0x60] sm:$0xff] }
 0x896   :  { %v4702_v27 = vpop.eup %4701 }
 0x897   :  { %v4704_v28 = vpop.eup %4703 }
 0x898   :  { %v4706_v33 = vpop.eup %4705  ;;  %v2574_v37 = vmul.f32 %v4704_v28, %v4702_v27  ;;  %v3010_v27 = vld [vmem:[%s6816_s9 + $0x68] sm:$0xff] }
 0x899   :  { %v2573_v38 = vmul.f32 %v4706_v33, %v6616_v43  ;;  %v4562_v28 = vpack.c.bf16 %v3010_v27, %v3009_v13  ;;  %v3011_v33 = vld [vmem:[%s6816_s9 + $0x70] sm:$0xff] }
 0x89b   :  { %v2575_v17 = vadd.f32 %v2574_v37, %v2573_v38  ;;  %v3012_v37 = vld [vmem:[%s6816_s9 + $0x78] sm:$0xff] }
 0x89c   :  { %v4565_v38 = vpack.c.bf16 %v3012_v37, %v3011_v33 }
 0x89d   :  { %4707 = vtanh.f32 %v2575_v17 }
 0x8a7   :  { %v4708_v41 = vpop.eup %4707 }
 0x8a8   :  { %v6674_v42 = vsel %vm2582_vm6, %v4708_v41, %v6616_v43  ;;  %v2585_v60 = vmul.f32 %v4708_v41, %v2584_v40 }
 0x8a9   :  { %2655 = vmatmul.mubr.f32.vlgmr.msra.gmra.mrb[22].mxu1 %v6674_v42  ;;  %3679 = vmatmul.mubr.f32.vlgmr.msra.gmra.mrb[14].mxu0 %v6674_v42 }
 0x8aa   :  { %4490 = vmatpush1.bf16.msra.mxu1 %v6221_v6  ;;  %4521 = vmatpush3.bf16.msra.mxu0 %v6043_v4  ;;  %v6681_v45 = vadd.f32 %v2585_v60, %v6621_v16 }
 0x8ab   :  { %4492 = vmatprep.subr.bf16.mxu1 %v6224_v39  ;;  %4522 = vmatprep.subr.bf16.mxu0 %v4763_v58  ;;  %v2589_v39 = vld [vmem:[#allocation3 + $0x6] ss:$8 sm:$0x7] }
 0x8ac   :  { %2858 = vmatprep.mubr.f32.mxu1 %v4762_v55  ;;  %3713 = vmatprep.mubr.msk.f32.mxu0 %vm4764_vm0, %v4762_v55 }
 0x8ae   :  { %4494 = vmatpush1.bf16.msra.mxu1 %v6239_v44  ;;  %4524 = vmatpush3.bf16.msra.mxu0 %v6053_v14 }
 0x8af   :  { %4496 = vmatprep.subr.bf16.mxu1 %v6243_v20  ;;  %4525 = vmatprep.subr.bf16.mxu0 %v4763_v58 }
 0x8b2   :  { %4498 = vmatpush1.bf16.msra.mxu1 %v6258_v51  ;;  %4527 = vmatpush3.bf16.msra.mxu0 %v6063_v21 }
 0x8b3   :  { %4500 = vmatprep.subr.bf16.mxu1 %v6261_v61  ;;  %4528 = vmatprep.subr.bf16.mxu0 %v4763_v58 }
 0x8b6   :  { %4502 = vmatpush1.bf16.msra.mxu1 %v6276_v35  ;;  %4530 = vmatpush3.bf16.msra.mxu0 %v6073_v24 }
 0x8b7   :  { %4504 = vmatprep.subr.bf16.mxu1 %v6279_v19  ;;  %4531 = vmatprep.subr.bf16.mxu0 %v4763_v58 }
 0x8ba   :  { %4506 = vmatpush1.bf16.msra.mxu1 %v6294_v56  ;;  %4533 = vmatpush3.bf16.msra.mxu0 %v6083_v26 }
 0x8bb   :  { %4508 = vmatprep.subr.bf16.mxu1 %v6297_v62  ;;  %4534 = vmatprep.subr.bf16.mxu0 %v4763_v58 }
 0x8be   :  { %4510 = vmatpush1.bf16.msra.mxu1 %v6312_v2  ;;  %4536 = vmatpush3.bf16.msra.mxu0 %v6093_v32 }
 0x8bf   :  { %4512 = vmatprep.subr.bf16.mxu1 %v6315_v1  ;;  %4537 = vmatprep.subr.bf16.mxu0 %v4763_v58 }
 0x8c2   :  { %4514 = vmatpush1.bf16.msra.mxu1 %v6330_v15  ;;  %4539 = vmatpush3.bf16.msra.mxu0 %v6103_v36 }
 0x8c3   :  { %4516 = vmatprep.subr.bf16.mxu1 %v6333_v18  ;;  %4540 = vmatprep.subr.bf16.mxu0 %v4763_v58 }
 0x8c6   :  { %4518 = vmatpush1.bf16.msra.mxu1 %v6342_v25  ;;  %4542 = vmatpush3.bf16.msra.mxu0 %v6113_v54 }
 0x8c7   :  { %4543 = vmatprep.subr.bf16.mxu1 %v4763_v58 }
 0x97c   :  { %v2656_v4 = vpop.f32.mrb[22].mxu1  ;;  %v2727_v14 = vpop.f32.mrb[14].mxu0 }
 0x97d   :  { %v2658_v21 = vpop.f32.mrb[23].mxu1  ;;  %v3680_v24 = vpop.f32.mrb[15].mxu0  ;;  %v2748_v32 = vrot.slane %v2727_v14, %v6375_v0 }
 0x97e   :  { %v2734_v26 = vcombine.low %v2656_v4, %v2658_v21  ;;  %v2793_v21 = vld [vmem:[#allocation3 + $0x7] ss:$8 sm:$0x7] }
 0x980   :  { %v2741_v36 = vrot.slane %v2734_v26, %v6375_v0 }
 0x982   :  { %v2749_v54 = vcombine.low %v2741_v36, %v2748_v32 }
 0x984   :  { %v2756_v6 = vrot.slane %v2749_v54, %v6375_v0 }
 0x986   :  { %v2758_v44 = vadd.f32 %v2756_v6, %v2589_v39 }
 0x988   :  { %v3120_v20 = vmul.f32 -1.442695, %v2758_v44  ;;  %v2766_v51 = vrot.slane %v2758_v44, 1  ;;  %v2774_v19 = vrot.slane %v2758_v44, 2 }
 0x98a   :  { %4709 = vpow2.f32 %v3120_v20  ;;  %v3121_v61 = vmul.f32 -1.442695, %v2766_v51 }
 0x98c   :  { %4711 = vpow2.f32 %v3121_v61 }
 0x994   :  { %v4710_v35 = vpop.eup %4709 }
 0x995   :  { %v2762_v56 = vadd.f32 1.0, %v4710_v35 }
 0x996   :  { %v4712_v62 = vpop.eup %4711 }
 0x997   :  { %4713 = vrcp.f32 %v2762_v56  ;;  %v2771_v2 = vadd.f32 1.0, %v4712_v62 }
 0x998   :  { %4715 = vtanh.f32 %v2774_v19 }
 0x999   :  { %4717 = vrcp.f32 %v2771_v2 }
 0x9a1   :  { %v4714_v1 = vpop.eup %4713 }
 0x9a2   :  { %v4716_v15 = vpop.eup %4715 }
 0x9a3   :  { %v4718_v18 = vpop.eup %4717  ;;  %v2778_v25 = vmul.f32 %v4716_v15, %v4714_v1 }
 0x9a4   :  { %v2777_v46 = vmul.f32 %v4718_v18, %v6674_v42 }
 0x9a6   :  { %v2779_v48 = vadd.f32 %v2778_v25, %v2777_v46  ;;  %v3013_v46 = vld [vmem:[%s6817_s10] sm:$0x1] }
 0x9a8   :  { %4719 = vtanh.f32 %v2779_v48 }
 0x9b2   :  { %v4720_v43 = vpop.eup %4719 }
 0x9b3   :  { %v6731_v9 = vsel %vm2786_vm7, %v4720_v43, %v6674_v42  ;;  %v2789_v16 = vmul.f32 %v4720_v43, %v2788_v11 }
 0x9b4   :  { %2859 = vmatmul.mubr.f32.vlgmr.msra.gmra.mrb[24].mxu1 %v6731_v9  ;;  %3714 = vmatmul.mubr.f32.vlgmr.msra.gmra.mrb[16].mxu0 %v6731_v9 }
 0x9b5   :  { %3748 = vmatprep.mubr.msk.f32.mxu1 %vm4764_vm0, %v4762_v55  ;;  %v6738_v50 = vadd.f32 %v2789_v16, %v6681_v45  ;;  %4545 = vmatpush3.bf16.msra.mxu1 %v4544_v30  ;;  %v3000_v55 = vld [vmem:[%s6816_s9 + $0x18] sm:$0xff]  ;;  %s3125_s9 = sld [smem:[#allocation5 + $0x7]] }
 0x9b6   :  { %4546 = vmatprep.subr.bf16.mxu1 %v4763_v58  ;;  %v4547_v29 = vpack.c.bf16 %v3000_v55, %v2999_v31 }
 0x9b9   :  { %4548 = vmatpush3.bf16.msra.mxu1 %v4547_v29 }
 0x9ba   :  { %4549 = vmatprep.subr.bf16.mxu1 %v4763_v58 }
 0x9bb   :  { %p2986_p12 = scmp.gt.s32.totalorder %s3125_s9, 0 }
 0x9bd   :  { %4551 = vmatpush3.bf16.msra.mxu1 %v4550_v52  ;;  %s2987_s5 = scalar_select %p2986_p12, 1, 0 }
 0x9be   :  { %4552 = vmatprep.subr.bf16.mxu1 %v4763_v58 }
 0x9bf   :  { %s2988_s16 = scvt.s32.f32 %s2987_s5 }
 0x9c1   :  { %4554 = vmatpush3.bf16.msra.mxu1 %v4553_v5  ;;  %s2992_s17 = sadd.f32 %s2988_s16, %s6721_s7  ;;  %v2989_v62 = vstv %s2988_s16 }
 0x9c2   :  { %4555 = vmatprep.subr.bf16.mxu1 %v4763_v58 }
 0x9c3   :  { %s2993_s18 = smax.f32 %s4766_s1, %s2992_s17 }
 0x9c4   :  { %v2994_v56 = vstv %s2993_s18 }
 0x9c5   :  { %4557 = vmatpush3.bf16.msra.mxu1 %v4556_v10 }
 0x9c6   :  { %4558 = vmatprep.subr.bf16.mxu1 %v4763_v58 }
 0x9c9   :  { %4560 = vmatpush3.bf16.msra.mxu1 %v4559_v23 }
 0x9ca   :  { %4561 = vmatprep.subr.bf16.mxu1 %v4763_v58 }
 0x9cd   :  { %4563 = vmatpush3.bf16.msra.mxu1 %v4562_v28 }
 0x9ce   :  { %4564 = vmatprep.subr.bf16.mxu1 %v4763_v58 }
 0x9d1   :  { %4566 = vmatpush3.bf16.msra.mxu1 %v4565_v38 }
 0xa87   :  { %v2860_v17 = vpop.f32.mrb[24].mxu1  ;;  %v2931_v47 = vpop.f32.mrb[16].mxu0 }
 0xa88   :  { %v2862_v40 = vpop.f32.mrb[25].mxu1  ;;  %v3715_v41 = vpop.f32.mrb[17].mxu0  ;;  %v2952_v60 = vrot.slane %v2931_v47, %v6375_v0 }
 0xa89   :  { %v2938_v42 = vcombine.low %v2860_v17, %v2862_v40 }
 0xa8b   :  { %v2945_v45 = vrot.slane %v2938_v42, %v6375_v0 }
 0xa8d   :  { %v2953_v4 = vcombine.low %v2945_v45, %v2952_v60 }
 0xa8f   :  { %v2960_v14 = vrot.slane %v2953_v4, %v6375_v0 }
 0xa91   :  { %v2962_v24 = vadd.f32 %v2960_v14, %v2793_v21 }
 0xa93   :  { %v3123_v26 = vmul.f32 -1.442695, %v2962_v24  ;;  %v2970_v32 = vrot.slane %v2962_v24, 1  ;;  %v2978_v54 = vrot.slane %v2962_v24, 2 }
 0xa95   :  { %4721 = vpow2.f32 %v3123_v26  ;;  %v3124_v58 = vmul.f32 -1.442695, %v2970_v32 }
 0xa97   :  { %4723 = vpow2.f32 %v3124_v58 }
 0xa9f   :  { %v4722_v36 = vpop.eup %4721 }
 0xaa0   :  { %v2966_v6 = vadd.f32 1.0, %v4722_v36 }
 0xaa1   :  { %v4724_v39 = vpop.eup %4723 }
 0xaa2   :  { %4725 = vrcp.f32 %v2966_v6  ;;  %v2975_v44 = vadd.f32 1.0, %v4724_v39 }
 0xaa3   :  { %4727 = vtanh.f32 %v2978_v54 }
 0xaa4   :  { %4729 = vrcp.f32 %v2975_v44 }
 0xaac   :  { %v4726_v0 = vpop.eup %4725 }
 0xaad   :  { %v4728_v20 = vpop.eup %4727 }
 0xaae   :  { %v4730_v51 = vpop.eup %4729  ;;  %v2982_v61 = vmul.f32 %v4728_v20, %v4726_v0 }
 0xaaf   :  { %v2981_v35 = vmul.f32 %v4730_v51, %v6731_v9 }
 0xab1   :  { %v2983_v19 = vadd.f32 %v2982_v61, %v2981_v35 }
 0xab3   :  { %4731 = vtanh.f32 %v2983_v19 }
 0xab4   :  { %4733 = vrcp.f32 %v2994_v56 }
 0xabd   :  { %v4732_v2 = vpop.eup %4731 }
 0xabe   :  { %v2990_v1 = vmul.f32 %v4732_v2, %v2989_v62  ;;  %v4734_v15 = vpop.eup %4733 }
 0xac0   :  { %v2991_v18 = vadd.f32 %v2990_v1, %v6738_v50 }
 0xac2   :  { %v2996_v25 = vmul.f32 %v4734_v15, %v2991_v18 }
 0xac4   :  { %3749 = vmatmul.mubr.f32.vlgmr.msra.gmra.mrb[26].mxu1 %v2996_v25 }
 0xb97   :  { %v3080_v48 = vpop.f32.mrb[26].mxu1 }
 0xb98   :  { %v3081_v49 = vadd.f32 %v3080_v48, %v3013_v46  ;;  %v3750_v11 = vpop.f32.mrb[27].mxu1 }
 0xb9a   :  { %v3085_v43 = vsel %vm3084_vm8, %v3081_v49, -inf }
 0xb9b   :  { %3086 = vmax.xlane.f32.xlu1 %v3085_v43 }
 0xc28   :  { %v3087_v9 = vpop.xlane.xlu1 %3086 }
 0xc29   :  { %v3088_v16 = vsub.f32 %v3081_v49, %v3087_v9 }
 0xc2b   :  { %v3089_v53 = vmul.f32 1.442695, %v3088_v16 }
 0xc2d   :  { %4735 = vpow2.f32 %v3089_v53 }
 0xc37   :  { %v4736_v59 = vpop.eup %4735 }
 0xc38   :  { %v3091_v30 = vsel %vm3084_vm8, %v4736_v59, 0.0 }
 0xc39   :  { %3092 = vadd.xlane.f32.xlu0 %v3091_v30 }
 0xcc6   :  { %v3093_v50 = vpop.xlane.xlu0 %3092 }
 0xcc7   :  { %4737 = vrcp.f32 %v3093_v50 }
 0xcd1   :  { %v4738_v31 = vpop.eup %4737 }
 0xcd2   :  { %v3095_v55 = vmul.f32 %v4738_v31, %v4736_v59 }
 0xcd4   :  { %3096 = vst [vmem:[%s6818_s11] sm:$0x1] %v3095_v55 }

</bundles_post_ra>
